<compile_context>
chip_gen: v7x
topology: tpu7x:2x2x1
jax: 0.10.0
libtpu: 0.0.40
codegen_flags: <defaults>
</compile_context>

<pallas_src>
import functools

import jax
import jax.numpy as jnp
from jax.experimental import pallas as pl
from jax.experimental.pallas import tpu as pltpu

IMG_DIM = 784
IMG_PAD = 896          # 7 * 128, lane-dense store for x_dec
HIDDEN = 256
DEFAULT_BATCH_TILE = 128   # natural M tile for v5e; 256 also fine on v6e/v7x


def _leaky_relu(x, slope=0.01):
    return jnp.where(x > 0, x, slope * x)


def _round_up(n, m):
    return ((n + m - 1) // m) * m


# ----------------------------------------------------------------------------
# Kernel
# ----------------------------------------------------------------------------
def vae_fwd_kernel(x_ref, rv_ref,
                   w1_ref, b1_ref, w2_ref, b2_ref,
                   w3_ref, b3_ref, w4_ref, b4_ref,
                   xenc_ref, xdec_ref, mu_ref, std_ref):
    ZP = rv_ref.shape[1]          # padded latent width (multiple of 128)

    # ---- encoder -------------------------------------------------------
    x = x_ref[...]                # (TB, 784) bf16
    h1 = _leaky_relu(
        jnp.dot(x, w1_ref[...], preferred_element_type=jnp.float32) + b1_ref[...]
    )
    # fused mu|logvar projection: (TB, 256) @ (256, 2*ZP)
    ml = jnp.dot(h1.astype(jnp.bfloat16), w2_ref[...],
                 preferred_element_type=jnp.float32) + b2_ref[...]
    mu = ml[:, :ZP]
    logvar = ml[:, ZP:]
    std = jnp.exp(logvar * 0.5)

    # reparameterization with per-sample L2-normalized noise.
    # TODO(synk): original torch normalizes over dims (1,2,3) of a 2-D tensor
    # (would raise); we normalize over the latent axis, the clear intent.
    rv = rv_ref[...]              # (TB, ZP) f32, padded cols are zero
    rv_n = rv * jax.lax.rsqrt(jnp.sum(rv * rv, axis=1, keepdims=True))
    x_enc = mu + rv_n * std

    # ---- decoder -------------------------------------------------------
    h3 = _leaky_relu(
        jnp.dot(x_enc.astype(jnp.bfloat16), w3_ref[...],
                preferred_element_type=jnp.float32) + b3_ref[...]
    )
    h4 = jnp.dot(h3.astype(jnp.bfloat16), w4_ref[...],
                 preferred_element_type=jnp.float32) + b4_ref[...]   # (TB, 896)
    # padded columns of h4 are exactly zero, so the norm equals the 784-col norm
    x_dec = h4 * jax.lax.rsqrt(jnp.sum(h4 * h4, axis=1, keepdims=True))

    xenc_ref[...] = x_enc
    xdec_ref[...] = x_dec
    mu_ref[...] = mu
    std_ref[...] = std


# ----------------------------------------------------------------------------
# Parameter packing (done once): bf16 cast + mu/logvar fusion + lane padding
# ----------------------------------------------------------------------------
def pack_params(p, latent_z):
    Z = latent_z
    ZP = _round_up(max(Z, 128), 128)

    w1 = p["w1"].astype(jnp.bfloat16)                         # (784, 256)
    b1 = p["b1"].astype(jnp.float32)                          # (1, 256)

    w21p = jnp.pad(p["w21"], ((0, 0), (0, ZP - Z)))
    w22p = jnp.pad(p["w22"], ((0, 0), (0, ZP - Z)))
    w2 = jnp.concatenate([w21p, w22p], axis=1).astype(jnp.bfloat16)   # (256, 2*ZP)
    b21p = jnp.pad(p["b21"], ((0, 0), (0, ZP - Z)))
    b22p = jnp.pad(p["b22"], ((0, 0), (0, ZP - Z)))
    b2 = jnp.concatenate([b21p, b22p], axis=1).astype(jnp.float32)    # (1, 2*ZP)

    w3 = jnp.pad(p["w3"], ((0, ZP - Z), (0, 0))).astype(jnp.bfloat16)  # (ZP, 256)
    b3 = p["b3"].astype(jnp.float32)                                    # (1, 256)

    w4 = jnp.pad(p["w4"], ((0, 0), (0, IMG_PAD - IMG_DIM))).astype(jnp.bfloat16)  # (256, 896)
    b4 = jnp.pad(p["b4"], ((0, 0), (0, IMG_PAD - IMG_DIM))).astype(jnp.float32)   # (1, 896)

    return dict(w1=w1, b1=b1, w2=w2, b2=b2, w3=w3, b3=b3, w4=w4, b4=b4)


# ----------------------------------------------------------------------------
# Wrapper
# ----------------------------------------------------------------------------
@functools.partial(jax.jit, static_argnames=("latent_z", "batch_tile"))
def mnist_vae_forward(x, rv, packed, *, latent_z, batch_tile=DEFAULT_BATCH_TILE):
    """x: (B, 784) f32, rv: (B, Z) f32 raw gaussian noise."""
    B = x.shape[0]
    Z = latent_z
    ZP = packed["w3"].shape[0]
    TB = batch_tile
    BP = _round_up(B, TB)

    # pad batch (zeros) and latent noise (cols with 0, rows with 1 to avoid
    # 0/0 in padded-row normalization); padding is sliced off below.
    xp = jnp.pad(x, ((0, BP - B), (0, 0))).astype(jnp.bfloat16)        # (BP, 784)
    rvp = jnp.pad(rv, ((0, 0), (0, ZP - Z)))                           # (B, ZP)
    rvp = jnp.pad(rvp, ((0, BP - B), (0, 0)), constant_values=1.0)     # (BP, ZP)

    grid = (BP // TB,)

    def batch_spec(cols):
        return pl.BlockSpec((TB, cols), lambda i: (i, 0))

    def const_spec(arr):
        return pl.BlockSpec(arr.shape, lambda i: (0, 0))   # weights stay resident

    args = (xp, rvp,
            packed["w1"], packed["b1"], packed["w2"], packed["b2"],
            packed["w3"], packed["b3"], packed["w4"], packed["b4"])

    flops = 2 * BP * (IMG_DIM * HIDDEN + HIDDEN * 2 * ZP + ZP * HIDDEN + HIDDEN * IMG_PAD)
    out_bytes = 4 * BP * (3 * ZP + IMG_PAD)
    in_bytes = sum(int(a.size) * a.dtype.itemsize for a in args)
    cost = pl.CostEstimate(flops=flops,
                           transcendentals=BP * ZP,
                           bytes_accessed=in_bytes + out_bytes)

    out_shape = (
        jax.ShapeDtypeStruct((BP, ZP), jnp.float32),        # x_enc
        jax.ShapeDtypeStruct((BP, IMG_PAD), jnp.float32),   # x_dec
        jax.ShapeDtypeStruct((BP, ZP), jnp.float32),        # mu
        jax.ShapeDtypeStruct((BP, ZP), jnp.float32),        # std
    )

    x_enc, x_dec, mu, std = pl.pallas_call(
        vae_fwd_kernel,
        out_shape=out_shape,
        grid=grid,
        in_specs=[
            batch_spec(IMG_DIM),           # x
            batch_spec(ZP),                # rv
            const_spec(packed["w1"]), const_spec(packed["b1"]),
            const_spec(packed["w2"]), const_spec(packed["b2"]),
            const_spec(packed["w3"]), const_spec(packed["b3"]),
            const_spec(packed["w4"]), const_spec(packed["b4"]),
        ],
        out_specs=(batch_spec(ZP), batch_spec(IMG_PAD),
                   batch_spec(ZP), batch_spec(ZP)),
        compiler_params=pltpu.CompilerParams(
            dimension_semantics=("parallel",)),
        cost_estimate=cost,
    )(*args)

    return (x_enc[:B, :Z], x_dec[:B, :IMG_DIM], mu[:B, :Z], std[:B, :Z])


# ----------------------------------------------------------------------------
# Init + reference
# ----------------------------------------------------------------------------
def init_params(key, latent_z):
    """Deterministic init mimicking nn.Linear default (U[-1/sqrt(fan_in), ...])."""
    def linear(key, fan_in, fan_out):
        kw, kb = jax.random.split(key)
        bound = 1.0 / jnp.sqrt(fan_in)
        w = jax.random.uniform(kw, (fan_in, fan_out), jnp.float32, -bound, bound)
        b = jax.random.uniform(kb, (1, fan_out), jnp.float32, -bound, bound)
        return w, b

    k1, k2, k3, k4, k5 = jax.random.split(key, 5)
    w1, b1 = linear(k1, IMG_DIM, HIDDEN)      # down1
    w21, b21 = linear(k2, HIDDEN, latent_z)   # down21
    w22, b22 = linear(k3, HIDDEN, latent_z)   # down22
    w3, b3 = linear(k4, latent_z, HIDDEN)     # up1
    w4, b4 = linear(k5, HIDDEN, IMG_DIM)      # up2
    return dict(w1=w1, b1=b1, w21=w21, b21=b21, w22=w22, b22=b22,
                w3=w3, b3=b3, w4=w4, b4=b4)


def reference_forward(x, rv, p):
    """Pure-JAX f32 reference for correctness check."""
    h1 = _leaky_relu(x @ p["w1"] + p["b1"])
    mu = h1 @ p["w21"] + p["b21"]
    logvar = h1 @ p["w22"] + p["b22"]
    std = jnp.exp(logvar / 2)
    rv_n = rv / jnp.sqrt(jnp.sum(rv ** 2, axis=1, keepdims=True))
    x_enc = mu + rv_n * std
    h3 = _leaky_relu(x_enc @ p["w3"] + p["b3"])
    h4 = h3 @ p["w4"] + p["b4"]
    x_dec = h4 / jnp.sqrt(jnp.sum(h4 ** 2, axis=1, keepdims=True))
    return x_enc, x_dec, mu, std


if __name__ == "__main__":
    B = 8
    LATENT_Z = 32

    key = jax.random.PRNGKey(0)
    k_params, k_x, k_rv = jax.random.split(key, 3)

    params = init_params(k_params, LATENT_Z)
    packed = pack_params(params, LATENT_Z)

    x = jax.random.uniform(k_x, (B, IMG_DIM), jnp.float32)    # MNIST-like flat input
    rv = jax.random.normal(k_rv, (B, LATENT_Z), jnp.float32)  # gaussian noise (deterministic)

    outs = mnist_vae_forward(x, rv, packed, latent_z=LATENT_Z)
    outs = jax.block_until_ready(outs)
    x_enc, x_dec, mu, std = outs

    refs = reference_forward(x, rv, params)
    names = ("x_enc", "x_dec", "mu", "std")
    for name, got, ref in zip(names, outs, refs):
        assert got.shape == ref.shape, f"{name}: shape {got.shape} vs {ref.shape}"
        assert got.dtype == ref.dtype, f"{name}: dtype {got.dtype} vs {ref.dtype}"
        assert bool(jnp.all(jnp.isfinite(got))), f"{name}: non-finite values"
        # bf16 matmuls with f32 accumulation: check whole-tensor relative error
        rel = jnp.linalg.norm(got - ref) / (jnp.linalg.norm(ref) + 1e-6)
        assert float(rel) < 5e-2, f"{name}: rel error {float(rel):.4f} vs f32 reference"

    print("KERNEL_OK")
</pallas_src>

<mosaic_0001>
module attributes {stable_mosaic.version = 11 : i64} {
  func.func @vae_fwd_kernel(%arg0: i32, %arg1: memref<128x784xbf16, #tpu.memory_space<vmem>>, %arg2: memref<128x128xf32, #tpu.memory_space<vmem>>, %arg3: memref<784x256xbf16, #tpu.memory_space<vmem>>, %arg4: memref<1x256xf32, #tpu.memory_space<vmem>>, %arg5: memref<256x256xbf16, #tpu.memory_space<vmem>>, %arg6: memref<1x256xf32, #tpu.memory_space<vmem>>, %arg7: memref<128x256xbf16, #tpu.memory_space<vmem>>, %arg8: memref<1x256xf32, #tpu.memory_space<vmem>>, %arg9: memref<256x896xbf16, #tpu.memory_space<vmem>>, %arg10: memref<1x896xf32, #tpu.memory_space<vmem>>, %arg11: memref<128x128xf32, #tpu.memory_space<vmem>>, %arg12: memref<128x896xf32, #tpu.memory_space<vmem>>, %arg13: memref<128x128xf32, #tpu.memory_space<vmem>>, %arg14: memref<128x128xf32, #tpu.memory_space<vmem>>) attributes {dimension_semantics = [#tpu.dimension_semantics<parallel>], iteration_bounds = array<i64: 1>, scalar_prefetch = 0 : i64, scratch_operands = 0 : i64, tpu.core_type = #tpu.core_type<tc>, window_params = [{transform_indices = @transform_0, window_bounds = array<i64: 128, 784>}, {transform_indices = @transform_1, window_bounds = array<i64: 128, 128>}, {pipeline_mode = #tpu.pipeline_mode<synchronous>, transform_indices = @transform_2, window_bounds = array<i64: 784, 256>}, {pipeline_mode = #tpu.pipeline_mode<synchronous>, transform_indices = @transform_3, window_bounds = array<i64: 1, 256>}, {pipeline_mode = #tpu.pipeline_mode<synchronous>, transform_indices = @transform_4, window_bounds = array<i64: 256, 256>}, {pipeline_mode = #tpu.pipeline_mode<synchronous>, transform_indices = @transform_5, window_bounds = array<i64: 1, 256>}, {pipeline_mode = #tpu.pipeline_mode<synchronous>, transform_indices = @transform_6, window_bounds = array<i64: 128, 256>}, {pipeline_mode = #tpu.pipeline_mode<synchronous>, transform_indices = @transform_7, window_bounds = array<i64: 1, 256>}, {pipeline_mode = #tpu.pipeline_mode<synchronous>, transform_indices = @transform_8, window_bounds = array<i64: 256, 896>}, {pipeline_mode = #tpu.pipeline_mode<synchronous>, transform_indices = @transform_9, window_bounds = array<i64: 1, 896>}, {transform_indices = @transform_10, window_bounds = array<i64: 128, 128>}, {transform_indices = @transform_11, window_bounds = array<i64: 128, 896>}, {transform_indices = @transform_12, window_bounds = array<i64: 128, 128>}, {transform_indices = @transform_13, window_bounds = array<i64: 128, 128>}]} {
    %c0 = arith.constant 0 : index
    %c0_0 = arith.constant 0 : index
    %0 = vector.load %arg1[%c0, %c0_0] : memref<128x784xbf16, #tpu.memory_space<vmem>>, vector<128x784xbf16>
    %c0_1 = arith.constant 0 : index
    %c0_2 = arith.constant 0 : index
    %1 = vector.load %arg3[%c0_1, %c0_2] : memref<784x256xbf16, #tpu.memory_space<vmem>>, vector<784x256xbf16>
    %cst = arith.constant dense<0.000000e+00> : vector<128x256xf32>
    %2 = tpu.matmul %0, %1, %cst {dimension_numbers = #tpu.dot_dimension_numbers<[1], [0], [0], [1], [0, 0, 1, 1], [], []>} : vector<128x784xbf16>, vector<784x256xbf16>, vector<128x256xf32> -> vector<128x256xf32>
    %c0_3 = arith.constant 0 : index
    %c0_4 = arith.constant 0 : index
    %3 = vector.load %arg4[%c0_3, %c0_4] : memref<1x256xf32, #tpu.memory_space<vmem>>, vector<1x256xf32>
    %4 = vector.broadcast %3 : vector<1x256xf32> to vector<128x256xf32>
    %5 = arith.addf %2, %4 : vector<128x256xf32>
    %cst_5 = arith.constant 0.000000e+00 : f32
    %6 = vector.broadcast %cst_5 : f32 to vector<128x256xf32>
    %7 = arith.cmpf ogt, %5, %6 : vector<128x256xf32>
    %cst_6 = arith.constant 0.00999999977 : f32
    %8 = vector.broadcast %cst_6 : f32 to vector<128x256xf32>
    %9 = arith.mulf %8, %5 : vector<128x256xf32>
    %10 = arith.select %7, %5, %9 : vector<128x256xi1>, vector<128x256xf32>
    %11 = arith.truncf %10 : vector<128x256xf32> to vector<128x256xbf16>
    %c0_7 = arith.constant 0 : index
    %c0_8 = arith.constant 0 : index
    %12 = vector.load %arg5[%c0_7, %c0_8] : memref<256x256xbf16, #tpu.memory_space<vmem>>, vector<256x256xbf16>
    %cst_9 = arith.constant dense<0.000000e+00> : vector<128x256xf32>
    %13 = tpu.matmul %11, %12, %cst_9 {dimension_numbers = #tpu.dot_dimension_numbers<[1], [0], [0], [1], [0, 0, 1, 1], [], []>} : vector<128x256xbf16>, vector<256x256xbf16>, vector<128x256xf32> -> vector<128x256xf32>
    %c0_10 = arith.constant 0 : index
    %c0_11 = arith.constant 0 : index
    %14 = vector.load %arg6[%c0_10, %c0_11] : memref<1x256xf32, #tpu.memory_space<vmem>>, vector<1x256xf32>
    %15 = vector.broadcast %14 : vector<1x256xf32> to vector<128x256xf32>
    %16 = arith.addf %13, %15 : vector<128x256xf32>
    %17 = vector.extract_strided_slice %16 {offsets = [0, 0], sizes = [128, 128], strides = [1, 1]} : vector<128x256xf32> to vector<128x128xf32>
    %18 = vector.extract_strided_slice %16 {offsets = [0, 128], sizes = [128, 128], strides = [1, 1]} : vector<128x256xf32> to vector<128x128xf32>
    %cst_12 = arith.constant 5.000000e-01 : f32
    %19 = vector.broadcast %cst_12 : f32 to vector<128x128xf32>
    %20 = arith.mulf %18, %19 : vector<128x128xf32>
    %21 = math.exp %20 : vector<128x128xf32>
    %c0_13 = arith.constant 0 : index
    %c0_14 = arith.constant 0 : index
    %22 = vector.load %arg2[%c0_13, %c0_14] : memref<128x128xf32, #tpu.memory_space<vmem>>, vector<128x128xf32>
    %23 = arith.mulf %22, %22 : vector<128x128xf32>
    %cst_15 = arith.constant dense<0.000000e+00> : vector<128xf32>
    %24 = vector.multi_reduction <add>, %23, %cst_15 [1] : vector<128x128xf32> to vector<128xf32>
    %25 = vector.shape_cast %24 : vector<128xf32> to vector<128x1xf32>
    %26 = math.rsqrt %25 : vector<128x1xf32>
    %27 = vector.broadcast %26 : vector<128x1xf32> to vector<128x128xf32>
    %28 = arith.mulf %22, %27 : vector<128x128xf32>
    %29 = arith.mulf %28, %21 : vector<128x128xf32>
    %30 = arith.addf %17, %29 : vector<128x128xf32>
    %31 = arith.truncf %30 : vector<128x128xf32> to vector<128x128xbf16>
    %c0_16 = arith.constant 0 : index
    %c0_17 = arith.constant 0 : index
    %32 = vector.load %arg7[%c0_16, %c0_17] : memref<128x256xbf16, #tpu.memory_space<vmem>>, vector<128x256xbf16>
    %cst_18 = arith.constant dense<0.000000e+00> : vector<128x256xf32>
    %33 = tpu.matmul %31, %32, %cst_18 {dimension_numbers = #tpu.dot_dimension_numbers<[1], [0], [0], [1], [0, 0, 1, 1], [], []>} : vector<128x128xbf16>, vector<128x256xbf16>, vector<128x256xf32> -> vector<128x256xf32>
    %c0_19 = arith.constant 0 : index
    %c0_20 = arith.constant 0 : index
    %34 = vector.load %arg8[%c0_19, %c0_20] : memref<1x256xf32, #tpu.memory_space<vmem>>, vector<1x256xf32>
    %35 = vector.broadcast %34 : vector<1x256xf32> to vector<128x256xf32>
    %36 = arith.addf %33, %35 : vector<128x256xf32>
    %cst_21 = arith.constant 0.000000e+00 : f32
    %37 = vector.broadcast %cst_21 : f32 to vector<128x256xf32>
    %38 = arith.cmpf ogt, %36, %37 : vector<128x256xf32>
    %cst_22 = arith.constant 0.00999999977 : f32
    %39 = vector.broadcast %cst_22 : f32 to vector<128x256xf32>
    %40 = arith.mulf %39, %36 : vector<128x256xf32>
    %41 = arith.select %38, %36, %40 : vector<128x256xi1>, vector<128x256xf32>
    %42 = arith.truncf %41 : vector<128x256xf32> to vector<128x256xbf16>
    %c0_23 = arith.constant 0 : index
    %c0_24 = arith.constant 0 : index
    %43 = vector.load %arg9[%c0_23, %c0_24] : memref<256x896xbf16, #tpu.memory_space<vmem>>, vector<256x896xbf16>
    %cst_25 = arith.constant dense<0.000000e+00> : vector<128x896xf32>
    %44 = tpu.matmul %42, %43, %cst_25 {dimension_numbers = #tpu.dot_dimension_numbers<[1], [0], [0], [1], [0, 0, 1, 1], [], []>} : vector<128x256xbf16>, vector<256x896xbf16>, vector<128x896xf32> -> vector<128x896xf32>
    %c0_26 = arith.constant 0 : index
    %c0_27 = arith.constant 0 : index
    %45 = vector.load %arg10[%c0_26, %c0_27] : memref<1x896xf32, #tpu.memory_space<vmem>>, vector<1x896xf32>
    %46 = vector.broadcast %45 : vector<1x896xf32> to vector<128x896xf32>
    %47 = arith.addf %44, %46 : vector<128x896xf32>
    %48 = arith.mulf %47, %47 : vector<128x896xf32>
    %cst_28 = arith.constant dense<0.000000e+00> : vector<128xf32>
    %49 = vector.multi_reduction <add>, %48, %cst_28 [1] : vector<128x896xf32> to vector<128xf32>
    %50 = vector.shape_cast %49 : vector<128xf32> to vector<128x1xf32>
    %51 = math.rsqrt %50 : vector<128x1xf32>
    %52 = vector.broadcast %51 : vector<128x1xf32> to vector<128x896xf32>
    %53 = arith.mulf %47, %52 : vector<128x896xf32>
    %c0_29 = arith.constant 0 : index
    %c0_30 = arith.constant 0 : index
    %54 = vector.load %arg11[%c0_29, %c0_30] : memref<128x128xf32, #tpu.memory_space<vmem>>, vector<128x128xf32>
    tpu.vector_store %arg11[%c0_29, %c0_30], %30 {strides = array<i32>} : memref<128x128xf32, #tpu.memory_space<vmem>>, vector<128x128xf32>,
    %c0_31 = arith.constant 0 : index
    %c0_32 = arith.constant 0 : index
    %55 = vector.load %arg12[%c0_31, %c0_32] : memref<128x896xf32, #tpu.memory_space<vmem>>, vector<128x896xf32>
    tpu.vector_store %arg12[%c0_31, %c0_32], %53 {strides = array<i32>} : memref<128x896xf32, #tpu.memory_space<vmem>>, vector<128x896xf32>,
    %c0_33 = arith.constant 0 : index
    %c0_34 = arith.constant 0 : index
    %56 = vector.load %arg13[%c0_33, %c0_34] : memref<128x128xf32, #tpu.memory_space<vmem>>, vector<128x128xf32>
    tpu.vector_store %arg13[%c0_33, %c0_34], %17 {strides = array<i32>} : memref<128x128xf32, #tpu.memory_space<vmem>>, vector<128x128xf32>,
    %c0_35 = arith.constant 0 : index
    %c0_36 = arith.constant 0 : index
    %57 = vector.load %arg14[%c0_35, %c0_36] : memref<128x128xf32, #tpu.memory_space<vmem>>, vector<128x128xf32>
    tpu.vector_store %arg14[%c0_35, %c0_36], %21 {strides = array<i32>} : memref<128x128xf32, #tpu.memory_space<vmem>>, vector<128x128xf32>,
    return
  }
  func.func @transform_0(%arg0: i32) -> (i32, i32) {
    %c0_i32 = arith.constant 0 : i32
    %c0_i32_0 = arith.constant 0 : i32
    return %arg0, %c0_i32 : i32, i32
  }
  func.func @transform_1(%arg0: i32) -> (i32, i32) {
    %c0_i32 = arith.constant 0 : i32
    %c0_i32_0 = arith.constant 0 : i32
    return %arg0, %c0_i32 : i32, i32
  }
  func.func @transform_2(%arg0: i32) -> (i32, i32) {
    %c0_i32 = arith.constant 0 : i32
    %c0_i32_0 = arith.constant 0 : i32
    %c0_i32_1 = arith.constant 0 : i32
    return %c0_i32, %c0_i32_0 : i32, i32
  }
  func.func @transform_3(%arg0: i32) -> (i32, i32) {
    %c0_i32 = arith.constant 0 : i32
    %c0_i32_0 = arith.constant 0 : i32
    %c0_i32_1 = arith.constant 0 : i32
    return %c0_i32, %c0_i32_0 : i32, i32
  }
  func.func @transform_4(%arg0: i32) -> (i32, i32) {
    %c0_i32 = arith.constant 0 : i32
    %c0_i32_0 = arith.constant 0 : i32
    %c0_i32_1 = arith.constant 0 : i32
    return %c0_i32, %c0_i32_0 : i32, i32
  }
  func.func @transform_5(%arg0: i32) -> (i32, i32) {
    %c0_i32 = arith.constant 0 : i32
    %c0_i32_0 = arith.constant 0 : i32
    %c0_i32_1 = arith.constant 0 : i32
    return %c0_i32, %c0_i32_0 : i32, i32
  }
  func.func @transform_6(%arg0: i32) -> (i32, i32) {
    %c0_i32 = arith.constant 0 : i32
    %c0_i32_0 = arith.constant 0 : i32
    %c0_i32_1 = arith.constant 0 : i32
    return %c0_i32, %c0_i32_0 : i32, i32
  }
  func.func @transform_7(%arg0: i32) -> (i32, i32) {
    %c0_i32 = arith.constant 0 : i32
    %c0_i32_0 = arith.constant 0 : i32
    %c0_i32_1 = arith.constant 0 : i32
    return %c0_i32, %c0_i32_0 : i32, i32
  }
  func.func @transform_8(%arg0: i32) -> (i32, i32) {
    %c0_i32 = arith.constant 0 : i32
    %c0_i32_0 = arith.constant 0 : i32
    %c0_i32_1 = arith.constant 0 : i32
    return %c0_i32, %c0_i32_0 : i32, i32
  }
  func.func @transform_9(%arg0: i32) -> (i32, i32) {
    %c0_i32 = arith.constant 0 : i32
    %c0_i32_0 = arith.constant 0 : i32
    %c0_i32_1 = arith.constant 0 : i32
    return %c0_i32, %c0_i32_0 : i32, i32
  }
  func.func @transform_10(%arg0: i32) -> (i32, i32) {
    %c0_i32 = arith.constant 0 : i32
    %c0_i32_0 = arith.constant 0 : i32
    return %arg0, %c0_i32 : i32, i32
  }
  func.func @transform_11(%arg0: i32) -> (i32, i32) {
    %c0_i32 = arith.constant 0 : i32
    %c0_i32_0 = arith.constant 0 : i32
    return %arg0, %c0_i32 : i32, i32
  }
  func.func @transform_12(%arg0: i32) -> (i32, i32) {
    %c0_i32 = arith.constant 0 : i32
    %c0_i32_0 = arith.constant 0 : i32
    return %arg0, %c0_i32 : i32, i32
  }
  func.func @transform_13(%arg0: i32) -> (i32, i32) {
    %c0_i32 = arith.constant 0 : i32
    %c0_i32_0 = arith.constant 0 : i32
    return %arg0, %c0_i32 : i32, i32
  }
}

</mosaic_0001>

<bundles_post_ra>
// kernel: mnist_vae_forward.1
= control target key start
LH: loop header
LB: loop body
LE: loop exit
PB: predicated region body
PF: predicated region fallthrough
CT: control target
= control target key end

     0   :  { %19 = vsyncpa [#allocation3], 0  ;;  %s7690_s0 = inlined_call_operand.vmem [shape: bf16[128,784], index: 0, kind: input, shape index: {}]   ;;  %s7691_s1 = inlined_call_operand.vmem [shape: f32[128,128], index: 1, kind: input, shape index: {}]   ;;  %s7692_s2 = inlined_call_operand.hbm [shape: bf16[784,256], index: 2, kind: input, shape index: {}]   ;;  %s7693_s3 = inlined_call_operand.vmem [shape: f32[1,256], index: 3, kind: input, shape index: {}]   ;;  %s7694_s4 = inlined_call_operand.vmem [shape: bf16[256,256], index: 4, kind: input, shape index: {}]   ;;  %s7695_s5 = inlined_call_operand.vmem [shape: f32[1,256], index: 5, kind: input, shape index: {}]   ;;  %s7696_s6 = inlined_call_operand.vmem [shape: bf16[128,256], index: 6, kind: input, shape index: {}]   ;;  %s7697_s7 = inlined_call_operand.vmem [shape: f32[1,256], index: 7, kind: input, shape index: {}]   ;;  %s7698_s8 = inlined_call_operand.hbm [shape: bf16[256,896], index: 8, kind: input, shape index: {}]   ;;  %s7699_s9 = inlined_call_operand.vmem [shape: f32[1,896], index: 9, kind: input, shape index: {}]   ;;  %s7700_s10 = inlined_call_operand.vmem [shape: f32[128,128], index: 10, kind: output, shape index: {0}]   ;;  %s7701_s11 = inlined_call_operand.vmem [shape: f32[128,896], index: 11, kind: output, shape index: {1}]   ;;  %s7702_s12 = inlined_call_operand.vmem [shape: f32[128,128], index: 12, kind: output, shape index: {2}]   ;;  %s7703_s13 = inlined_call_operand.vmem [shape: f32[128,128], index: 13, kind: output, shape index: {3}]  }
   0x1   :  { %20 = vsyncpa [#allocation5], 0  ;;  %s5290_s25 = smov [#allocation2]   ;;  %s5242_s29 = scalar_lea.hbm %s7692_s2, 12544 }
   0x2   :  { %s30_s26 = sshll.u32 %s5290_s25, 4  ;;  %p5243_p0 = scmp.ne.s32.totalorder %s7692_s2, %s5242_s29  ;;  %s31_s26 = int_to_ptr.vmem [resolvable:$true] %s30_s26 }
   0x3   :  { %p5246_p1 = scmp.lt.u32.totalorder %s5242_s29, %s7692_s2 }
   0x5   :  { %p5248_p2 = pnand %p5246_p1, %p5243_p0 }
   0x7   :  { %5251 = shalt.err (!%p5248_p2)
}
   0x8   :  { %s5252_s17 = scalar_lea.vmem %s31_s26, 12544  ;;  %p5257_p4 = scmp.lt.s32.totalorder %s31_s26, %s31_s26 }
   0x9   :  { %p5253_p3 = scmp.ne.s32.totalorder %s31_s26, %s5252_s17  ;;  %p5258_p5 = scmp.lt.s32.totalorder %s5252_s17, %s5252_s17 }
   0xb   :  { %p5259_p6 = por %p5258_p5, %p5257_p4 }
   0xd   :  { %p5260_p7 = pnand %p5259_p6, %p5253_p3 }
   0xf   :  { %5263 = shalt.err (!%p5260_p7)
}
  0x10   :  { %s5291_s18 = smov 128   ;;  %s5292_s19 = smov 8  }
  0x11   :  { %36 = dma.hbm_to_vmem [thread:$0]  %s7692_s2, 12544, %s31_s26, [#allocation3], %s5291_s18, %s5291_s18, %s5292_s19  }
  0x12   :  { %s5293_s22 = smov [#allocation4]   ;;  %s5264_s27 = scalar_lea.hbm %s7698_s8, 14336 }
  0x13   :  { %s52_s23 = sshll.u32 %s5293_s22, 4  ;;  %p5265_p8 = scmp.ne.s32.totalorder %s7698_s8, %s5264_s27  ;;  %s53_s23 = int_to_ptr.vmem [resolvable:$true] %s52_s23 }
  0x14   :  { %p5268_p9 = scmp.lt.u32.totalorder %s5264_s27, %s7698_s8 }
  0x16   :  { %p5270_p10 = pnand %p5268_p9, %p5265_p8 }
  0x18   :  { %5273 = shalt.err (!%p5270_p10)
}
  0x19   :  { %s5274_s15 = scalar_lea.vmem %s53_s23, 14336  ;;  %p5279_p12 = scmp.lt.s32.totalorder %s53_s23, %s53_s23 }
  0x1a   :  { %p5275_p11 = scmp.ne.s32.totalorder %s53_s23, %s5274_s15  ;;  %p5280_p13 = scmp.lt.s32.totalorder %s5274_s15, %s5274_s15 }
  0x1c   :  { %p5281_p0 = por %p5280_p13, %p5279_p12 }
  0x1e   :  { %p5282_p1 = pnand %p5281_p0, %p5275_p11 }
  0x20   :  { %5285 = shalt.err (!%p5282_p1)
}
  0x21   :  { %s5294_s2 = smov 448   ;;  %s5295_s26 = smov 28  }
  0x22   :  { %58 = dma.hbm_to_vmem [thread:$0]  %s7698_s8, 14336, %s53_s23, [#allocation5], %s5294_s2, %s5294_s2, %s5295_s26  }
  0x23   :  { %5286 = dma.done.wait [#allocation3], 12544  }
  0x24   :  { %5287 = vsyncadd [#allocation3], 4294954752 }
  0x25   :  { %5288 = dma.done.wait [#allocation5], 14336  }
  0x26   :  { %5289 = vsyncadd [#allocation5], 4294952960  ;;  %v4679_v0 = vld [vmem:[#allocation2 + $0x4] ss:$8 sps:$4 sm:$0xff]   ;;  %v4681_v1 = vld [vmem:[#allocation2] ss:$8 sps:$4 sm:$0xff]  }
  0x27   :  { %1037 = vmatprep.subr.bf16.mxu0 %v4679_v0  ;;  %v4682_v2 = vld [vmem:[#allocation2 + $0x14] ss:$8 sps:$4 sm:$0xff]   ;;  %v4684_v3 = vld [vmem:[#allocation2 + $0x10] ss:$8 sps:$4 sm:$0xff]   ;;  %v4685_v4 = vld [vmem:[#allocation2 + $0x24] ss:$8 sps:$4 sm:$0xff]  }
  0x28   :  { %1038 = vmatpush1.bf16.msra.mxu0 %v4681_v1  ;;  %v4687_v5 = vld [vmem:[#allocation2 + $0x20] ss:$8 sps:$4 sm:$0xff]   ;;  %v4688_v6 = vld [vmem:[#allocation2 + $0x34] ss:$8 sps:$4 sm:$0xff]   ;;  %v4690_v7 = vld [vmem:[#allocation2 + $0x30] ss:$8 sps:$4 sm:$0xff]  }
  0x29   :  { %1039 = vmatprep.subr.bf16.mxu0 %v4682_v2  ;;  %v4691_v8 = vld [vmem:[#allocation2 + $0x44] ss:$8 sps:$4 sm:$0xff]   ;;  %v4693_v9 = vld [vmem:[#allocation2 + $0x40] ss:$8 sps:$4 sm:$0xff]   ;;  %v4694_v10 = vld [vmem:[#allocation2 + $0x54] ss:$8 sps:$4 sm:$0xff]  }
  0x2a   :  { %v4696_v11 = vld [vmem:[#allocation2 + $0x50] ss:$8 sps:$4 sm:$0xff]   ;;  %v4697_v12 = vld [vmem:[#allocation2 + $0x64] ss:$8 sps:$4 sm:$0xff]   ;;  %v4699_v14 = vld [vmem:[#allocation2 + $0x60] ss:$8 sps:$4 sm:$0xff]  }
  0x2b   :  { %v4729_v13 = vld [vmem:[%s7690_s0 + $0x4] ss:$28 sps:$4 sm:$0xff]   ;;  %v4700_v15 = vld [vmem:[#allocation2 + $0x74] ss:$8 sps:$4 sm:$0xff]   ;;  %v4702_v16 = vld [vmem:[#allocation2 + $0x70] ss:$8 sps:$4 sm:$0xff]  }
  0x2c   :  { %1040 = vmatpush1.bf16.msra.mxu0 %v4684_v3  ;;  %1069 = vmatprep.mubr.bf16.mxu0 %v4729_v13  ;;  %v4703_v17 = vld [vmem:[#allocation2 + $0x84] ss:$8 sps:$4 sm:$0xff]   ;;  %v4705_v18 = vld [vmem:[#allocation2 + $0x80] ss:$8 sps:$4 sm:$0xff]   ;;  %v4706_v19 = vld [vmem:[#allocation2 + $0x94] ss:$8 sps:$4 sm:$0xff]  }
  0x2d   :  { %1041 = vmatprep.subr.bf16.mxu0 %v4685_v4  ;;  %v4708_v20 = vld [vmem:[#allocation2 + $0x90] ss:$8 sps:$4 sm:$0xff]   ;;  %v4709_v21 = vld [vmem:[#allocation2 + $0xa4] ss:$8 sps:$4 sm:$0xff]   ;;  %v4711_v22 = vld [vmem:[#allocation2 + $0xa0] ss:$8 sps:$4 sm:$0xff]  }
  0x2e   :  { %v4712_v23 = vld [vmem:[#allocation2 + $0xb4] ss:$8 sps:$4 sm:$0xff]   ;;  %v4714_v24 = vld [vmem:[#allocation2 + $0xb0] ss:$8 sps:$4 sm:$0xff]   ;;  %v4715_v25 = vld [vmem:[#allocation2 + $0xc4] ss:$8 sps:$4 sm:$0xff]  }
  0x2f   :  { %v4717_v26 = vld [vmem:[#allocation2 + $0xc0] ss:$8 sps:$4 sm:$0xff]   ;;  %v4718_v27 = vld [vmem:[#allocation2 + $0xd4] ss:$8 sps:$4 sm:$0xff]   ;;  %v4720_v28 = vld [vmem:[#allocation2 + $0xd0] ss:$8 sps:$4 sm:$0xff]  }
  0x30   :  { %1042 = vmatpush1.bf16.msra.mxu0 %v4687_v5  ;;  %v4721_v29 = vld [vmem:[#allocation2 + $0xe4] ss:$8 sps:$4 sm:$0xff]   ;;  %v4723_v30 = vld [vmem:[#allocation2 + $0xe0] ss:$8 sps:$4 sm:$0xff]   ;;  %v4724_v31 = vld [vmem:[#allocation2 + $0xf4] ss:$8 sps:$4 sm:$0xff]  }
  0x31   :  { %1043 = vmatprep.subr.bf16.mxu0 %v4688_v6  ;;  %v4726_v32 = vld [vmem:[#allocation2 + $0xf0] ss:$8 sps:$4 sm:$0xff]   ;;  %v4732_v33 = vld [vmem:[#allocation2 + $0x104] ss:$8 sps:$4 sm:$0xff]   ;;  %v4727_v34 = vld [vmem:[%s7690_s0] ss:$28 sps:$4 sm:$0xff]  }
  0x32   :  { %v4730_v35 = vld [vmem:[#allocation2 + $0x100] ss:$8 sps:$4 sm:$0xff]   ;;  %v4736_v36 = vld [vmem:[%s7690_s0 + $0x3c] ss:$28 sps:$4 sm:$0xff]   ;;  %v4741_v39 = vld [vmem:[#allocation2 + $0x124] ss:$8 sps:$4 sm:$0xff]  }
  0x33   :  { %v4735_v37 = vld [vmem:[#allocation2 + $0x114] ss:$8 sps:$4 sm:$0xff]   ;;  %v4733_v38 = vld [vmem:[#allocation2 + $0x110] ss:$8 sps:$4 sm:$0xff]   ;;  %v4739_v41 = vld [vmem:[#allocation2 + $0x120] ss:$8 sps:$4 sm:$0xff]  }
  0x34   :  { %1044 = vmatpush1.bf16.msra.mxu0 %v4690_v7  ;;  %v4738_v40 = vld [vmem:[%s7690_s0 + $0x38] ss:$28 sps:$4 sm:$0xff]   ;;  %v4750_v45 = vld [vmem:[#allocation2 + $0x144] ss:$8 sps:$4 sm:$0xff]   ;;  %v4748_v47 = vld [vmem:[#allocation2 + $0x140] ss:$8 sps:$4 sm:$0xff]  }
  0x35   :  { %1045 = vmatprep.subr.bf16.mxu0 %v4691_v8  ;;  %v4745_v42 = vld [vmem:[%s7690_s0 + $0x74] ss:$28 sps:$4 sm:$0xff]   ;;  %v4754_v48 = vld [vmem:[%s7690_s0 + $0xac] ss:$28 sps:$4 sm:$0xff]   ;;  %v4763_v54 = vld [vmem:[%s7690_s0 + $0xe4] ss:$28 sps:$4 sm:$0xff]  }
  0x36   :  { %v4744_v43 = vld [vmem:[#allocation2 + $0x134] ss:$8 sps:$4 sm:$0xff]   ;;  %v4742_v44 = vld [vmem:[#allocation2 + $0x130] ss:$8 sps:$4 sm:$0xff]   ;;  %v4759_v51 = vld [vmem:[#allocation2 + $0x164] ss:$8 sps:$4 sm:$0xff]  }
  0x37   :  { %v4747_v46 = vld [vmem:[%s7690_s0 + $0x70] ss:$28 sps:$4 sm:$0xff]   ;;  %v4753_v49 = vld [vmem:[#allocation2 + $0x154] ss:$8 sps:$4 sm:$0xff]   ;;  %v4756_v52 = vld [vmem:[%s7690_s0 + $0xa8] ss:$28 sps:$4 sm:$0xff]  }
  0x38   :  { %1046 = vmatpush1.bf16.msra.mxu0 %v4693_v9  ;;  %v4751_v50 = vld [vmem:[#allocation2 + $0x150] ss:$8 sps:$4 sm:$0xff]   ;;  %v4757_v53 = vld [vmem:[#allocation2 + $0x160] ss:$8 sps:$4 sm:$0xff]   ;;  %v4762_v55 = vld [vmem:[#allocation2 + $0x174] ss:$8 sps:$4 sm:$0xff]  }
  0x39   :  { %1047 = vmatprep.subr.bf16.mxu0 %v4694_v10  ;;  %v4760_v56 = vld [vmem:[#allocation2 + $0x170] ss:$8 sps:$4 sm:$0xff]   ;;  %v4765_v57 = vld [vmem:[%s7690_s0 + $0xe0] ss:$28 sps:$4 sm:$0xff]   ;;  %v4768_v58 = vld [vmem:[#allocation2 + $0x184] ss:$8 sps:$4 sm:$0xff]  }
  0x3a   :  { %v4766_v59 = vld [vmem:[#allocation2 + $0x180] ss:$8 sps:$4 sm:$0xff]   ;;  %v4772_v60 = vld [vmem:[%s7690_s0 + $0x11c] ss:$28 sps:$4 sm:$0xff]   ;;  %v4777_v63 = vld [vmem:[#allocation2 + $0x1a4] ss:$8 sps:$4 sm:$0xff]  }
  0x3b   :  { %v4771_v61 = vld [vmem:[#allocation2 + $0x194] ss:$8 sps:$4 sm:$0xff]   ;;  %v4769_v62 = vld [vmem:[#allocation2 + $0x190] ss:$8 sps:$4 sm:$0xff]   ;;  %v4775_v1 = vld [vmem:[#allocation2 + $0x1a0] ss:$8 sps:$4 sm:$0xff]  }
  0x3c   :  { %1048 = vmatpush1.bf16.msra.mxu0 %v4696_v11  ;;  %v4774_v0 = vld [vmem:[%s7690_s0 + $0x118] ss:$28 sps:$4 sm:$0xff]   ;;  %v4786_v5 = vld [vmem:[#allocation2 + $0x1c4] ss:$8 sps:$4 sm:$0xff]   ;;  %v4784_v7 = vld [vmem:[#allocation2 + $0x1c0] ss:$8 sps:$4 sm:$0xff]  }
  0x3d   :  { %1049 = vmatprep.subr.bf16.mxu0 %v4697_v12  ;;  %v4781_v2 = vld [vmem:[%s7690_s0 + $0x154] ss:$28 sps:$4 sm:$0xff]   ;;  %v4790_v8 = vld [vmem:[%s7690_s0 + $0x18c] ss:$28 sps:$4 sm:$0xff]   ;;  %vm1012_vm0 = vcmask 130048  }
  0x3e   :  { %v4780_v3 = vld [vmem:[#allocation2 + $0x1b4] ss:$8 sps:$4 sm:$0xff]   ;;  %v4778_v4 = vld [vmem:[#allocation2 + $0x1b0] ss:$8 sps:$4 sm:$0xff]   ;;  %v4795_v11 = vld [vmem:[#allocation2 + $0x1e4] ss:$8 sps:$4 sm:$0xff]  }
  0x3f   :  { %v4783_v6 = vld [vmem:[%s7690_s0 + $0x150] ss:$28 sps:$4 sm:$0xff]   ;;  %v4789_v9 = vld [vmem:[#allocation2 + $0x1d4] ss:$8 sps:$4 sm:$0xff]   ;;  %v4792_v12 = vld [vmem:[%s7690_s0 + $0x188] ss:$28 sps:$4 sm:$0xff]  }
  0x40   :  { %1050 = vmatpush1.bf16.msra.mxu0 %v4699_v14  ;;  %v4787_v10 = vld [vmem:[#allocation2 + $0x1d0] ss:$8 sps:$4 sm:$0xff]   ;;  %v4793_v13 = vld [vmem:[#allocation2 + $0x1e0] ss:$8 sps:$4 sm:$0xff]  }
  0x41   :  { %1051 = vmatprep.subr.bf16.mxu0 %v4700_v15  ;;  %v4801_v14 = vld [vmem:[%s7690_s0 + $0xc] ss:$28 sps:$4 sm:$0xff]   ;;  %v4798_v15 = vld [vmem:[#allocation2 + $0x1f4] ss:$8 sps:$4 sm:$0xff]  }
  0x44   :  { %1052 = vmatpush1.bf16.msra.mxu0 %v4702_v16  ;;  %v4796_v16 = vld [vmem:[#allocation2 + $0x1f0] ss:$8 sps:$4 sm:$0xff]  }
  0x45   :  { %1053 = vmatprep.subr.bf16.mxu0 %v4703_v17  ;;  %v4804_v17 = vld [vmem:[#allocation2 + $0x204] ss:$8 sps:$4 sm:$0xff]  }
  0x48   :  { %1054 = vmatpush1.bf16.msra.mxu0 %v4705_v18  ;;  %v4799_v18 = vld [vmem:[%s7690_s0 + $0x8] ss:$28 sps:$4 sm:$0xff]  }
  0x49   :  { %1055 = vmatprep.subr.bf16.mxu0 %v4706_v19  ;;  %v4802_v19 = vld [vmem:[#allocation2 + $0x200] ss:$8 sps:$4 sm:$0xff]  }
  0x4c   :  { %1056 = vmatpush1.bf16.msra.mxu0 %v4708_v20  ;;  %v4808_v20 = vld [vmem:[%s7690_s0 + $0x44] ss:$28 sps:$4 sm:$0xff]  }
  0x4d   :  { %1057 = vmatprep.subr.bf16.mxu0 %v4709_v21  ;;  %v4807_v21 = vld [vmem:[#allocation2 + $0x214] ss:$8 sps:$4 sm:$0xff]  }
  0x50   :  { %1058 = vmatpush1.bf16.msra.mxu0 %v4711_v22  ;;  %v4805_v22 = vld [vmem:[#allocation2 + $0x210] ss:$8 sps:$4 sm:$0xff]  }
  0x51   :  { %1059 = vmatprep.subr.bf16.mxu0 %v4712_v23  ;;  %v4813_v23 = vld [vmem:[#allocation2 + $0x224] ss:$8 sps:$4 sm:$0xff]  }
  0x54   :  { %1060 = vmatpush1.bf16.msra.mxu0 %v4714_v24  ;;  %v4810_v24 = vld [vmem:[%s7690_s0 + $0x40] ss:$28 sps:$4 sm:$0xff]  }
  0x55   :  { %1061 = vmatprep.subr.bf16.mxu0 %v4715_v25  ;;  %v4811_v25 = vld [vmem:[#allocation2 + $0x220] ss:$8 sps:$4 sm:$0xff]  }
  0x58   :  { %1062 = vmatpush1.bf16.msra.mxu0 %v4717_v26  ;;  %v4817_v26 = vld [vmem:[%s7690_s0 + $0x7c] ss:$28 sps:$4 sm:$0xff]  }
  0x59   :  { %1063 = vmatprep.subr.bf16.mxu0 %v4718_v27  ;;  %v4816_v27 = vld [vmem:[#allocation2 + $0x234] ss:$8 sps:$4 sm:$0xff]  }
  0x5c   :  { %1064 = vmatpush1.bf16.msra.mxu0 %v4720_v28  ;;  %v4814_v28 = vld [vmem:[#allocation2 + $0x230] ss:$8 sps:$4 sm:$0xff]  }
  0x5d   :  { %1065 = vmatprep.subr.bf16.mxu0 %v4721_v29  ;;  %v4822_v29 = vld [vmem:[#allocation2 + $0x244] ss:$8 sps:$4 sm:$0xff]  }
  0x60   :  { %1066 = vmatpush1.bf16.msra.mxu0 %v4723_v30  ;;  %v4819_v30 = vld [vmem:[%s7690_s0 + $0x78] ss:$28 sps:$4 sm:$0xff]  }
  0x61   :  { %1067 = vmatprep.subr.bf16.mxu0 %v4724_v31  ;;  %v4820_v31 = vld [vmem:[#allocation2 + $0x240] ss:$8 sps:$4 sm:$0xff]  }
  0x64   :  { %1068 = vmatpush1.bf16.msra.mxu0 %v4726_v32  ;;  %v4826_v32 = vld [vmem:[%s7690_s0 + $0xb4] ss:$28 sps:$4 sm:$0xff]  }
  0x65   :  { %1150 = vmatprep.subr.bf16.mxu0 %v4732_v33  ;;  %v4825_v33 = vld [vmem:[#allocation2 + $0x254] ss:$8 sps:$4 sm:$0xff]  }
  0x67   :  { %1070 = vmatmul.mubr.bf16.vlgmr.msra.gmra.mrb[0].mxu0 %v4727_v34  ;;  %v4823_v34 = vld [vmem:[#allocation2 + $0x250] ss:$8 sps:$4 sm:$0xff]  }
  0x68   :  { %1151 = vmatpush1.bf16.msra.mxu0 %v4730_v35  ;;  %1079 = vmatprep.mubr.bf16.mxu0 %v4736_v36  ;;  %v4831_v35 = vld [vmem:[#allocation2 + $0x264] ss:$8 sps:$4 sm:$0xff]  }
  0x69   :  { %1152 = vmatprep.subr.bf16.mxu0 %v4735_v37  ;;  %v4828_v36 = vld [vmem:[%s7690_s0 + $0xb0] ss:$28 sps:$4 sm:$0xff]   ;;  %v4829_v37 = vld [vmem:[#allocation2 + $0x260] ss:$8 sps:$4 sm:$0xff]  }
  0x6c   :  { %1153 = vmatpush1.bf16.msra.mxu0 %v4733_v38  ;;  %v4835_v38 = vld [vmem:[%s7690_s0 + $0xec] ss:$28 sps:$4 sm:$0xff]  }
  0x6d   :  { %1154 = vmatprep.subr.bf16.mxu0 %v4741_v39  ;;  %v4834_v39 = vld [vmem:[#allocation2 + $0x274] ss:$8 sps:$4 sm:$0xff]  }
  0x6f   :  { %1080 = vmatmul.mubr.bf16.gmra.mrb[4].mxu0 %v4738_v40  ;;  %v4832_v40 = vld [vmem:[#allocation2 + $0x270] ss:$8 sps:$4 sm:$0xff]  }
  0x70   :  { %1155 = vmatpush1.bf16.msra.mxu0 %v4739_v41  ;;  %1089 = vmatprep.mubr.bf16.mxu0 %v4745_v42  ;;  %v4840_v41 = vld [vmem:[#allocation2 + $0x284] ss:$8 sps:$4 sm:$0xff]  }
  0x71   :  { %1156 = vmatprep.subr.bf16.mxu0 %v4744_v43  ;;  %v4837_v42 = vld [vmem:[%s7690_s0 + $0xe8] ss:$28 sps:$4 sm:$0xff]  }
  0x72   :  { %v4838_v43 = vld [vmem:[#allocation2 + $0x280] ss:$8 sps:$4 sm:$0xff]  }
  0x74   :  { %1157 = vmatpush1.bf16.msra.mxu0 %v4742_v44  ;;  %v4844_v44 = vld [vmem:[%s7690_s0 + $0x124] ss:$28 sps:$4 sm:$0xff]  }
  0x75   :  { %1158 = vmatprep.subr.bf16.mxu0 %v4750_v45  ;;  %v4843_v45 = vld [vmem:[#allocation2 + $0x294] ss:$8 sps:$4 sm:$0xff]  }
  0x77   :  { %1090 = vmatmul.mubr.bf16.gmra.mrb[8].mxu0 %v4747_v46  ;;  %v4841_v46 = vld [vmem:[#allocation2 + $0x290] ss:$8 sps:$4 sm:$0xff]  }
  0x78   :  { %1159 = vmatpush1.bf16.msra.mxu0 %v4748_v47  ;;  %1099 = vmatprep.mubr.bf16.mxu0 %v4754_v48  ;;  %v4849_v47 = vld [vmem:[#allocation2 + $0x2a4] ss:$8 sps:$4 sm:$0xff]   ;;  %v4846_v48 = vld [vmem:[%s7690_s0 + $0x120] ss:$28 sps:$4 sm:$0xff]  }
  0x79   :  { %1160 = vmatprep.subr.bf16.mxu0 %v4753_v49  ;;  %v4847_v49 = vld [vmem:[#allocation2 + $0x2a0] ss:$8 sps:$4 sm:$0xff]  }
  0x7c   :  { %1161 = vmatpush1.bf16.msra.mxu0 %v4751_v50  ;;  %v4853_v50 = vld [vmem:[%s7690_s0 + $0x15c] ss:$28 sps:$4 sm:$0xff]  }
  0x7d   :  { %1162 = vmatprep.subr.bf16.mxu0 %v4759_v51  ;;  %v4852_v51 = vld [vmem:[#allocation2 + $0x2b4] ss:$8 sps:$4 sm:$0xff]  }
  0x7f   :  { %1100 = vmatmul.mubr.bf16.gmra.mrb[12].mxu0 %v4756_v52  ;;  %v4850_v52 = vld [vmem:[#allocation2 + $0x2b0] ss:$8 sps:$4 sm:$0xff]  }
  0x80   :  { %1163 = vmatpush1.bf16.msra.mxu0 %v4757_v53  ;;  %1109 = vmatprep.mubr.bf16.mxu0 %v4763_v54  ;;  %v4858_v53 = vld [vmem:[#allocation2 + $0x2c4] ss:$8 sps:$4 sm:$0xff]   ;;  %v4855_v54 = vld [vmem:[%s7690_s0 + $0x158] ss:$28 sps:$4 sm:$0xff]  }
  0x81   :  { %1164 = vmatprep.subr.bf16.mxu0 %v4762_v55  ;;  %v4856_v55 = vld [vmem:[#allocation2 + $0x2c0] ss:$8 sps:$4 sm:$0xff]  }
  0x84   :  { %1165 = vmatpush1.bf16.msra.mxu0 %v4760_v56  ;;  %v4862_v56 = vld [vmem:[%s7690_s0 + $0x194] ss:$28 sps:$4 sm:$0xff]  }
  0x85   :  { %1166 = vmatprep.subr.bf16.mxu0 %v4768_v58  ;;  %v4859_v58 = vld [vmem:[#allocation2 + $0x2d0] ss:$8 sps:$4 sm:$0xff]  }
  0x87   :  { %1110 = vmatmul.mubr.bf16.gmra.mrb[16].mxu0 %v4765_v57  ;;  %v4861_v57 = vld [vmem:[#allocation2 + $0x2d4] ss:$8 sps:$4 sm:$0xff]  }
  0x88   :  { %1167 = vmatpush1.bf16.msra.mxu0 %v4766_v59  ;;  %1119 = vmatprep.mubr.bf16.mxu0 %v4772_v60  ;;  %v4867_v59 = vld [vmem:[#allocation2 + $0x2e4] ss:$8 sps:$4 sm:$0xff]  }
  0x89   :  { %1168 = vmatprep.subr.bf16.mxu0 %v4771_v61  ;;  %v4864_v60 = vld [vmem:[%s7690_s0 + $0x190] ss:$28 sps:$4 sm:$0xff]   ;;  %v4865_v61 = vld [vmem:[#allocation2 + $0x2e0] ss:$8 sps:$4 sm:$0xff]  }
  0x8c   :  { %1169 = vmatpush1.bf16.msra.mxu0 %v4769_v62  ;;  %v4873_v62 = vld [vmem:[%s7690_s0 + $0x14] ss:$28 sps:$4 sm:$0xff]  }
  0x8d   :  { %1170 = vmatprep.subr.bf16.mxu0 %v4777_v63  ;;  %v4870_v63 = vld [vmem:[#allocation2 + $0x2f4] ss:$8 sps:$4 sm:$0xff]  }
  0x8f   :  { %1120 = vmatmul.mubr.bf16.gmra.mrb[20].mxu0 %v4774_v0  ;;  %v4906_v0 = vld [vmem:[%s7694_s4 + $0x4] ss:$8 sps:$4 sm:$0xff]  }
  0x90   :  { %1171 = vmatpush1.bf16.msra.mxu0 %v4775_v1  ;;  %1129 = vmatprep.mubr.bf16.mxu0 %v4781_v2  ;;  %v4908_v1 = vld [vmem:[%s7694_s4] ss:$8 sps:$4 sm:$0xff]   ;;  %v4909_v2 = vld [vmem:[%s7694_s4 + $0x14] ss:$8 sps:$4 sm:$0xff]  }
  0x91   :  { %1172 = vmatprep.subr.bf16.mxu0 %v4780_v3  ;;  %v4868_v3 = vld [vmem:[#allocation2 + $0x2f0] ss:$8 sps:$4 sm:$0xff]   ;;  %1805 = vmatprep.subr.bf16.mxu1 %v4906_v0 }
  0x92   :  { %1806 = vmatpush1.bf16.msra.mxu1 %v4908_v1  ;;  %v5693_v0 = vld [vmem:[%s7691_s1 + $0x18] sm:$0xff] }
  0x93   :  { %1807 = vmatprep.subr.bf16.mxu1 %v4909_v2  ;;  %v1985_v2 = vmul.f32 %v5693_v0, %v5693_v0 }
  0x94   :  { %1173 = vmatpush1.bf16.msra.mxu0 %v4778_v4  ;;  %v4876_v4 = vld [vmem:[#allocation2 + $0x304] ss:$8 sps:$4 sm:$0xff]  }
  0x95   :  { %1174 = vmatprep.subr.bf16.mxu0 %v4786_v5  ;;  %v4911_v5 = vld [vmem:[%s7694_s4 + $0x10] ss:$8 sps:$4 sm:$0xff]  }
  0x96   :  { %1808 = vmatpush1.bf16.msra.mxu1 %v4911_v5  ;;  %v4956_v5 = vld [vmem:[%s7696_s6 + $0x4] ss:$8 sps:$4 sm:$0xff]  }
  0x97   :  { %1130 = vmatmul.mubr.bf16.gmra.mrb[24].mxu0 %v4783_v6  ;;  %v4871_v6 = vld [vmem:[%s7690_s0 + $0x10] ss:$28 sps:$4 sm:$0xff]  }
  0x98   :  { %1175 = vmatpush1.bf16.msra.mxu0 %v4784_v7  ;;  %1139 = vmatprep.mubr.bf16.mxu0 %v4790_v8  ;;  %v4912_v7 = vld [vmem:[%s7694_s4 + $0x24] ss:$8 sps:$4 sm:$0xff]   ;;  %v4874_v8 = vld [vmem:[#allocation2 + $0x300] ss:$8 sps:$4 sm:$0xff]  }
  0x99   :  { %1176 = vmatprep.subr.bf16.mxu0 %v4789_v9  ;;  %v4877_v9 = vld [vmem:[%s7690_s0 + $0x4c] ss:$28 sps:$4 sm:$0xff]   ;;  %1809 = vmatprep.subr.bf16.mxu1 %v4912_v7 }
  0x9c   :  { %1177 = vmatpush1.bf16.msra.mxu0 %v4787_v10  ;;  %v4914_v10 = vld [vmem:[%s7694_s4 + $0x20] ss:$8 sps:$4 sm:$0xff]  }
  0x9d   :  { %1178 = vmatprep.subr.bf16.mxu0 %v4795_v11  ;;  %v4915_v11 = vld [vmem:[%s7694_s4 + $0x34] ss:$8 sps:$4 sm:$0xff]   ;;  %1810 = vmatpush1.bf16.msra.mxu1 %v4914_v10 }
  0x9e   :  { %1811 = vmatprep.subr.bf16.mxu1 %v4915_v11 }
  0x9f   :  { %1140 = vmatmul.mubr.bf16.gmra.mrb[28].mxu0 %v4792_v12  ;;  %v4917_v12 = vld [vmem:[%s7694_s4 + $0x30] ss:$8 sps:$4 sm:$0xff]  }
  0xa0   :  { %1179 = vmatpush1.bf16.msra.mxu0 %v4793_v13  ;;  %1182 = vmatprep.mubr.bf16.mxu0 %v4801_v14  ;;  %v4879_v13 = vld [vmem:[%s7690_s0 + $0x48] ss:$28 sps:$4 sm:$0xff]  }
  0xa1   :  { %1180 = vmatprep.subr.bf16.mxu0 %v4798_v15  ;;  %v4918_v14 = vld [vmem:[%s7694_s4 + $0x44] ss:$8 sps:$4 sm:$0xff]   ;;  %1812 = vmatpush1.bf16.msra.mxu1 %v4917_v12 }
  0xa2   :  { %v4880_v15 = vld [vmem:[%s7690_s0 + $0x84] ss:$28 sps:$4 sm:$0xff]   ;;  %1813 = vmatprep.subr.bf16.mxu1 %v4918_v14 }
  0xa3   :  { %v1974_v12 = vld [vmem:[%s7691_s1 + $0x40] sm:$0xff] }
  0xa4   :  { %1181 = vmatpush1.bf16.msra.mxu0 %v4796_v16  ;;  %v4920_v16 = vld [vmem:[%s7694_s4 + $0x40] ss:$8 sps:$4 sm:$0xff]   ;;  %v1990_v14 = vmul.f32 %v1974_v12, %v1974_v12 }
  0xa5   :  { %1263 = vmatprep.subr.bf16.mxu0 %v4804_v17  ;;  %v4921_v17 = vld [vmem:[%s7694_s4 + $0x54] ss:$8 sps:$4 sm:$0xff]   ;;  %1814 = vmatpush1.bf16.msra.mxu1 %v4920_v16 }
  0xa6   :  { %1815 = vmatprep.subr.bf16.mxu1 %v4921_v17  ;;  %v1976_v16 = vld [vmem:[%s7691_s1 + $0x50] sm:$0xff]  ;;  %v1977_v17 = vld [vmem:[%s7691_s1 + $0x58] sm:$0xff] }
  0xa7   :  { %1183 = vmatmul.mubr.bf16.vlgmr.msra.gmra.mrb[0].mxu0 %v4799_v18  ;;  %v4923_v18 = vld [vmem:[%s7694_s4 + $0x50] ss:$8 sps:$4 sm:$0xff]  }
  0xa8   :  { %1264 = vmatpush1.bf16.msra.mxu0 %v4802_v19  ;;  %1192 = vmatprep.mubr.bf16.mxu0 %v4808_v20  ;;  %v4882_v19 = vld [vmem:[%s7690_s0 + $0x80] ss:$28 sps:$4 sm:$0xff]   ;;  %v4924_v20 = vld [vmem:[%s7694_s4 + $0x64] ss:$8 sps:$4 sm:$0xff]  }
  0xa9   :  { %1265 = vmatprep.subr.bf16.mxu0 %v4807_v21  ;;  %v4883_v21 = vld [vmem:[%s7690_s0 + $0xbc] ss:$28 sps:$4 sm:$0xff]   ;;  %1816 = vmatpush1.bf16.msra.mxu1 %v4923_v18  ;;  %v1992_v18 = vmul.f32 %v1976_v16, %v1976_v16 }
  0xaa   :  { %1817 = vmatprep.subr.bf16.mxu1 %v4924_v20  ;;  %v1978_v20 = vld [vmem:[%s7691_s1 + $0x60] sm:$0xff] }
  0xac   :  { %1266 = vmatpush1.bf16.msra.mxu0 %v4805_v22  ;;  %v4926_v22 = vld [vmem:[%s7694_s4 + $0x60] ss:$8 sps:$4 sm:$0xff]  }
  0xad   :  { %1267 = vmatprep.subr.bf16.mxu0 %v4813_v23  ;;  %v4927_v23 = vld [vmem:[%s7694_s4 + $0x74] ss:$8 sps:$4 sm:$0xff]   ;;  %1818 = vmatpush1.bf16.msra.mxu1 %v4926_v22  ;;  %v1994_v22 = vmul.f32 %v1978_v20, %v1978_v20 }
  0xae   :  { %1819 = vmatprep.subr.bf16.mxu1 %v4927_v23 }
  0xaf   :  { %1193 = vmatmul.mubr.bf16.gmra.mrb[4].mxu0 %v4810_v24  ;;  %v4929_v24 = vld [vmem:[%s7694_s4 + $0x70] ss:$8 sps:$4 sm:$0xff]  }
  0xb0   :  { %1268 = vmatpush1.bf16.msra.mxu0 %v4811_v25  ;;  %1202 = vmatprep.mubr.bf16.mxu0 %v4817_v26  ;;  %v4885_v25 = vld [vmem:[%s7690_s0 + $0xb8] ss:$28 sps:$4 sm:$0xff]   ;;  %v4930_v26 = vld [vmem:[%s7694_s4 + $0x84] ss:$8 sps:$4 sm:$0xff]  }
  0xb1   :  { %1269 = vmatprep.subr.bf16.mxu0 %v4816_v27  ;;  %v4886_v27 = vld [vmem:[%s7690_s0 + $0xf4] ss:$28 sps:$4 sm:$0xff]   ;;  %1820 = vmatpush1.bf16.msra.mxu1 %v4929_v24 }
  0xb2   :  { %1821 = vmatprep.subr.bf16.mxu1 %v4930_v26  ;;  %v1980_v24 = vld [vmem:[%s7691_s1 + $0x70] sm:$0xff] }
  0xb3   :  { %v1996_v26 = vmul.f32 %v1980_v24, %v1980_v24 }
  0xb4   :  { %1270 = vmatpush1.bf16.msra.mxu0 %v4814_v28  ;;  %v4932_v28 = vld [vmem:[%s7694_s4 + $0x80] ss:$8 sps:$4 sm:$0xff]  }
  0xb5   :  { %1271 = vmatprep.subr.bf16.mxu0 %v4822_v29  ;;  %v4933_v29 = vld [vmem:[%s7694_s4 + $0x94] ss:$8 sps:$4 sm:$0xff]   ;;  %1822 = vmatpush1.bf16.msra.mxu1 %v4932_v28  ;;  %v232_v28 = vlaneseq }
  0xb6   :  { %1823 = vmatprep.subr.bf16.mxu1 %v4933_v29 }
  0xb7   :  { %1203 = vmatmul.mubr.bf16.gmra.mrb[8].mxu0 %v4819_v30  ;;  %v4935_v30 = vld [vmem:[%s7694_s4 + $0x90] ss:$8 sps:$4 sm:$0xff]   ;;  %v5754_v29 = vshrl.u32 %v232_v28, 7 }
  0xb8   :  { %1272 = vmatpush1.bf16.msra.mxu0 %v4820_v31  ;;  %1212 = vmatprep.mubr.bf16.mxu0 %v4826_v32  ;;  %v4888_v31 = vld [vmem:[%s7690_s0 + $0xf0] ss:$28 sps:$4 sm:$0xff]  }
  0xb9   :  { %1273 = vmatprep.subr.bf16.mxu0 %v4825_v33  ;;  %v4936_v32 = vld [vmem:[%s7694_s4 + $0xa4] ss:$8 sps:$4 sm:$0xff]   ;;  %1824 = vmatpush1.bf16.msra.mxu1 %v4935_v30  ;;  %v5757_v30 = vsub.s32 0, %v5754_v29 }
  0xba   :  { %v4889_v33 = vld [vmem:[%s7690_s0 + $0x12c] ss:$28 sps:$4 sm:$0xff]   ;;  %1825 = vmatprep.subr.bf16.mxu1 %v4936_v32  ;;  %v5763_v32 = vsub.s32 1, %v5754_v29 }
  0xbc   :  { %1274 = vmatpush1.bf16.msra.mxu0 %v4823_v34  ;;  %v4938_v34 = vld [vmem:[%s7694_s4 + $0xa0] ss:$8 sps:$4 sm:$0xff]  }
  0xbd   :  { %1275 = vmatprep.subr.bf16.mxu0 %v4831_v35  ;;  %v4939_v35 = vld [vmem:[%s7694_s4 + $0xb4] ss:$8 sps:$4 sm:$0xff]   ;;  %1826 = vmatpush1.bf16.msra.mxu1 %v4938_v34 }
  0xbe   :  { %1827 = vmatprep.subr.bf16.mxu1 %v4939_v35 }
  0xbf   :  { %1213 = vmatmul.mubr.bf16.gmra.mrb[12].mxu0 %v4828_v36  ;;  %v4941_v36 = vld [vmem:[%s7694_s4 + $0xb0] ss:$8 sps:$4 sm:$0xff]  }
  0xc0   :  { %1276 = vmatpush1.bf16.msra.mxu0 %v4829_v37  ;;  %1222 = vmatprep.mubr.bf16.mxu0 %v4835_v38  ;;  %v4891_v37 = vld [vmem:[%s7690_s0 + $0x128] ss:$28 sps:$4 sm:$0xff]  }
  0xc1   :  { %1277 = vmatprep.subr.bf16.mxu0 %v4834_v39  ;;  %v4942_v38 = vld [vmem:[%s7694_s4 + $0xc4] ss:$8 sps:$4 sm:$0xff]   ;;  %1828 = vmatpush1.bf16.msra.mxu1 %v4941_v36 }
  0xc2   :  { %v4892_v39 = vld [vmem:[%s7690_s0 + $0x164] ss:$28 sps:$4 sm:$0xff]   ;;  %1829 = vmatprep.subr.bf16.mxu1 %v4942_v38 }
  0xc4   :  { %1278 = vmatpush1.bf16.msra.mxu0 %v4832_v40  ;;  %v4944_v40 = vld [vmem:[%s7694_s4 + $0xc0] ss:$8 sps:$4 sm:$0xff]  }
  0xc5   :  { %1279 = vmatprep.subr.bf16.mxu0 %v4840_v41  ;;  %1830 = vmatpush1.bf16.msra.mxu1 %v4944_v40  ;;  %v4894_v41 = vld [vmem:[%s7690_s0 + $0x160] ss:$28 sps:$4 sm:$0xff]  }
  0xc7   :  { %1223 = vmatmul.mubr.bf16.gmra.mrb[16].mxu0 %v4837_v42  ;;  %v4895_v42 = vld [vmem:[%s7690_s0 + $0x19c] ss:$28 sps:$4 sm:$0xff]  }
  0xc8   :  { %1280 = vmatpush1.bf16.msra.mxu0 %v4838_v43  ;;  %1232 = vmatprep.mubr.bf16.mxu0 %v4844_v44  ;;  %v4897_v43 = vld [vmem:[%s7690_s0 + $0x198] ss:$28 sps:$4 sm:$0xff]   ;;  %v5296_v44 = vmov 0  }
  0xc9   :  { %1281 = vmatprep.subr.bf16.mxu0 %v4843_v45  ;;  %v4898_v45 = vld [vmem:[%s7690_s0 + $0x18] ss:$28 sps:$4 sm:$0xff]  }
  0xcc   :  { %1282 = vmatpush1.bf16.msra.mxu0 %v4841_v46  ;;  %v4899_v46 = vld [vmem:[%s7690_s0 + $0x50] ss:$28 sps:$4 sm:$0xff]  }
  0xcd   :  { %1283 = vmatprep.subr.bf16.mxu0 %v4849_v47  ;;  %v4900_v47 = vld [vmem:[%s7690_s0 + $0x88] ss:$28 sps:$4 sm:$0xff]  }
  0xcf   :  { %1233 = vmatmul.mubr.bf16.gmra.mrb[20].mxu0 %v4846_v48  ;;  %v4901_v48 = vld [vmem:[%s7690_s0 + $0xc0] ss:$28 sps:$4 sm:$0xff]  }
  0xd0   :  { %1284 = vmatpush1.bf16.msra.mxu0 %v4847_v49  ;;  %1242 = vmatprep.mubr.bf16.mxu0 %v4853_v50  ;;  %v4902_v49 = vld [vmem:[%s7690_s0 + $0xf8] ss:$28 sps:$4 sm:$0xff]   ;;  %v4903_v50 = vld [vmem:[%s7690_s0 + $0x130] ss:$28 sps:$4 sm:$0xff]  }
  0xd1   :  { %1285 = vmatprep.subr.bf16.mxu0 %v4852_v51  ;;  %v4904_v51 = vld [vmem:[%s7690_s0 + $0x168] ss:$28 sps:$4 sm:$0xff]  }
  0xd4   :  { %1286 = vmatpush1.bf16.msra.mxu0 %v4850_v52  ;;  %v4905_v52 = vld [vmem:[%s7690_s0 + $0x1a0] ss:$28 sps:$4 sm:$0xff]  }
  0xd5   :  { %1287 = vmatprep.subr.bf16.mxu0 %v4858_v53  ;;  %v4945_v53 = vld [vmem:[%s7694_s4 + $0xd4] ss:$8 sps:$4 sm:$0xff]  }
  0xd6   :  { %1831 = vmatprep.subr.bf16.mxu1 %v4945_v53 }
  0xd7   :  { %1243 = vmatmul.mubr.bf16.gmra.mrb[24].mxu0 %v4855_v54  ;;  %v4947_v54 = vld [vmem:[%s7694_s4 + $0xd0] ss:$8 sps:$4 sm:$0xff]  }
  0xd8   :  { %1288 = vmatpush1.bf16.msra.mxu0 %v4856_v55  ;;  %1252 = vmatprep.mubr.bf16.mxu0 %v4862_v56  ;;  %v4948_v55 = vld [vmem:[%s7694_s4 + $0xe4] ss:$8 sps:$4 sm:$0xff]   ;;  %v4950_v56 = vld [vmem:[%s7694_s4 + $0xe0] ss:$8 sps:$4 sm:$0xff]  }
  0xd9   :  { %1289 = vmatprep.subr.bf16.mxu0 %v4861_v57  ;;  %1832 = vmatpush1.bf16.msra.mxu1 %v4947_v54  ;;  %v4951_v57 = vld [vmem:[%s7694_s4 + $0xf4] ss:$8 sps:$4 sm:$0xff]  }
  0xda   :  { %1833 = vmatprep.subr.bf16.mxu1 %v4948_v55 }
  0xdc   :  { %1290 = vmatpush1.bf16.msra.mxu0 %v4859_v58  ;;  %v4953_v58 = vld [vmem:[%s7694_s4 + $0xf0] ss:$8 sps:$4 sm:$0xff]  }
  0xdd   :  { %1291 = vmatprep.subr.bf16.mxu0 %v4867_v59  ;;  %1834 = vmatpush1.bf16.msra.mxu1 %v4950_v56  ;;  %v5674_v59 = vld [vmem:[%s7691_s1] sm:$0xff] }
  0xde   :  { %1835 = vmatprep.subr.bf16.mxu1 %v4951_v57  ;;  %v4954_v57 = vld [vmem:[%s7696_s6] ss:$8 sps:$4 sm:$0xff]  }
  0xdf   :  { %1253 = vmatmul.mubr.bf16.gmra.mrb[28].mxu0 %v4864_v60  ;;  %v5679_v60 = vld [vmem:[%s7691_s1 + $0x8] sm:$0xff] }
  0xe0   :  { %1292 = vmatpush1.bf16.msra.mxu0 %v4865_v61  ;;  %1295 = vmatprep.mubr.bf16.mxu0 %v4873_v62  ;;  %v5684_v61 = vld [vmem:[%s7691_s1 + $0x10] sm:$0xff]  ;;  %v1982_v62 = vmul.f32 %v5674_v59, %v5674_v59  ;;  %v1983_v1 = vmul.f32 %v5679_v60, %v5679_v60 }
  0xe1   :  { %1293 = vmatprep.subr.bf16.mxu0 %v4870_v63  ;;  %1836 = vmatpush1.bf16.msra.mxu1 %v4953_v58  ;;  %v1984_v63 = vmul.f32 %v5684_v61, %v5684_v61 }
  0xe2   :  { %1998 = vadd.xlane.f32.xlu0 %v1982_v62  ;;  %2210 = vmatprep.subr.bf16.mxu1 %v4956_v5 }
  0xe3   :  { %2002 = vadd.xlane.f32.xlu1 %v1984_v63  ;;  %v4959_v63 = vld [vmem:[%s7696_s6 + $0x14] ss:$8 sps:$4 sm:$0xff]  }
  0xe4   :  { %1294 = vmatpush1.bf16.msra.mxu0 %v4868_v3  ;;  %v5702_v3 = vld [vmem:[%s7691_s1 + $0x20] sm:$0xff] }
  0xe5   :  { %1376 = vmatprep.subr.bf16.mxu0 %v4876_v4  ;;  %v5707_v4 = vld [vmem:[%s7691_s1 + $0x28] sm:$0xff] }
  0xe6   :  { %2000 = vadd.xlane.f32.xlu0 %v1983_v1  ;;  %v1987_v7 = vmul.f32 %v5707_v4, %v5707_v4 }
  0xe7   :  { %1296 = vmatmul.mubr.bf16.vlgmr.msra.gmra.mrb[0].mxu0 %v4871_v6  ;;  %2004 = vadd.xlane.f32.xlu1 %v1985_v2  ;;  %v1986_v6 = vmul.f32 %v5702_v3, %v5702_v3 }
  0xe8   :  { %1377 = vmatpush1.bf16.msra.mxu0 %v4874_v8  ;;  %1305 = vmatprep.mubr.bf16.mxu0 %v4877_v9  ;;  %v5719_v8 = vld [vmem:[%s7691_s1 + $0x30] sm:$0xff]  ;;  %v5724_v9 = vld [vmem:[%s7691_s1 + $0x38] sm:$0xff] }
  0xe9   :  { %v1988_v10 = vmul.f32 %v5719_v8, %v5719_v8  ;;  %v1989_v11 = vmul.f32 %v5724_v9, %v5724_v9 }
  0xea   :  { %2006 = vadd.xlane.f32.xlu0 %v1986_v6 }
  0xeb   :  { %2008 = vadd.xlane.f32.xlu1 %v1987_v7 }
  0xee   :  { %2010 = vadd.xlane.f32.xlu0 %v1988_v10 }
  0xef   :  { %1306 = vmatmul.mubr.bf16.gmra.mrb[4].mxu0 %v4879_v13  ;;  %v1975_v13 = vld [vmem:[%s7691_s1 + $0x48] sm:$0xff]  ;;  %2012 = vadd.xlane.f32.xlu1 %v1989_v11  ;;  %v4957_v11 = vld [vmem:[%s7696_s6 + $0x10] ss:$8 sps:$4 sm:$0xff]  }
  0xf0   :  { %1315 = vmatprep.mubr.bf16.mxu0 %v4880_v15  ;;  %v1991_v15 = vmul.f32 %v1975_v13, %v1975_v13  ;;  %v4962_v13 = vld [vmem:[%s7696_s6 + $0x24] ss:$8 sps:$4 sm:$0xff]  }
  0xf2   :  { %2014 = vadd.xlane.f32.xlu0 %v1990_v14 }
  0xf3   :  { %2016 = vadd.xlane.f32.xlu1 %v1991_v15 }
  0xf6   :  { %2018 = vadd.xlane.f32.xlu0 %v1992_v18 }
  0xf7   :  { %1316 = vmatmul.mubr.bf16.gmra.mrb[8].mxu0 %v4882_v19  ;;  %v1993_v19 = vmul.f32 %v1977_v17, %v1977_v17 }
  0xf8   :  { %1325 = vmatprep.mubr.bf16.mxu0 %v4883_v21  ;;  %v1979_v21 = vld [vmem:[%s7691_s1 + $0x68] sm:$0xff] }
  0xf9   :  { %2020 = vadd.xlane.f32.xlu1 %v1993_v19  ;;  %v1995_v23 = vmul.f32 %v1979_v21, %v1979_v21 }
  0xfa   :  { %2022 = vadd.xlane.f32.xlu0 %v1994_v22 }
  0xfd   :  { %2024 = vadd.xlane.f32.xlu1 %v1995_v23  ;;  %v4960_v23 = vld [vmem:[%s7696_s6 + $0x20] ss:$8 sps:$4 sm:$0xff]  }
  0xfe   :  { %2026 = vadd.xlane.f32.xlu0 %v1996_v26  ;;  %v4965_v26 = vld [vmem:[%s7696_s6 + $0x34] ss:$8 sps:$4 sm:$0xff]  }
  0xff   :  { %1326 = vmatmul.mubr.bf16.gmra.mrb[12].mxu0 %v4885_v25  ;;  %v1981_v25 = vld [vmem:[%s7691_s1 + $0x78] sm:$0xff] }
 0x100   :  { %1335 = vmatprep.mubr.bf16.mxu0 %v4886_v27  ;;  %v1997_v27 = vmul.f32 %v1981_v25, %v1981_v25 }
 0x102   :  { %2028 = vadd.xlane.f32.xlu1 %v1997_v27 }
 0x107   :  { %1336 = vmatmul.mubr.bf16.gmra.mrb[16].mxu0 %v4888_v31  ;;  %v230_v31 = vld [vmem:[%s7693_s3] sm:$0x3] }
 0x108   :  { %1345 = vmatprep.mubr.bf16.mxu0 %v4889_v33  ;;  %v5766_v33 = vrot.slane %v230_v31, %v5757_v30  ;;  %v5769_v34 = vrot.slane %v230_v31, %v5763_v32 }
 0x10f   :  { %1346 = vmatmul.mubr.bf16.gmra.mrb[20].mxu0 %v4891_v37 }
 0x110   :  { %1355 = vmatprep.mubr.bf16.mxu0 %v4892_v39 }
 0x117   :  { %1356 = vmatmul.mubr.bf16.gmra.mrb[24].mxu0 %v4894_v41 }
 0x118   :  { %1365 = vmatprep.mubr.bf16.mxu0 %v4895_v42 }
 0x11f   :  { %1366 = vmatmul.mubr.bf16.gmra.mrb[28].mxu0 %v4897_v43 }
 0x120   :  { %1408 = vmatprep.mubr.bf16.mxu0 %v5296_v44 }
 0x127   :  { %4312 = vmatmul.mubr.msk.bf16.vlgmr.msra.gmra.mrb[0].mxu0 %vm1012_vm0, %v4898_v45 }
 0x128   :  { %1418 = vmatprep.mubr.bf16.mxu0 %v5296_v44 }
 0x12f   :  { %4313 = vmatmul.mubr.msk.bf16.gmra.mrb[4].mxu0 %vm1012_vm0, %v4899_v46 }
 0x130   :  { %1428 = vmatprep.mubr.bf16.mxu0 %v5296_v44 }
 0x137   :  { %4314 = vmatmul.mubr.msk.bf16.gmra.mrb[8].mxu0 %vm1012_vm0, %v4900_v47 }
 0x138   :  { %1438 = vmatprep.mubr.bf16.mxu0 %v5296_v44 }
 0x13f   :  { %4315 = vmatmul.mubr.msk.bf16.gmra.mrb[12].mxu0 %vm1012_vm0, %v4901_v48 }
 0x140   :  { %1448 = vmatprep.mubr.bf16.mxu0 %v5296_v44 }
 0x147   :  { %4316 = vmatmul.mubr.msk.bf16.gmra.mrb[16].mxu0 %vm1012_vm0, %v4902_v49 }
 0x148   :  { %1458 = vmatprep.mubr.bf16.mxu0 %v5296_v44 }
 0x14f   :  { %4317 = vmatmul.mubr.msk.bf16.gmra.mrb[20].mxu0 %vm1012_vm0, %v4903_v50 }
 0x150   :  { %1468 = vmatprep.mubr.bf16.mxu0 %v5296_v44 }
 0x157   :  { %4318 = vmatmul.mubr.msk.bf16.gmra.mrb[24].mxu0 %vm1012_vm0, %v4904_v51 }
 0x158   :  { %1478 = vmatprep.mubr.bf16.mxu0 %v5296_v44 }
 0x15f   :  { %4319 = vmatmul.mubr.msk.bf16.gmra.mrb[28].mxu0 %vm1012_vm0, %v4905_v52 }
 0x1fa   :  { %v1410_v35 = vpop.f32.mrb[0].mxu0 }
 0x1fb   :  { %v4544_v36 = vadd.f32 %v1410_v35, %v5766_v33  ;;  %v1412_v37 = vpop.f32.mrb[1].mxu0 }
 0x1fc   :  { %v4545_v38 = vadd.f32 %v1412_v37, %v5769_v34  ;;  %v1414_v39 = vpop.f32.mrb[2].mxu0 }
 0x1fd   :  { %v1521_v40 = vmul.f32 0.01, %v4544_v36  ;;  %v4546_v41 = vadd.f32 %v1414_v39, %v5766_v33  ;;  %v1416_v42 = vpop.f32.mrb[3].mxu0  ;;  %vm1489_vm1 = vcmp.gt.f32.partialorder %v4544_v36, 0.0 }
 0x1fe   :  { %v1522_v43 = vmul.f32 0.01, %v4545_v38  ;;  %v4547_v45 = vadd.f32 %v1416_v42, %v5769_v34  ;;  %vm1490_vm3 = vcmp.gt.f32.partialorder %v4545_v38, 0.0 }
 0x1ff   :  { %vm1491_vm2 = vcmp.gt.f32.partialorder %v4546_v41, 0.0  ;;  %v1523_v46 = vmul.f32 0.01, %v4546_v41  ;;  %v1553_v48 = vsel %vm1489_vm1, %v4544_v36, %v1521_v40  ;;  %v4968_v40 = vld [vmem:[%s7696_s6 + $0x44] ss:$8 sps:$4 sm:$0xff]  }
 0x200   :  { %v1524_v47 = vmul.f32 0.01, %v4547_v45  ;;  %vm1492_vm4 = vcmp.gt.f32.partialorder %v4547_v45, 0.0  ;;  %v1554_v51 = vsel %vm1490_vm3, %v4545_v38, %v1522_v43  ;;  %v4963_v38 = vld [vmem:[%s7696_s6 + $0x30] ss:$8 sps:$4 sm:$0xff]  }
 0x201   :  { %v1555_v49 = vsel %vm1491_vm2, %v4546_v41, %v1523_v46 }
 0x202   :  { %v1420_v50 = vpop.f32.mrb[4].mxu0  ;;  %v1556_v52 = vsel %vm1492_vm4, %v4547_v45, %v1524_v47  ;;  %v1585_v53 = vpack.c.bf16 %v1555_v49, %v1553_v48 }
 0x203   :  { %v4548_v54 = vadd.f32 %v1420_v50, %v5766_v33  ;;  %v1422_v55 = vpop.f32.mrb[5].mxu0  ;;  %v1586_v56 = vpack.c.bf16 %v1556_v52, %v1554_v51  ;;  %v4966_v51 = vld [vmem:[%s7696_s6 + $0x40] ss:$8 sps:$4 sm:$0xff]  }
 0x204   :  { %v4549_v58 = vadd.f32 %v1422_v55, %v5769_v34  ;;  %v1424_v62 = vpop.f32.mrb[6].mxu0 }
 0x205   :  { %v1525_v1 = vmul.f32 0.01, %v4548_v54  ;;  %v4550_v2 = vadd.f32 %v1424_v62, %v5766_v33  ;;  %v1426_v5 = vpop.f32.mrb[7].mxu0  ;;  %1837 = vmatprep.mubr.bf16.mxu1 %v1586_v56  ;;  %vm1493_vm5 = vcmp.gt.f32.partialorder %v4548_v54, 0.0 }
 0x206   :  { %v1526_v6 = vmul.f32 0.01, %v4549_v58  ;;  %v4551_v7 = vadd.f32 %v1426_v5, %v5769_v34  ;;  %1838 = vmatmul.mubr.bf16.vlgmr.msra.gmra.mrb[0].mxu1 %v1585_v53  ;;  %vm1494_vm6 = vcmp.gt.f32.partialorder %v4549_v58, 0.0 }
 0x207   :  { %vm1495_vm7 = vcmp.gt.f32.partialorder %v4550_v2, 0.0  ;;  %v1527_v10 = vmul.f32 0.01, %v4550_v2  ;;  %2211 = vmatpush1.bf16.msra.mxu1 %v4954_v57  ;;  %v1557_v14 = vsel %vm1493_vm5, %v4548_v54, %v1525_v1 }
 0x208   :  { %vm1496_vm8 = vcmp.gt.f32.partialorder %v4551_v7, 0.0  ;;  %v1528_v12 = vmul.f32 0.01, %v4551_v7  ;;  %2212 = vmatprep.subr.bf16.mxu1 %v4959_v63  ;;  %v1558_v17 = vsel %vm1494_vm6, %v4549_v58, %v1526_v6 }
 0x209   :  { %v1559_v15 = vsel %vm1495_vm7, %v4550_v2, %v1527_v10 }
 0x20a   :  { %v1430_v16 = vpop.f32.mrb[8].mxu0  ;;  %v1560_v18 = vsel %vm1496_vm8, %v4551_v7, %v1528_v12  ;;  %v1587_v19 = vpack.c.bf16 %v1559_v15, %v1557_v14 }
 0x20b   :  { %v4552_v20 = vadd.f32 %v1430_v16, %v5766_v33  ;;  %v1432_v21 = vpop.f32.mrb[9].mxu0  ;;  %v1588_v22 = vpack.c.bf16 %v1560_v18, %v1558_v17  ;;  %2213 = vmatpush1.bf16.msra.mxu1 %v4957_v11 }
 0x20c   :  { %v4553_v24 = vadd.f32 %v1432_v21, %v5769_v34  ;;  %v1434_v25 = vpop.f32.mrb[10].mxu0  ;;  %2214 = vmatprep.subr.bf16.mxu1 %v4962_v13 }
 0x20d   :  { %v1529_v27 = vmul.f32 0.01, %v4552_v20  ;;  %v4554_v28 = vadd.f32 %v1434_v25, %v5766_v33  ;;  %v1436_v31 = vpop.f32.mrb[11].mxu0  ;;  %1847 = vmatprep.mubr.bf16.mxu1 %v1588_v22  ;;  %vm1497_vm9 = vcmp.gt.f32.partialorder %v4552_v20, 0.0 }
 0x20e   :  { %v1530_v35 = vmul.f32 0.01, %v4553_v24  ;;  %v4555_v36 = vadd.f32 %v1436_v31, %v5769_v34  ;;  %1848 = vmatmul.mubr.bf16.gmra.mrb[4].mxu1 %v1587_v19  ;;  %vm1498_vm10 = vcmp.gt.f32.partialorder %v4553_v24, 0.0 }
 0x20f   :  { %vm1499_vm11 = vcmp.gt.f32.partialorder %v4554_v28, 0.0  ;;  %v1531_v37 = vmul.f32 0.01, %v4554_v28  ;;  %2215 = vmatpush1.bf16.msra.mxu1 %v4960_v23  ;;  %v1561_v41 = vsel %vm1497_vm9, %v4552_v20, %v1529_v27 }
 0x210   :  { %vm1500_vm12 = vcmp.gt.f32.partialorder %v4555_v36, 0.0  ;;  %v1532_v39 = vmul.f32 0.01, %v4555_v36  ;;  %2216 = vmatprep.subr.bf16.mxu1 %v4965_v26  ;;  %v1562_v45 = vsel %vm1498_vm10, %v4553_v24, %v1530_v35 }
 0x211   :  { %v1563_v42 = vsel %vm1499_vm11, %v4554_v28, %v1531_v37 }
 0x212   :  { %v1440_v43 = vpop.f32.mrb[12].mxu0  ;;  %v1564_v46 = vsel %vm1500_vm12, %v4555_v36, %v1532_v39  ;;  %v1589_v47 = vpack.c.bf16 %v1563_v42, %v1561_v41 }
 0x213   :  { %v4556_v48 = vadd.f32 %v1440_v43, %v5766_v33  ;;  %v1442_v49 = vpop.f32.mrb[13].mxu0  ;;  %v1590_v50 = vpack.c.bf16 %v1564_v46, %v1562_v45  ;;  %2217 = vmatpush1.bf16.msra.mxu1 %v4963_v38 }
 0x214   :  { %v4557_v52 = vadd.f32 %v1442_v49, %v5769_v34  ;;  %v1444_v53 = vpop.f32.mrb[14].mxu0  ;;  %2218 = vmatprep.subr.bf16.mxu1 %v4968_v40 }
 0x215   :  { %v1533_v54 = vmul.f32 0.01, %v4556_v48  ;;  %v4558_v55 = vadd.f32 %v1444_v53, %v5766_v33  ;;  %v1446_v56 = vpop.f32.mrb[15].mxu0  ;;  %1857 = vmatprep.mubr.bf16.mxu1 %v1590_v50  ;;  %vm1501_vm13 = vcmp.gt.f32.partialorder %v4556_v48, 0.0 }
 0x216   :  { %v1534_v57 = vmul.f32 0.01, %v4557_v52  ;;  %v4559_v58 = vadd.f32 %v1446_v56, %v5769_v34  ;;  %1858 = vmatmul.mubr.bf16.gmra.mrb[8].mxu1 %v1589_v47  ;;  %vm1502_vm14 = vcmp.gt.f32.partialorder %v4557_v52, 0.0 }
 0x217   :  { %vm1503_vm15 = vcmp.gt.f32.partialorder %v4558_v55, 0.0  ;;  %v1535_v62 = vmul.f32 0.01, %v4558_v55  ;;  %2219 = vmatpush1.bf16.msra.mxu1 %v4966_v51  ;;  %v1565_v1 = vsel %vm1501_vm13, %v4556_v48, %v1533_v54 }
 0x218   :  { %vm1504_vm0 = vcmp.gt.f32.partialorder %v4559_v58, 0.0  ;;  %v1536_v63 = vmul.f32 0.01, %v4559_v58  ;;  %v1566_v6 = vsel %vm1502_vm14, %v4557_v52, %v1534_v57 }
 0x219   :  { %v1567_v2 = vsel %vm1503_vm15, %v4558_v55, %v1535_v62 }
 0x21a   :  { %v1450_v5 = vpop.f32.mrb[16].mxu0  ;;  %v1568_v7 = vsel %vm1504_vm0, %v4559_v58, %v1536_v63  ;;  %v1591_v10 = vpack.c.bf16 %v1567_v2, %v1565_v1 }
 0x21b   :  { %v4560_v11 = vadd.f32 %v1450_v5, %v5766_v33  ;;  %v1452_v12 = vpop.f32.mrb[17].mxu0  ;;  %v1592_v13 = vpack.c.bf16 %v1568_v7, %v1566_v6 }
 0x21c   :  { %v4561_v14 = vadd.f32 %v1452_v12, %v5769_v34  ;;  %v1454_v15 = vpop.f32.mrb[18].mxu0 }
 0x21d   :  { %v1537_v16 = vmul.f32 0.01, %v4560_v11  ;;  %v4562_v17 = vadd.f32 %v1454_v15, %v5766_v33  ;;  %v1456_v18 = vpop.f32.mrb[19].mxu0  ;;  %1867 = vmatprep.mubr.bf16.mxu1 %v1592_v13  ;;  %vm1505_vm1 = vcmp.gt.f32.partialorder %v4560_v11, 0.0 }
 0x21e   :  { %v1538_v19 = vmul.f32 0.01, %v4561_v14  ;;  %v4563_v20 = vadd.f32 %v1456_v18, %v5769_v34  ;;  %1868 = vmatmul.mubr.bf16.gmra.mrb[12].mxu1 %v1591_v10  ;;  %vm1506_vm2 = vcmp.gt.f32.partialorder %v4561_v14, 0.0 }
 0x21f   :  { %vm1507_vm3 = vcmp.gt.f32.partialorder %v4562_v17, 0.0  ;;  %v1539_v21 = vmul.f32 0.01, %v4562_v17  ;;  %v1569_v23 = vsel %vm1505_vm1, %v4560_v11, %v1537_v16 }
 0x220   :  { %vm1508_vm4 = vcmp.gt.f32.partialorder %v4563_v20, 0.0  ;;  %v1540_v22 = vmul.f32 0.01, %v4563_v20  ;;  %v1570_v26 = vsel %vm1506_vm2, %v4561_v14, %v1538_v19 }
 0x221   :  { %v1571_v24 = vsel %vm1507_vm3, %v4562_v17, %v1539_v21 }
 0x222   :  { %v1460_v25 = vpop.f32.mrb[20].mxu0  ;;  %v1572_v27 = vsel %vm1508_vm4, %v4563_v20, %v1540_v22  ;;  %v1593_v28 = vpack.c.bf16 %v1571_v24, %v1569_v23 }
 0x223   :  { %v4564_v31 = vadd.f32 %v1460_v25, %v5766_v33  ;;  %v1462_v35 = vpop.f32.mrb[21].mxu0  ;;  %v1594_v36 = vpack.c.bf16 %v1572_v27, %v1570_v26 }
 0x224   :  { %v4565_v37 = vadd.f32 %v1462_v35, %v5769_v34  ;;  %v1464_v38 = vpop.f32.mrb[22].mxu0 }
 0x225   :  { %v1541_v39 = vmul.f32 0.01, %v4564_v31  ;;  %v4566_v40 = vadd.f32 %v1464_v38, %v5766_v33  ;;  %v1466_v41 = vpop.f32.mrb[23].mxu0  ;;  %1877 = vmatprep.mubr.bf16.mxu1 %v1594_v36  ;;  %vm1509_vm5 = vcmp.gt.f32.partialorder %v4564_v31, 0.0  ;;  %v4974_v38 = vld [vmem:[%s7696_s6 + $0x64] ss:$8 sps:$4 sm:$0xff]  }
 0x226   :  { %v1542_v42 = vmul.f32 0.01, %v4565_v37  ;;  %v4567_v43 = vadd.f32 %v1466_v41, %v5769_v34  ;;  %1878 = vmatmul.mubr.bf16.gmra.mrb[16].mxu1 %v1593_v28  ;;  %vm1510_vm6 = vcmp.gt.f32.partialorder %v4565_v37, 0.0  ;;  %v4975_v41 = vld [vmem:[%s7696_s6 + $0x70] ss:$8 sps:$4 sm:$0xff]  }
 0x227   :  { %vm1511_vm7 = vcmp.gt.f32.partialorder %v4566_v40, 0.0  ;;  %v1543_v45 = vmul.f32 0.01, %v4566_v40  ;;  %v1573_v47 = vsel %vm1509_vm5, %v4564_v31, %v1541_v39  ;;  %v4972_v39 = vld [vmem:[%s7696_s6 + $0x60] ss:$8 sps:$4 sm:$0xff]  }
 0x228   :  { %vm1512_vm8 = vcmp.gt.f32.partialorder %v4567_v43, 0.0  ;;  %v1544_v46 = vmul.f32 0.01, %v4567_v43  ;;  %v1574_v50 = vsel %vm1510_vm6, %v4565_v37, %v1542_v42  ;;  %v4980_v42 = vld [vmem:[#allocation4 + $0x4] ss:$28 sps:$4 sm:$0xff]  }
 0x229   :  { %v1575_v48 = vsel %vm1511_vm7, %v4566_v40, %v1543_v45  ;;  %v4977_v40 = vld [vmem:[%s7696_s6 + $0x74] ss:$8 sps:$4 sm:$0xff]   ;;  %v4983_v45 = vld [vmem:[#allocation4 + $0x14] ss:$28 sps:$4 sm:$0xff]  }
 0x22a   :  { %v1470_v49 = vpop.f32.mrb[24].mxu0  ;;  %v1576_v51 = vsel %vm1512_vm8, %v4567_v43, %v1544_v46  ;;  %v1595_v52 = vpack.c.bf16 %v1575_v48, %v1573_v47  ;;  %v4981_v43 = vld [vmem:[#allocation4 + $0x10] ss:$28 sps:$4 sm:$0xff]   ;;  %3402 = vmatprep.subr.bf16.mxu0 %v4983_v45  ;;  %v4987_v47 = vld [vmem:[#allocation4 + $0x48] ss:$28 sps:$4 sm:$0xff]  }
 0x22b   :  { %v4568_v53 = vadd.f32 %v1470_v49, %v5766_v33  ;;  %v1472_v54 = vpop.f32.mrb[25].mxu0  ;;  %v1596_v55 = vpack.c.bf16 %v1576_v51, %v1574_v50  ;;  %v4989_v46 = vld [vmem:[#allocation4 + $0x4c] ss:$28 sps:$4 sm:$0xff]   ;;  %3403 = vmatpush1.bf16.msra.mxu0 %v4981_v43  ;;  %v4995_v48 = vld [vmem:[#allocation4 + $0x84] ss:$28 sps:$4 sm:$0xff]  }
 0x22c   :  { %v4569_v56 = vadd.f32 %v1472_v54, %v5769_v34  ;;  %v1474_v57 = vpop.f32.mrb[26].mxu0  ;;  %3404 = vmatprep.subr.bf16.mxu0 %v4989_v46  ;;  %v4993_v49 = vld [vmem:[#allocation4 + $0x80] ss:$28 sps:$4 sm:$0xff]   ;;  %v4999_v51 = vld [vmem:[#allocation4 + $0xb8] ss:$28 sps:$4 sm:$0xff]  }
 0x22d   :  { %v1545_v58 = vmul.f32 0.01, %v4568_v53  ;;  %v4570_v62 = vadd.f32 %v1474_v57, %v5766_v33  ;;  %v1476_v63 = vpop.f32.mrb[27].mxu0  ;;  %1887 = vmatprep.mubr.bf16.mxu1 %v1596_v55  ;;  %vm1513_vm9 = vcmp.gt.f32.partialorder %v4568_v53, 0.0  ;;  %v5001_v50 = vld [vmem:[#allocation4 + $0xbc] ss:$28 sps:$4 sm:$0xff]  }
 0x22e   :  { %v1546_v1 = vmul.f32 0.01, %v4569_v56  ;;  %v4571_v2 = vadd.f32 %v1476_v63, %v5769_v34  ;;  %1888 = vmatmul.mubr.bf16.gmra.mrb[20].mxu1 %v1595_v52  ;;  %vm1514_vm10 = vcmp.gt.f32.partialorder %v4569_v56, 0.0  ;;  %v5007_v52 = vld [vmem:[#allocation4 + $0xf4] ss:$28 sps:$4 sm:$0xff]  }
 0x22f   :  { %vm1515_vm11 = vcmp.gt.f32.partialorder %v4570_v62, 0.0  ;;  %v1547_v5 = vmul.f32 0.01, %v4570_v62  ;;  %v1577_v7 = vsel %vm1513_vm9, %v4568_v53, %v1545_v58  ;;  %3405 = vmatpush1.bf16.msra.mxu0 %v4987_v47  ;;  %v5005_v53 = vld [vmem:[#allocation4 + $0xf0] ss:$28 sps:$4 sm:$0xff]  }
 0x230   :  { %vm1516_vm12 = vcmp.gt.f32.partialorder %v4571_v2, 0.0  ;;  %v1548_v6 = vmul.f32 0.01, %v4571_v2  ;;  %v1578_v12 = vsel %vm1514_vm10, %v4569_v56, %v1546_v1  ;;  %3406 = vmatprep.subr.bf16.mxu0 %v4995_v48  ;;  %v5013_v54 = vld [vmem:[#allocation4 + $0x12c] ss:$28 sps:$4 sm:$0xff]  }
 0x231   :  { %v1579_v10 = vsel %vm1515_vm11, %v4570_v62, %v1547_v5  ;;  %v5011_v55 = vld [vmem:[#allocation4 + $0x128] ss:$28 sps:$4 sm:$0xff]   ;;  %v5017_v57 = vld [vmem:[#allocation4 + $0x160] ss:$28 sps:$4 sm:$0xff]   ;;  %v5023_v62 = vld [vmem:[#allocation4 + $0x198] ss:$28 sps:$4 sm:$0xff]  }
 0x232   :  { %v1480_v11 = vpop.f32.mrb[28].mxu0  ;;  %v1580_v13 = vsel %vm1516_vm12, %v4571_v2, %v1548_v6  ;;  %v1597_v14 = vpack.c.bf16 %v1579_v10, %v1577_v7  ;;  %v5019_v56 = vld [vmem:[#allocation4 + $0x164] ss:$28 sps:$4 sm:$0xff]   ;;  %v5025_v58 = vld [vmem:[#allocation4 + $0x19c] ss:$28 sps:$4 sm:$0xff]   ;;  %v1999_v10 = vpop.xlane.xlu0 %1998 }
 0x233   :  { %v4572_v15 = vadd.f32 %v1480_v11, %v5766_v33  ;;  %v1482_v16 = vpop.f32.mrb[29].mxu0  ;;  %v1598_v17 = vpack.c.bf16 %v1580_v13, %v1578_v12  ;;  %3407 = vmatpush1.bf16.msra.mxu0 %v4993_v49  ;;  %v5031_v63 = vld [vmem:[#allocation4 + $0x1d4] ss:$28 sps:$4 sm:$0xff]   ;;  %v5037_v2 = vld [vmem:[#allocation4 + $0x20c] ss:$28 sps:$4 sm:$0xff]   ;;  %5138 = vrsqrt.f32 %v1999_v10 }
 0x234   :  { %v4573_v18 = vadd.f32 %v1482_v16, %v5769_v34  ;;  %v1484_v19 = vpop.f32.mrb[30].mxu0  ;;  %3408 = vmatprep.subr.bf16.mxu0 %v5001_v50  ;;  %v5029_v1 = vld [vmem:[#allocation4 + $0x1d0] ss:$28 sps:$4 sm:$0xff]   ;;  %v5035_v5 = vld [vmem:[#allocation4 + $0x208] ss:$28 sps:$4 sm:$0xff]  }
 0x235   :  { %v1549_v20 = vmul.f32 0.01, %v4572_v15  ;;  %v4574_v21 = vadd.f32 %v1484_v19, %v5766_v33  ;;  %v1486_v22 = vpop.f32.mrb[31].mxu0  ;;  %1897 = vmatprep.mubr.bf16.mxu1 %v1598_v17  ;;  %vm1517_vm13 = vcmp.gt.f32.partialorder %v4572_v15, 0.0  ;;  %v4971_v33 = vld [vmem:[%s7696_s6 + $0x54] ss:$8 sps:$4 sm:$0xff]  }
 0x236   :  { %v1550_v23 = vmul.f32 0.01, %v4573_v18  ;;  %v4575_v24 = vadd.f32 %v1486_v22, %v5769_v34  ;;  %1898 = vmatmul.mubr.bf16.gmra.mrb[24].mxu1 %v1597_v14  ;;  %vm1518_vm14 = vcmp.gt.f32.partialorder %v4573_v18, 0.0  ;;  %v4969_v34 = vld [vmem:[%s7696_s6 + $0x50] ss:$8 sps:$4 sm:$0xff]   ;;  %2220 = vmatprep.subr.bf16.mxu1 %v4971_v33 }
 0x237   :  { %vm1519_vm15 = vcmp.gt.f32.partialorder %v4574_v21, 0.0  ;;  %v1551_v25 = vmul.f32 0.01, %v4574_v21  ;;  %v1581_v27 = vsel %vm1517_vm13, %v4572_v15, %v1549_v20  ;;  %2221 = vmatpush1.bf16.msra.mxu1 %v4969_v34  ;;  %3409 = vmatpush1.bf16.msra.mxu0 %v4999_v51  ;;  %v5043_v6 = vld [vmem:[#allocation4 + $0x244] ss:$28 sps:$4 sm:$0xff]   ;;  %v2001_v20 = vpop.xlane.xlu0 %2000 }
 0x238   :  { %vm1520_vm0 = vcmp.gt.f32.partialorder %v4575_v24, 0.0  ;;  %v1552_v26 = vmul.f32 0.01, %v4575_v24  ;;  %v1582_v31 = vsel %vm1518_vm14, %v4573_v18, %v1550_v23  ;;  %2222 = vmatprep.subr.bf16.mxu1 %v4974_v38  ;;  %3410 = vmatprep.subr.bf16.mxu0 %v5007_v52  ;;  %v1633_v7 = vld [vmem:[%s7695_s5] sm:$0x3]  ;;  %5140 = vrsqrt.f32 %v2001_v20 }
 0x239   :  { %v1583_v28 = vsel %vm1519_vm15, %v4574_v21, %v1551_v25  ;;  %v5041_v11 = vld [vmem:[#allocation4 + $0x240] ss:$28 sps:$4 sm:$0xff]   ;;  %v5853_v13 = vrot.slane %v1633_v7, %v5757_v30  ;;  %v5856_v14 = vrot.slane %v1633_v7, %v5763_v32  ;;  %v5047_v15 = vld [vmem:[#allocation4 + $0x278] ss:$28 sps:$4 sm:$0xff]   ;;  %v2003_v25 = vpop.xlane.xlu1 %2002 }
 0x23a   :  { %v1584_v35 = vsel %vm1520_vm0, %v4575_v24, %v1552_v26  ;;  %v1599_v36 = vpack.c.bf16 %v1583_v28, %v1581_v27  ;;  %v5049_v12 = vld [vmem:[#allocation4 + $0x27c] ss:$28 sps:$4 sm:$0xff]   ;;  %v5055_v17 = vld [vmem:[#allocation4 + $0x2b4] ss:$28 sps:$4 sm:$0xff]  }
 0x23b   :  { %v1600_v37 = vpack.c.bf16 %v1584_v35, %v1582_v31  ;;  %2223 = vmatpush1.bf16.msra.mxu1 %v4972_v39  ;;  %3411 = vmatpush1.bf16.msra.mxu0 %v5005_v53  ;;  %v5053_v26 = vld [vmem:[#allocation4 + $0x2b0] ss:$28 sps:$4 sm:$0xff]   ;;  %v2007_v50 = vpop.xlane.xlu0 %2006 }
 0x23c   :  { %2224 = vmatprep.subr.bf16.mxu1 %v4977_v40  ;;  %3412 = vmatprep.subr.bf16.mxu0 %v5013_v54 }
 0x23d   :  { %1907 = vmatprep.mubr.bf16.mxu1 %v1600_v37  ;;  %v2005_v38 = vpop.xlane.xlu1 %2004  ;;  %v5139_v46 = vpop.eup %5138 }
 0x23e   :  { %1908 = vmatmul.mubr.bf16.gmra.mrb[28].mxu1 %v1599_v36  ;;  %v2046_v53 = vmul.f32 %v5139_v46, %v5674_v59  ;;  %v4992_v46 = vld [vmem:[#allocation4 + $0x74] ss:$28 sps:$4 sm:$0xff]  }
 0x23f   :  { %2242 = vmatprep.mubr.bf16.mxu1 %v5296_v44  ;;  %2225 = vmatpush1.bf16.msra.mxu1 %v4975_v41 }
 0x240   :  { %3176 = vmatprep.subr.bf16.mxu1 %v4980_v42  ;;  %3413 = vmatpush1.bf16.msra.mxu0 %v5011_v55 }
 0x241   :  { %3414 = vmatprep.subr.bf16.mxu0 %v5019_v56 }
 0x242   :  { %v5141_v47 = vpop.eup %5140 }
 0x243   :  { %v2047_v54 = vmul.f32 %v5141_v47, %v5679_v60 }
 0x244   :  { %3415 = vmatpush1.bf16.msra.mxu0 %v5017_v57  ;;  %v2009_v57 = vpop.xlane.xlu1 %2008 }
 0x245   :  { %3416 = vmatprep.subr.bf16.mxu0 %v5025_v58 }
 0x248   :  { %3417 = vmatpush1.bf16.msra.mxu0 %v5023_v62 }
 0x249   :  { %3418 = vmatprep.subr.bf16.mxu0 %v5031_v63 }
 0x24c   :  { %3419 = vmatpush1.bf16.msra.mxu0 %v5029_v1 }
 0x24d   :  { %3420 = vmatprep.subr.bf16.mxu0 %v5037_v2 }
 0x250   :  { %3421 = vmatpush1.bf16.msra.mxu0 %v5035_v5 }
 0x251   :  { %3422 = vmatprep.subr.bf16.mxu0 %v5043_v6 }
 0x254   :  { %3423 = vmatpush1.bf16.msra.mxu0 %v5041_v11 }
 0x255   :  { %3424 = vmatprep.subr.bf16.mxu0 %v5049_v12 }
 0x258   :  { %3425 = vmatpush1.bf16.msra.mxu0 %v5047_v15 }
 0x259   :  { %3426 = vmatprep.subr.bf16.mxu0 %v5055_v17  ;;  %v2011_v17 = vpop.xlane.xlu0 %2010 }
 0x25c   :  { %3427 = vmatpush1.bf16.msra.mxu0 %v5053_v26 }
 0x2d9   :  { %v1839_v16 = vpop.f32.mrb[0].mxu1 }
 0x2da   :  { %v5859_v18 = vadd.f32 %v1839_v16, %v5853_v13  ;;  %v1841_v19 = vpop.f32.mrb[1].mxu1 }
 0x2db   :  { %v1842_v21 = vadd.f32 %v1841_v19, %v5856_v14  ;;  %v1843_v22 = vpop.f32.mrb[2].mxu1 }
 0x2dc   :  { %4108 = vst [vmem:[%s7702_s12] sm:$0xff] %v5859_v18  ;;  %v5867_v23 = vadd.f32 %v1843_v22, %v5853_v13  ;;  %v1845_v24 = vpop.f32.mrb[3].mxu1 }
 0x2dd   :  { %v1918_v27 = vmul.f32 0.5, %v1842_v21  ;;  %v1846_v28 = vadd.f32 %v1845_v24, %v5856_v14  ;;  %v4978_v24 = vld [vmem:[#allocation4] ss:$28 sps:$4 sm:$0xff]  }
 0x2de   :  { %4109 = vst [vmem:[%s7702_s12 + $0x8] sm:$0xff] %v5867_v23 }
 0x2df   :  { %v1934_v31 = vmul.f32 1.442695, %v1918_v27  ;;  %v1919_v35 = vmul.f32 0.5, %v1846_v28  ;;  %v4986_v28 = vld [vmem:[#allocation4 + $0x3c] ss:$28 sps:$4 sm:$0xff]  }
 0x2e1   :  { %5142 = vpow2.f32 %v1934_v31  ;;  %v1936_v36 = vmul.f32 1.442695, %v1919_v35  ;;  %v1849_v37 = vpop.f32.mrb[4].mxu1 }
 0x2e2   :  { %v5875_v33 = vadd.f32 %v1849_v37, %v5853_v13  ;;  %v1851_v34 = vpop.f32.mrb[5].mxu1 }
 0x2e3   :  { %5144 = vpow2.f32 %v1936_v36  ;;  %v1852_v39 = vadd.f32 %v1851_v34, %v5856_v14  ;;  %v1853_v40 = vpop.f32.mrb[6].mxu1 }
 0x2e4   :  { %4110 = vst [vmem:[%s7702_s12 + $0x10] sm:$0xff] %v5875_v33  ;;  %v5883_v41 = vadd.f32 %v1853_v40, %v5853_v13  ;;  %5146 = vrsqrt.f32 %v2003_v25  ;;  %v1855_v42 = vpop.f32.mrb[7].mxu1 }
 0x2e5   :  { %v1920_v43 = vmul.f32 0.5, %v1852_v39  ;;  %v1856_v45 = vadd.f32 %v1855_v42, %v5856_v14  ;;  %5148 = vrsqrt.f32 %v2005_v38  ;;  %v4984_v42 = vld [vmem:[#allocation4 + $0x38] ss:$28 sps:$4 sm:$0xff]  }
 0x2e6   :  { %4111 = vst [vmem:[%s7702_s12 + $0x18] sm:$0xff] %v5883_v41 }
 0x2e7   :  { %v1938_v48 = vmul.f32 1.442695, %v1920_v43  ;;  %v1921_v49 = vmul.f32 0.5, %v1856_v45 }
 0x2e9   :  { %5150 = vpow2.f32 %v1938_v48  ;;  %v1940_v51 = vmul.f32 1.442695, %v1921_v49  ;;  %v1859_v52 = vpop.f32.mrb[8].mxu1 }
 0x2ea   :  { %v5893_v55 = vadd.f32 %v1859_v52, %v5853_v13  ;;  %v1861_v56 = vpop.f32.mrb[9].mxu1  ;;  %5152 = vrsqrt.f32 %v2007_v50  ;;  %v2015_v50 = vpop.xlane.xlu0 %2014 }
 0x2eb   :  { %v5143_v58 = vpop.eup %5142  ;;  %5154 = vpow2.f32 %v1940_v51  ;;  %v1862_v62 = vadd.f32 %v1861_v56, %v5856_v14  ;;  %v1863_v63 = vpop.f32.mrb[10].mxu1  ;;  %v4990_v56 = vld [vmem:[#allocation4 + $0x70] ss:$28 sps:$4 sm:$0xff]  }
 0x2ec   :  { %4124 = vst [vmem:[%s7703_s13] sm:$0xff] %v5143_v58  ;;  %v2062_v1 = vmul.f32 %v5143_v58, %v2046_v53  ;;  %4112 = vst [vmem:[%s7702_s12 + $0x20] sm:$0xff] %v5893_v55  ;;  %v5904_v59 = vadd.f32 %v1863_v63, %v5853_v13  ;;  %v1865_v60 = vpop.f32.mrb[11].mxu1  ;;  %5156 = vrsqrt.f32 %v2009_v57 }
 0x2ed   :  { %v5145_v2 = vpop.eup %5144  ;;  %v1922_v5 = vmul.f32 0.5, %v1862_v62  ;;  %v1866_v6 = vadd.f32 %v1865_v60, %v5856_v14 }
 0x2ee   :  { %v5147_v7 = vpop.eup %5146  ;;  %4125 = vst [vmem:[%s7703_s13 + $0x8] sm:$0xff] %v5145_v2  ;;  %v2063_v10 = vmul.f32 %v5145_v2, %v2047_v54  ;;  %4113 = vst [vmem:[%s7702_s12 + $0x28] sm:$0xff] %v5904_v59  ;;  %v2078_v11 = vadd.f32 %v2062_v1, %v5859_v18 }
 0x2ef   :  { %v5149_v12 = vpop.eup %5148  ;;  %v1942_v15 = vmul.f32 1.442695, %v1922_v5  ;;  %v1923_v16 = vmul.f32 0.5, %v1866_v6  ;;  %v2048_v22 = vmul.f32 %v5147_v7, %v5684_v61 }
 0x2f0   :  { %v2079_v19 = vadd.f32 %v2063_v10, %v5867_v23  ;;  %3980 = vst [vmem:[%s7700_s10] sm:$0xff] %v2078_v11  ;;  %v2013_v23 = vpop.xlane.xlu1 %2012  ;;  %v2049_v27 = vmul.f32 %v5149_v12, %v5693_v0  ;;  %v4996_v12 = vld [vmem:[#allocation4 + $0xa8] ss:$28 sps:$4 sm:$0xff]  }
 0x2f1   :  { %5158 = vpow2.f32 %v1942_v15  ;;  %v1944_v20 = vmul.f32 1.442695, %v1923_v16  ;;  %v1869_v21 = vpop.f32.mrb[12].mxu1 }
 0x2f2   :  { %v5921_v25 = vadd.f32 %v1869_v21, %v5853_v13  ;;  %v1871_v18 = vpop.f32.mrb[13].mxu1  ;;  %v2094_v26 = vpack.c.bf16 %v2079_v19, %v2078_v11  ;;  %3981 = vst [vmem:[%s7700_s10 + $0x8] sm:$0xff] %v2079_v19  ;;  %5160 = vrsqrt.f32 %v2011_v17  ;;  %v5004_v17 = vld [vmem:[#allocation4 + $0xe4] ss:$28 sps:$4 sm:$0xff]  }
 0x2f3   :  { %v5151_v31 = vpop.eup %5150  ;;  %5162 = vpow2.f32 %v1944_v20  ;;  %v1872_v35 = vadd.f32 %v1871_v18, %v5856_v14  ;;  %v1873_v61 = vpop.f32.mrb[14].mxu1 }
 0x2f4   :  { %v5153_v36 = vpop.eup %5152  ;;  %4126 = vst [vmem:[%s7703_s13 + $0x10] sm:$0xff] %v5151_v31  ;;  %4114 = vst [vmem:[%s7702_s12 + $0x30] sm:$0xff] %v5921_v25  ;;  %v5936_v37 = vadd.f32 %v1873_v61, %v5853_v13  ;;  %v1875_v0 = vpop.f32.mrb[15].mxu1  ;;  %2243 = vmatmul.mubr.bf16.vlgmr.msra.gmra.mrb[32].mxu1 %v2094_v26  ;;  %v2064_v34 = vmul.f32 %v5151_v31, %v2048_v22  ;;  %5164 = vrsqrt.f32 %v2013_v23 }
 0x2f5   :  { %v5155_v38 = vpop.eup %5154  ;;  %v1924_v39 = vmul.f32 0.5, %v1872_v35  ;;  %v1876_v40 = vadd.f32 %v1875_v0, %v5856_v14  ;;  %2252 = vmatprep.mubr.bf16.mxu1 %v5296_v44  ;;  %3177 = vmatpush1.bf16.msra.mxu1 %v4978_v24  ;;  %v2050_v52 = vmul.f32 %v5153_v36, %v5702_v3  ;;  %v4998_v3 = vld [vmem:[#allocation4 + $0xac] ss:$28 sps:$4 sm:$0xff]   ;;  %v2019_v22 = vpop.xlane.xlu0 %2018 }
 0x2f6   :  { %4127 = vst [vmem:[%s7703_s13 + $0x18] sm:$0xff] %v5155_v38  ;;  %4115 = vst [vmem:[%s7702_s12 + $0x38] sm:$0xff] %v5936_v37  ;;  %v2065_v43 = vmul.f32 %v5155_v38, %v2049_v27  ;;  %v2080_v45 = vadd.f32 %v2064_v34, %v5875_v33  ;;  %3178 = vmatprep.subr.bf16.mxu1 %v4986_v28  ;;  %v5157_v47 = vpop.eup %5156  ;;  %v5002_v27 = vld [vmem:[#allocation4 + $0xe0] ss:$28 sps:$4 sm:$0xff]  }
 0x2f7   :  { %v1946_v48 = vmul.f32 1.442695, %v1924_v39  ;;  %v1925_v49 = vmul.f32 0.5, %v1876_v40  ;;  %v2051_v62 = vmul.f32 %v5157_v47, %v5707_v4 }
 0x2f8   :  { %v2081_v51 = vadd.f32 %v2065_v43, %v5883_v41  ;;  %3982 = vst [vmem:[%s7700_s10 + $0x10] sm:$0xff] %v2080_v45  ;;  %v2017_v41 = vpop.xlane.xlu1 %2016 }
 0x2f9   :  { %5166 = vpow2.f32 %v1946_v48  ;;  %v1948_v53 = vmul.f32 1.442695, %v1925_v49  ;;  %v1879_v54 = vpop.f32.mrb[16].mxu1  ;;  %3179 = vmatpush1.bf16.msra.mxu1 %v4984_v42  ;;  %v5016_v48 = vld [vmem:[#allocation4 + $0x154] ss:$28 sps:$4 sm:$0xff]  }
 0x2fa   :  { %v5954_v33 = vadd.f32 %v1879_v54, %v5853_v13  ;;  %v1881_v57 = vpop.f32.mrb[17].mxu1  ;;  %v2095_v58 = vpack.c.bf16 %v2081_v51, %v2080_v45  ;;  %3983 = vst [vmem:[%s7700_s10 + $0x18] sm:$0xff] %v2081_v51  ;;  %5168 = vrsqrt.f32 %v2015_v50  ;;  %3180 = vmatprep.subr.bf16.mxu1 %v4992_v46  ;;  %v5008_v45 = vld [vmem:[#allocation4 + $0x118] ss:$28 sps:$4 sm:$0xff]  }
 0x2fb   :  { %v5159_v63 = vpop.eup %5158  ;;  %5170 = vpow2.f32 %v1948_v53  ;;  %v1882_v1 = vadd.f32 %v1881_v57, %v5856_v14  ;;  %v1883_v60 = vpop.f32.mrb[18].mxu1  ;;  %v5234_v54 = vld [vmem:[%s7691_s1 + $0x40] sm:$0xff] }
 0x2fc   :  { %v5161_v2 = vpop.eup %5160  ;;  %4128 = vst [vmem:[%s7703_s13 + $0x20] sm:$0xff] %v5159_v63  ;;  %4116 = vst [vmem:[%s7702_s12 + $0x40] sm:$0xff] %v5954_v33  ;;  %v5969_v5 = vadd.f32 %v1883_v60, %v5853_v13  ;;  %v1885_v4 = vpop.f32.mrb[19].mxu1  ;;  %2253 = vmatmul.mubr.bf16.gmra.mrb[36].mxu1 %v2095_v58  ;;  %v2066_v6 = vmul.f32 %v5159_v63, %v2050_v52  ;;  %5172 = vrsqrt.f32 %v2017_v41  ;;  %v5014_v58 = vld [vmem:[#allocation4 + $0x150] ss:$28 sps:$4 sm:$0xff]   ;;  %v5235_v63 = vld [vmem:[%s7691_s1 + $0x48] sm:$0xff] }
 0x2fd   :  { %v5163_v7 = vpop.eup %5162  ;;  %v1926_v10 = vmul.f32 0.5, %v1882_v1  ;;  %v1886_v11 = vadd.f32 %v1885_v4, %v5856_v14  ;;  %2262 = vmatprep.mubr.bf16.mxu1 %v5296_v44  ;;  %3181 = vmatpush1.bf16.msra.mxu1 %v4990_v56  ;;  %v2052_v18 = vmul.f32 %v5161_v2, %v5719_v8  ;;  %v5010_v8 = vld [vmem:[#allocation4 + $0x11c] ss:$28 sps:$4 sm:$0xff]   ;;  %v2023_v52 = vpop.xlane.xlu0 %2022  ;;  %v5022_v60 = vld [vmem:[#allocation4 + $0x18c] ss:$28 sps:$4 sm:$0xff]  }
 0x2fe   :  { %4129 = vst [vmem:[%s7703_s13 + $0x28] sm:$0xff] %v5163_v7  ;;  %4117 = vst [vmem:[%s7702_s12 + $0x48] sm:$0xff] %v5969_v5  ;;  %v2067_v15 = vmul.f32 %v5163_v7, %v2051_v62  ;;  %v2082_v16 = vadd.f32 %v2066_v6, %v5893_v55  ;;  %3182 = vmatprep.subr.bf16.mxu1 %v4998_v3  ;;  %v5165_v19 = vpop.eup %5164 }
 0x2ff   :  { %v1950_v20 = vmul.f32 1.442695, %v1926_v10  ;;  %v1927_v21 = vmul.f32 0.5, %v1886_v11  ;;  %v2053_v35 = vmul.f32 %v5165_v19, %v5724_v9  ;;  %v5020_v19 = vld [vmem:[#allocation4 + $0x188] ss:$28 sps:$4 sm:$0xff]  }
 0x300   :  { %v2083_v24 = vadd.f32 %v2067_v15, %v5904_v59  ;;  %3984 = vst [vmem:[%s7700_s10 + $0x20] sm:$0xff] %v2082_v16  ;;  %v2021_v59 = vpop.xlane.xlu1 %2020 }
 0x301   :  { %5174 = vpow2.f32 %v1950_v20  ;;  %v1952_v26 = vmul.f32 1.442695, %v1927_v21  ;;  %v1889_v23 = vpop.f32.mrb[20].mxu1  ;;  %3183 = vmatpush1.bf16.msra.mxu1 %v4996_v12 }
 0x302   :  { %v5987_v55 = vadd.f32 %v1889_v23, %v5853_v13  ;;  %v1891_v28 = vpop.f32.mrb[21].mxu1  ;;  %v2096_v31 = vpack.c.bf16 %v2083_v24, %v2082_v16  ;;  %3985 = vst [vmem:[%s7700_s10 + $0x28] sm:$0xff] %v2083_v24  ;;  %5176 = vrsqrt.f32 %v2019_v22  ;;  %3184 = vmatprep.subr.bf16.mxu1 %v5004_v17  ;;  %v5028_v22 = vld [vmem:[#allocation4 + $0x1c4] ss:$28 sps:$4 sm:$0xff]   ;;  %v2027_v23 = vpop.xlane.xlu0 %2026 }
 0x303   :  { %v5167_v61 = vpop.eup %5166  ;;  %5178 = vpow2.f32 %v1952_v26  ;;  %v1892_v36 = vadd.f32 %v1891_v28, %v5856_v14  ;;  %v1893_v0 = vpop.f32.mrb[22].mxu1  ;;  %v5236_v28 = vld [vmem:[%s7691_s1 + $0x50] sm:$0xff] }
 0x304   :  { %v5169_v34 = vpop.eup %5168  ;;  %4130 = vst [vmem:[%s7703_s13 + $0x30] sm:$0xff] %v5167_v61  ;;  %4118 = vst [vmem:[%s7702_s12 + $0x50] sm:$0xff] %v5987_v55  ;;  %v6002_v38 = vadd.f32 %v1893_v0, %v5853_v13  ;;  %v1895_v9 = vpop.f32.mrb[23].mxu1  ;;  %2263 = vmatmul.mubr.bf16.gmra.mrb[40].mxu1 %v2096_v31  ;;  %v2068_v39 = vmul.f32 %v5167_v61, %v2052_v18  ;;  %5180 = vrsqrt.f32 %v2021_v59  ;;  %v5237_v0 = vld [vmem:[%s7691_s1 + $0x58] sm:$0xff] }
 0x305   :  { %v5171_v40 = vpop.eup %5170  ;;  %v1928_v42 = vmul.f32 0.5, %v1892_v36  ;;  %v1896_v43 = vadd.f32 %v1895_v9, %v5856_v14  ;;  %2272 = vmatprep.mubr.bf16.mxu1 %v5296_v44  ;;  %3185 = vmatpush1.bf16.msra.mxu1 %v5002_v27  ;;  %v2054_v56 = vmul.f32 %v5234_v54, %v5169_v34  ;;  %v5034_v9 = vld [vmem:[#allocation4 + $0x1fc] ss:$28 sps:$4 sm:$0xff]  }
 0x306   :  { %4131 = vst [vmem:[%s7703_s13 + $0x38] sm:$0xff] %v5171_v40  ;;  %4119 = vst [vmem:[%s7702_s12 + $0x58] sm:$0xff] %v6002_v38  ;;  %v2069_v46 = vmul.f32 %v5171_v40, %v2053_v35  ;;  %v2084_v47 = vadd.f32 %v2068_v39, %v5921_v25  ;;  %3186 = vmatprep.subr.bf16.mxu1 %v5010_v8  ;;  %v5173_v49 = vpop.eup %5172  ;;  %v5026_v35 = vld [vmem:[#allocation4 + $0x1c0] ss:$28 sps:$4 sm:$0xff]  }
 0x307   :  { %v1954_v50 = vmul.f32 1.442695, %v1928_v42  ;;  %v1929_v51 = vmul.f32 0.5, %v1896_v43  ;;  %v2055_v1 = vmul.f32 %v5235_v63, %v5173_v49  ;;  %v5046_v63 = vld [vmem:[#allocation4 + $0x26c] ss:$28 sps:$4 sm:$0xff]  }
 0x308   :  { %v2085_v53 = vadd.f32 %v2069_v46, %v5936_v37  ;;  %3986 = vst [vmem:[%s7700_s10 + $0x30] sm:$0xff] %v2084_v47  ;;  %v2025_v37 = vpop.xlane.xlu1 %2024 }
 0x309   :  { %5182 = vpow2.f32 %v1954_v50  ;;  %v1956_v57 = vmul.f32 1.442695, %v1929_v51  ;;  %v1899_v25 = vpop.f32.mrb[24].mxu1  ;;  %3187 = vmatpush1.bf16.msra.mxu1 %v5008_v45  ;;  %v5032_v51 = vld [vmem:[#allocation4 + $0x1f8] ss:$28 sps:$4 sm:$0xff]  }
 0x30a   :  { %v6022_v41 = vadd.f32 %v1899_v25, %v5853_v13  ;;  %v1901_v62 = vpop.f32.mrb[25].mxu1  ;;  %v2097_v3 = vpack.c.bf16 %v2085_v53, %v2084_v47  ;;  %3987 = vst [vmem:[%s7700_s10 + $0x38] sm:$0xff] %v2085_v53  ;;  %5184 = vrsqrt.f32 %v2023_v52  ;;  %3188 = vmatprep.subr.bf16.mxu1 %v5016_v48  ;;  %v5040_v53 = vld [vmem:[#allocation4 + $0x234] ss:$28 sps:$4 sm:$0xff]  }
 0x30b   :  { %v5175_v2 = vpop.eup %5174  ;;  %5186 = vpow2.f32 %v1956_v57  ;;  %v1902_v4 = vadd.f32 %v1901_v62, %v5856_v14  ;;  %v1903_v6 = vpop.f32.mrb[26].mxu1  ;;  %v5238_v25 = vld [vmem:[%s7691_s1 + $0x60] sm:$0xff] }
 0x30c   :  { %v5177_v7 = vpop.eup %5176  ;;  %4132 = vst [vmem:[%s7703_s13 + $0x40] sm:$0xff] %v5175_v2  ;;  %4120 = vst [vmem:[%s7702_s12 + $0x60] sm:$0xff] %v6022_v41  ;;  %v6039_v10 = vadd.f32 %v1903_v6, %v5853_v13  ;;  %v1905_v11 = vpop.f32.mrb[27].mxu1  ;;  %2273 = vmatmul.mubr.bf16.gmra.mrb[44].mxu1 %v2097_v3  ;;  %v2070_v12 = vmul.f32 %v5175_v2, %v2054_v56  ;;  %5188 = vrsqrt.f32 %v2025_v37  ;;  %v5044_v6 = vld [vmem:[#allocation4 + $0x268] ss:$28 sps:$4 sm:$0xff]  }
 0x30d   :  { %v5179_v15 = vpop.eup %5178  ;;  %v1930_v16 = vmul.f32 0.5, %v1902_v4  ;;  %v1906_v17 = vadd.f32 %v1905_v11, %v5856_v14  ;;  %2282 = vmatprep.mubr.bf16.mxu1 %v5296_v44  ;;  %3189 = vmatpush1.bf16.msra.mxu1 %v5014_v58  ;;  %v2056_v31 = vmul.f32 %v5236_v28, %v5177_v7 }
 0x30e   :  { %4133 = vst [vmem:[%s7703_s13 + $0x48] sm:$0xff] %v5179_v15  ;;  %4121 = vst [vmem:[%s7702_s12 + $0x68] sm:$0xff] %v6039_v10  ;;  %v2071_v20 = vmul.f32 %v5179_v15, %v2055_v1  ;;  %v2086_v21 = vadd.f32 %v2070_v12, %v5954_v33  ;;  %3190 = vmatprep.subr.bf16.mxu1 %v5022_v60  ;;  %v5181_v24 = vpop.eup %5180  ;;  %v5052_v12 = vld [vmem:[#allocation4 + $0x2a4] ss:$28 sps:$4 sm:$0xff]  }
 0x30f   :  { %v1958_v18 = vmul.f32 1.442695, %v1930_v16  ;;  %v1931_v26 = vmul.f32 0.5, %v1906_v17  ;;  %v2057_v34 = vmul.f32 %v5237_v0, %v5181_v24  ;;  %v5240_v17 = vld [vmem:[%s7691_s1 + $0x70] sm:$0xff]  ;;  %v5073_v0 = vld [vmem:[#allocation4 + $0x35c] ss:$28 sps:$4 sm:$0xff]  }
 0x310   :  { %v2087_v27 = vadd.f32 %v2071_v20, %v5969_v5  ;;  %3988 = vst [vmem:[%s7700_s10 + $0x40] sm:$0xff] %v2086_v21  ;;  %v2029_v5 = vpop.xlane.xlu1 %2028  ;;  %v5050_v20 = vld [vmem:[#allocation4 + $0x2a0] ss:$28 sps:$4 sm:$0xff]  }
 0x311   :  { %5190 = vpow2.f32 %v1958_v18  ;;  %v1960_v59 = vmul.f32 1.442695, %v1931_v26  ;;  %v1909_v33 = vpop.f32.mrb[28].mxu1  ;;  %3191 = vmatpush1.bf16.msra.mxu1 %v5020_v19 }
 0x312   :  { %v6059_v8 = vadd.f32 %v1909_v33, %v5853_v13  ;;  %v1911_v61 = vpop.f32.mrb[29].mxu1  ;;  %v2098_v36 = vpack.c.bf16 %v2087_v27, %v2086_v21  ;;  %3989 = vst [vmem:[%s7700_s10 + $0x48] sm:$0xff] %v2087_v27  ;;  %5192 = vrsqrt.f32 %v2027_v23  ;;  %3192 = vmatprep.subr.bf16.mxu1 %v5028_v22  ;;  %v5059_v33 = vld [vmem:[#allocation4 + $0x2e8] ss:$28 sps:$4 sm:$0xff]  }
 0x313   :  { %v5183_v39 = vpop.eup %5182  ;;  %5194 = vpow2.f32 %v1960_v59  ;;  %v1912_v40 = vadd.f32 %v1911_v61, %v5856_v14  ;;  %v1913_v42 = vpop.f32.mrb[30].mxu1  ;;  %v5056_v59 = vld [vmem:[#allocation4 + $0x2d8] ss:$28 sps:$4 sm:$0xff]   ;;  %v5062_v61 = vld [vmem:[#allocation4 + $0x310] ss:$28 sps:$4 sm:$0xff]  }
 0x314   :  { %v5185_v43 = vpop.eup %5184  ;;  %4134 = vst [vmem:[%s7703_s13 + $0x50] sm:$0xff] %v5183_v39  ;;  %4122 = vst [vmem:[%s7702_s12 + $0x70] sm:$0xff] %v6059_v8  ;;  %v6076_v45 = vadd.f32 %v1913_v42, %v5853_v13  ;;  %v1915_v46 = vpop.f32.mrb[31].mxu1  ;;  %2283 = vmatmul.mubr.bf16.gmra.mrb[48].mxu1 %v2098_v36  ;;  %v2072_v47 = vmul.f32 %v5183_v39, %v2056_v31  ;;  %5196 = vrsqrt.f32 %v2029_v5  ;;  %v5061_v31 = vld [vmem:[#allocation4 + $0x2ec] ss:$28 sps:$4 sm:$0xff]  }
 0x315   :  { %v5187_v48 = vpop.eup %5186  ;;  %v1932_v49 = vmul.f32 0.5, %v1912_v40  ;;  %v1916_v50 = vadd.f32 %v1915_v46, %v5856_v14  ;;  %2292 = vmatprep.mubr.bf16.mxu1 %v5296_v44  ;;  %3193 = vmatpush1.bf16.msra.mxu1 %v5026_v35  ;;  %v2058_v58 = vmul.f32 %v5238_v25, %v5185_v43  ;;  %v5064_v35 = vld [vmem:[#allocation4 + $0x314] ss:$28 sps:$4 sm:$0xff]   ;;  %v5065_v36 = vld [vmem:[#allocation4 + $0x320] ss:$28 sps:$4 sm:$0xff]  }
 0x316   :  { %4135 = vst [vmem:[%s7703_s13 + $0x58] sm:$0xff] %v5187_v48  ;;  %4123 = vst [vmem:[%s7702_s12 + $0x78] sm:$0xff] %v6076_v45  ;;  %v2073_v13 = vmul.f32 %v5187_v48, %v2057_v34  ;;  %v2088_v52 = vadd.f32 %v2072_v47, %v5987_v55  ;;  %3194 = vmatprep.subr.bf16.mxu1 %v5034_v9  ;;  %v5189_v14 = vpop.eup %5188  ;;  %v5038_v55 = vld [vmem:[#allocation4 + $0x230] ss:$28 sps:$4 sm:$0xff]   ;;  %3428 = vmatprep.subr.bf16.mxu0 %v5061_v31  ;;  %v5068_v34 = vld [vmem:[#allocation4 + $0x348] ss:$28 sps:$4 sm:$0xff]  }
 0x317   :  { %v1962_v54 = vmul.f32 1.442695, %v1932_v49  ;;  %v1933_v56 = vmul.f32 0.5, %v1916_v50  ;;  %3429 = vmatpush1.bf16.msra.mxu0 %v5059_v33  ;;  %v5070_v5 = vld [vmem:[#allocation4 + $0x34c] ss:$28 sps:$4 sm:$0xff]  }
 0x318   :  { %v2089_v57 = vadd.f32 %v2073_v13, %v6002_v38  ;;  %3990 = vst [vmem:[%s7700_s10 + $0x50] sm:$0xff] %v2088_v52  ;;  %v5239_v38 = vld [vmem:[%s7691_s1 + $0x68] sm:$0xff]  ;;  %v5076_v39 = vld [vmem:[#allocation4 + $0xc] ss:$28 sps:$4 sm:$0xff]   ;;  %v2118_v40 = vld [vmem:[%s7697_s7] sm:$0x3] }
 0x319   :  { %5198 = vpow2.f32 %v1962_v54  ;;  %v1964_v62 = vmul.f32 1.442695, %v1933_v56  ;;  %3195 = vmatpush1.bf16.msra.mxu1 %v5032_v51  ;;  %v2059_v37 = vmul.f32 %v5239_v38, %v5189_v14  ;;  %v5071_v9 = vld [vmem:[#allocation4 + $0x358] ss:$28 sps:$4 sm:$0xff]   ;;  %v6141_v42 = vrot.slane %v2118_v40, %v5757_v30 }
 0x31a   :  { %v2099_v3 = vpack.c.bf16 %v2089_v57, %v2088_v52  ;;  %3991 = vst [vmem:[%s7700_s10 + $0x58] sm:$0xff] %v2089_v57  ;;  %3196 = vmatprep.subr.bf16.mxu1 %v5040_v53  ;;  %v6144_v43 = vrot.slane %v2118_v40, %v5763_v32  ;;  %v5085_v31 = vld [vmem:[#allocation4 + $0xb4] ss:$28 sps:$4 sm:$0xff]  }
 0x31b   :  { %v5191_v1 = vpop.eup %5190  ;;  %5200 = vpow2.f32 %v1964_v62 }
 0x31c   :  { %v5193_v60 = vpop.eup %5192  ;;  %4136 = vst [vmem:[%s7703_s13 + $0x60] sm:$0xff] %v5191_v1  ;;  %2293 = vmatmul.mubr.bf16.gmra.mrb[52].mxu1 %v2099_v3  ;;  %v2074_v2 = vmul.f32 %v5191_v1, %v2058_v58 }
 0x31d   :  { %v5195_v4 = vpop.eup %5194  ;;  %2302 = vmatprep.mubr.bf16.mxu1 %v5296_v44  ;;  %3197 = vmatpush1.bf16.msra.mxu1 %v5038_v55  ;;  %v2060_v19 = vmul.f32 %v5240_v17, %v5193_v60 }
 0x31e   :  { %4137 = vst [vmem:[%s7703_s13 + $0x68] sm:$0xff] %v5195_v4  ;;  %v2075_v7 = vmul.f32 %v5195_v4, %v2059_v37  ;;  %v2090_v11 = vadd.f32 %v2074_v2, %v6022_v41  ;;  %3198 = vmatprep.subr.bf16.mxu1 %v5046_v63  ;;  %v5197_v15 = vpop.eup %5196  ;;  %v5241_v41 = vld [vmem:[%s7691_s1 + $0x78] sm:$0xff]  ;;  %v5079_v2 = vld [vmem:[#allocation4 + $0x44] ss:$28 sps:$4 sm:$0xff]  }
 0x31f   :  { %v5074_v63 = vld [vmem:[#allocation4 + $0x8] ss:$28 sps:$4 sm:$0xff]  }
 0x320   :  { %v2091_v16 = vadd.f32 %v2075_v7, %v6039_v10  ;;  %3992 = vst [vmem:[%s7700_s10 + $0x60] sm:$0xff] %v2090_v11  ;;  %v2061_v10 = vmul.f32 %v5241_v41, %v5197_v15 }
 0x321   :  { %3199 = vmatpush1.bf16.msra.mxu1 %v5044_v6 }
 0x322   :  { %v2100_v21 = vpack.c.bf16 %v2091_v16, %v2090_v11  ;;  %3993 = vst [vmem:[%s7700_s10 + $0x68] sm:$0xff] %v2091_v16  ;;  %3200 = vmatprep.subr.bf16.mxu1 %v5052_v12  ;;  %v5077_v16 = vld [vmem:[#allocation4 + $0x40] ss:$28 sps:$4 sm:$0xff]  }
 0x323   :  { %v5199_v22 = vpop.eup %5198 }
 0x324   :  { %4138 = vst [vmem:[%s7703_s13 + $0x70] sm:$0xff] %v5199_v22  ;;  %2303 = vmatmul.mubr.bf16.gmra.mrb[56].mxu1 %v2100_v21  ;;  %v2076_v24 = vmul.f32 %v5199_v22, %v2060_v19  ;;  %v5082_v19 = vld [vmem:[#allocation4 + $0x7c] ss:$28 sps:$4 sm:$0xff]  }
 0x325   :  { %v5201_v18 = vpop.eup %5200  ;;  %2312 = vmatprep.mubr.bf16.mxu1 %v5296_v44  ;;  %3201 = vmatpush1.bf16.msra.mxu1 %v5050_v20  ;;  %v5058_v44 = vld [vmem:[#allocation4 + $0x2dc] ss:$28 sps:$4 sm:$0xff]  }
 0x326   :  { %4139 = vst [vmem:[%s7703_s13 + $0x78] sm:$0xff] %v5201_v18  ;;  %v2077_v26 = vmul.f32 %v5201_v18, %v2061_v10  ;;  %v2092_v23 = vadd.f32 %v2076_v24, %v6059_v8  ;;  %3202 = vmatprep.subr.bf16.mxu1 %v5058_v44  ;;  %v5067_v8 = vld [vmem:[#allocation4 + $0x324] ss:$28 sps:$4 sm:$0xff]  }
 0x327   :  { %3430 = vmatprep.subr.bf16.mxu0 %v5067_v8 }
 0x328   :  { %v2093_v27 = vadd.f32 %v2077_v26, %v6076_v45  ;;  %3994 = vst [vmem:[%s7700_s10 + $0x70] sm:$0xff] %v2092_v23  ;;  %3431 = vmatpush1.bf16.msra.mxu0 %v5065_v36 }
 0x329   :  { %3203 = vmatpush1.bf16.msra.mxu1 %v5056_v59  ;;  %3432 = vmatprep.subr.bf16.mxu0 %v5073_v0 }
 0x32a   :  { %v2101_v28 = vpack.c.bf16 %v2093_v27, %v2092_v23  ;;  %3995 = vst [vmem:[%s7700_s10 + $0x78] sm:$0xff] %v2093_v27  ;;  %3204 = vmatprep.subr.bf16.mxu1 %v5064_v35  ;;  %v5080_v27 = vld [vmem:[#allocation4 + $0x78] ss:$28 sps:$4 sm:$0xff]  }
 0x32c   :  { %2313 = vmatmul.mubr.bf16.gmra.mrb[60].mxu1 %v2101_v28  ;;  %3433 = vmatpush1.bf16.msra.mxu0 %v5071_v9 }
 0x32d   :  { %3205 = vmatpush1.bf16.msra.mxu1 %v5062_v61 }
 0x32e   :  { %3206 = vmatprep.subr.bf16.mxu1 %v5070_v5  ;;  %v5083_v5 = vld [vmem:[#allocation4 + $0xb0] ss:$28 sps:$4 sm:$0xff]  }
 0x331   :  { %3207 = vmatpush1.bf16.msra.mxu1 %v5068_v34  ;;  %v5088_v34 = vld [vmem:[#allocation4 + $0xec] ss:$28 sps:$4 sm:$0xff]  }
 0x332   :  { %3289 = vmatprep.subr.bf16.mxu1 %v5076_v39 }
 0x3c7   :  { %v2244_v45 = vpop.f32.mrb[32].mxu1 }
 0x3c8   :  { %v2245_v46 = vadd.f32 %v2244_v45, %v6141_v42  ;;  %v2246_v47 = vpop.f32.mrb[33].mxu1 }
 0x3c9   :  { %v2247_v48 = vadd.f32 %v2246_v47, %v6144_v43  ;;  %v2248_v49 = vpop.f32.mrb[34].mxu1 }
 0x3ca   :  { %v2355_v50 = vmul.f32 0.01, %v2245_v46  ;;  %v2249_v51 = vadd.f32 %v2248_v49, %v6141_v42  ;;  %v2250_v13 = vpop.f32.mrb[35].mxu1  ;;  %vm2323_vm1 = vcmp.gt.f32.partialorder %v2245_v46, 0.0 }
 0x3cb   :  { %v2356_v52 = vmul.f32 0.01, %v2247_v48  ;;  %v2251_v53 = vadd.f32 %v2250_v13, %v6144_v43  ;;  %vm2324_vm2 = vcmp.gt.f32.partialorder %v2247_v48, 0.0 }
 0x3cc   :  { %vm2325_vm3 = vcmp.gt.f32.partialorder %v2249_v51, 0.0  ;;  %v2357_v14 = vmul.f32 0.01, %v2249_v51  ;;  %v2387_v56 = vsel %vm2323_vm1, %v2245_v46, %v2355_v50 }
 0x3cd   :  { %vm2326_vm4 = vcmp.gt.f32.partialorder %v2251_v53, 0.0  ;;  %v2358_v54 = vmul.f32 0.01, %v2251_v53  ;;  %v2388_v25 = vsel %vm2324_vm2, %v2247_v48, %v2356_v52 }
 0x3ce   :  { %v2389_v57 = vsel %vm2325_vm3, %v2249_v51, %v2357_v14  ;;  %v5086_v51 = vld [vmem:[#allocation4 + $0xe8] ss:$28 sps:$4 sm:$0xff]  }
 0x3cf   :  { %v6150_v58 = vpack.c.bf16 %v2389_v57, %v2387_v56  ;;  %v2390_v62 = vsel %vm2326_vm4, %v2251_v53, %v2358_v54  ;;  %v2254_v55 = vpop.f32.mrb[36].mxu1  ;;  %v5091_v53 = vld [vmem:[#allocation4 + $0x124] ss:$28 sps:$4 sm:$0xff]  }
 0x3d0   :  { %v6152_v3 = vpack.c.bf16 %v2390_v62, %v2388_v25  ;;  %v2255_v38 = vadd.f32 %v2254_v55, %v6141_v42  ;;  %v2256_v37 = vpop.f32.mrb[37].mxu1  ;;  %v5089_v55 = vld [vmem:[#allocation4 + $0x120] ss:$28 sps:$4 sm:$0xff]  }
 0x3d1   :  { %v2257_v1 = vadd.f32 %v2256_v37, %v6144_v43  ;;  %v2258_v60 = vpop.f32.mrb[38].mxu1  ;;  %v5094_v37 = vld [vmem:[#allocation4 + $0x15c] ss:$28 sps:$4 sm:$0xff]  }
 0x3d2   :  { %v2359_v4 = vmul.f32 0.01, %v2255_v38  ;;  %v2259_v6 = vadd.f32 %v2258_v60, %v6141_v42  ;;  %v2260_v7 = vpop.f32.mrb[39].mxu1  ;;  %3208 = vmatprep.mubr.bf16.mxu1 %v6152_v3  ;;  %3434 = vmatprep.mubr.bf16.mxu0 %v6152_v3  ;;  %vm2327_vm5 = vcmp.gt.f32.partialorder %v2255_v38, 0.0 }
 0x3d3   :  { %v2360_v11 = vmul.f32 0.01, %v2257_v1  ;;  %v2261_v12 = vadd.f32 %v2260_v7, %v6144_v43  ;;  %3209 = vmatmul.mubr.bf16.vlgmr.msra.gmra.mrb[64].mxu1 %v6150_v58  ;;  %3435 = vmatmul.mubr.bf16.vlgmr.msra.gmra.mrb[32].mxu0 %v6150_v58  ;;  %vm2328_vm6 = vcmp.gt.f32.partialorder %v2257_v1, 0.0 }
 0x3d4   :  { %vm2329_vm7 = vcmp.gt.f32.partialorder %v2259_v6, 0.0  ;;  %v2361_v15 = vmul.f32 0.01, %v2259_v6  ;;  %3290 = vmatpush1.bf16.msra.mxu1 %v5074_v63  ;;  %v2391_v20 = vsel %vm2327_vm5, %v2255_v38, %v2359_v4 }
 0x3d5   :  { %vm2330_vm8 = vcmp.gt.f32.partialorder %v2261_v12, 0.0  ;;  %v2362_v17 = vmul.f32 0.01, %v2261_v12  ;;  %3291 = vmatprep.subr.bf16.mxu1 %v5079_v2  ;;  %v2392_v41 = vsel %vm2328_vm6, %v2257_v1, %v2360_v11 }
 0x3d6   :  { %v2393_v21 = vsel %vm2329_vm7, %v2259_v6, %v2361_v15  ;;  %v5092_v15 = vld [vmem:[#allocation4 + $0x158] ss:$28 sps:$4 sm:$0xff]  }
 0x3d7   :  { %v6162_v10 = vpack.c.bf16 %v2393_v21, %v2391_v20  ;;  %v2394_v22 = vsel %vm2330_vm8, %v2261_v12, %v2362_v17  ;;  %v2264_v24 = vpop.f32.mrb[40].mxu1 }
 0x3d8   :  { %v6164_v18 = vpack.c.bf16 %v2394_v22, %v2392_v41  ;;  %v2265_v26 = vadd.f32 %v2264_v24, %v6141_v42  ;;  %v2266_v23 = vpop.f32.mrb[41].mxu1  ;;  %3292 = vmatpush1.bf16.msra.mxu1 %v5077_v16 }
 0x3d9   :  { %v2267_v28 = vadd.f32 %v2266_v23, %v6144_v43  ;;  %v2268_v44 = vpop.f32.mrb[42].mxu1  ;;  %3293 = vmatprep.subr.bf16.mxu1 %v5082_v19  ;;  %v5097_v19 = vld [vmem:[#allocation4 + $0x194] ss:$28 sps:$4 sm:$0xff]  }
 0x3da   :  { %v2363_v59 = vmul.f32 0.01, %v2265_v26  ;;  %v2269_v33 = vadd.f32 %v2268_v44, %v6141_v42  ;;  %v2270_v35 = vpop.f32.mrb[43].mxu1  ;;  %3218 = vmatprep.mubr.bf16.mxu1 %v6164_v18  ;;  %3444 = vmatprep.mubr.bf16.mxu0 %v6164_v18  ;;  %vm2331_vm9 = vcmp.gt.f32.partialorder %v2265_v26, 0.0  ;;  %v5095_v23 = vld [vmem:[#allocation4 + $0x190] ss:$28 sps:$4 sm:$0xff]  }
 0x3db   :  { %v2364_v8 = vmul.f32 0.01, %v2267_v28  ;;  %v2271_v61 = vadd.f32 %v2270_v35, %v6144_v43  ;;  %3219 = vmatmul.mubr.bf16.gmra.mrb[68].mxu1 %v6162_v10  ;;  %3445 = vmatmul.mubr.bf16.gmra.mrb[36].mxu0 %v6162_v10  ;;  %vm2332_vm10 = vcmp.gt.f32.partialorder %v2267_v28, 0.0 }
 0x3dc   :  { %vm2333_vm11 = vcmp.gt.f32.partialorder %v2269_v33, 0.0  ;;  %v2365_v36 = vmul.f32 0.01, %v2269_v33  ;;  %3294 = vmatpush1.bf16.msra.mxu1 %v5080_v27  ;;  %v2395_v9 = vsel %vm2331_vm9, %v2265_v26, %v2363_v59 }
 0x3dd   :  { %vm2334_vm12 = vcmp.gt.f32.partialorder %v2271_v61, 0.0  ;;  %v2366_v0 = vmul.f32 0.01, %v2271_v61  ;;  %3295 = vmatprep.subr.bf16.mxu1 %v5085_v31  ;;  %v2396_v40 = vsel %vm2332_vm10, %v2267_v28, %v2364_v8  ;;  %v5100_v28 = vld [vmem:[#allocation4 + $0x1cc] ss:$28 sps:$4 sm:$0xff]  }
 0x3de   :  { %v2397_v39 = vsel %vm2333_vm11, %v2269_v33, %v2365_v36 }
 0x3df   :  { %v6174_v45 = vpack.c.bf16 %v2397_v39, %v2395_v9  ;;  %v2398_v46 = vsel %vm2334_vm12, %v2271_v61, %v2366_v0  ;;  %v2274_v47 = vpop.f32.mrb[44].mxu1  ;;  %v5098_v0 = vld [vmem:[#allocation4 + $0x1c8] ss:$28 sps:$4 sm:$0xff]  }
 0x3e0   :  { %v6176_v48 = vpack.c.bf16 %v2398_v46, %v2396_v40  ;;  %v2275_v49 = vadd.f32 %v2274_v47, %v6141_v42  ;;  %v2276_v50 = vpop.f32.mrb[45].mxu1  ;;  %3296 = vmatpush1.bf16.msra.mxu1 %v5083_v5  ;;  %v5103_v39 = vld [vmem:[#allocation4 + $0x204] ss:$28 sps:$4 sm:$0xff]  }
 0x3e1   :  { %v2277_v13 = vadd.f32 %v2276_v50, %v6144_v43  ;;  %v2278_v52 = vpop.f32.mrb[46].mxu1  ;;  %3297 = vmatprep.subr.bf16.mxu1 %v5088_v34 }
 0x3e2   :  { %v2367_v14 = vmul.f32 0.01, %v2275_v49  ;;  %v2279_v54 = vadd.f32 %v2278_v52, %v6141_v42  ;;  %v2280_v56 = vpop.f32.mrb[47].mxu1  ;;  %3228 = vmatprep.mubr.bf16.mxu1 %v6176_v48  ;;  %3454 = vmatprep.mubr.bf16.mxu0 %v6176_v48  ;;  %vm2335_vm13 = vcmp.gt.f32.partialorder %v2275_v49, 0.0 }
 0x3e3   :  { %v2368_v57 = vmul.f32 0.01, %v2277_v13  ;;  %v2281_v25 = vadd.f32 %v2280_v56, %v6144_v43  ;;  %3229 = vmatmul.mubr.bf16.gmra.mrb[72].mxu1 %v6174_v45  ;;  %3455 = vmatmul.mubr.bf16.gmra.mrb[40].mxu0 %v6174_v45  ;;  %vm2336_vm14 = vcmp.gt.f32.partialorder %v2277_v13, 0.0 }
 0x3e4   :  { %vm2337_vm15 = vcmp.gt.f32.partialorder %v2279_v54, 0.0  ;;  %v2369_v62 = vmul.f32 0.01, %v2279_v54  ;;  %3298 = vmatpush1.bf16.msra.mxu1 %v5086_v51  ;;  %v2399_v63 = vsel %vm2335_vm13, %v2275_v49, %v2367_v14 }
 0x3e5   :  { %vm2338_vm0 = vcmp.gt.f32.partialorder %v2281_v25, 0.0  ;;  %v2370_v38 = vmul.f32 0.01, %v2281_v25  ;;  %3299 = vmatprep.subr.bf16.mxu1 %v5091_v53  ;;  %v2400_v60 = vsel %vm2336_vm14, %v2277_v13, %v2368_v57  ;;  %v5101_v13 = vld [vmem:[#allocation4 + $0x200] ss:$28 sps:$4 sm:$0xff]  }
 0x3e6   :  { %v2401_v1 = vsel %vm2337_vm15, %v2279_v54, %v2369_v62  ;;  %v5106_v53 = vld [vmem:[#allocation4 + $0x23c] ss:$28 sps:$4 sm:$0xff]  }
 0x3e7   :  { %v6186_v2 = vpack.c.bf16 %v2401_v1, %v2399_v63  ;;  %v2402_v4 = vsel %vm2338_vm0, %v2281_v25, %v2370_v38  ;;  %v2284_v6 = vpop.f32.mrb[48].mxu1  ;;  %v5104_v63 = vld [vmem:[#allocation4 + $0x238] ss:$28 sps:$4 sm:$0xff]  }
 0x3e8   :  { %v6188_v7 = vpack.c.bf16 %v2402_v4, %v2400_v60  ;;  %v2285_v11 = vadd.f32 %v2284_v6, %v6141_v42  ;;  %v2286_v12 = vpop.f32.mrb[49].mxu1  ;;  %3300 = vmatpush1.bf16.msra.mxu1 %v5089_v55  ;;  %v5109_v4 = vld [vmem:[#allocation4 + $0x274] ss:$28 sps:$4 sm:$0xff]  }
 0x3e9   :  { %v2287_v16 = vadd.f32 %v2286_v12, %v6144_v43  ;;  %v2288_v17 = vpop.f32.mrb[50].mxu1  ;;  %3301 = vmatprep.subr.bf16.mxu1 %v5094_v37 }
 0x3ea   :  { %v2371_v20 = vmul.f32 0.01, %v2285_v11  ;;  %v2289_v21 = vadd.f32 %v2288_v17, %v6141_v42  ;;  %v2290_v41 = vpop.f32.mrb[51].mxu1  ;;  %3238 = vmatprep.mubr.bf16.mxu1 %v6188_v7  ;;  %3464 = vmatprep.mubr.bf16.mxu0 %v6188_v7  ;;  %vm2339_vm1 = vcmp.gt.f32.partialorder %v2285_v11, 0.0 }
 0x3eb   :  { %v2372_v22 = vmul.f32 0.01, %v2287_v16  ;;  %v2291_v24 = vadd.f32 %v2290_v41, %v6144_v43  ;;  %3239 = vmatmul.mubr.bf16.gmra.mrb[76].mxu1 %v6186_v2  ;;  %3465 = vmatmul.mubr.bf16.gmra.mrb[44].mxu0 %v6186_v2  ;;  %vm2340_vm2 = vcmp.gt.f32.partialorder %v2287_v16, 0.0 }
 0x3ec   :  { %vm2341_vm3 = vcmp.gt.f32.partialorder %v2289_v21, 0.0  ;;  %v2373_v26 = vmul.f32 0.01, %v2289_v21  ;;  %3302 = vmatpush1.bf16.msra.mxu1 %v5092_v15  ;;  %v2403_v44 = vsel %vm2339_vm1, %v2285_v11, %v2371_v20 }
 0x3ed   :  { %vm2342_vm4 = vcmp.gt.f32.partialorder %v2291_v24, 0.0  ;;  %v2374_v27 = vmul.f32 0.01, %v2291_v24  ;;  %3303 = vmatprep.subr.bf16.mxu1 %v5097_v19  ;;  %v2404_v59 = vsel %vm2340_vm2, %v2287_v16, %v2372_v22  ;;  %v5107_v19 = vld [vmem:[#allocation4 + $0x270] ss:$28 sps:$4 sm:$0xff]  }
 0x3ee   :  { %v2405_v31 = vsel %vm2341_vm3, %v2289_v21, %v2373_v26  ;;  %v5112_v21 = vld [vmem:[#allocation4 + $0x2ac] ss:$28 sps:$4 sm:$0xff]  }
 0x3ef   :  { %v6198_v33 = vpack.c.bf16 %v2405_v31, %v2403_v44  ;;  %v2406_v35 = vsel %vm2342_vm4, %v2291_v24, %v2374_v27  ;;  %v2294_v8 = vpop.f32.mrb[52].mxu1 }
 0x3f0   :  { %v6200_v61 = vpack.c.bf16 %v2406_v35, %v2404_v59  ;;  %v2295_v36 = vadd.f32 %v2294_v8, %v6141_v42  ;;  %v2296_v5 = vpop.f32.mrb[53].mxu1  ;;  %3304 = vmatpush1.bf16.msra.mxu1 %v5095_v23  ;;  %v5110_v59 = vld [vmem:[#allocation4 + $0x2a8] ss:$28 sps:$4 sm:$0xff]  }
 0x3f1   :  { %v2297_v34 = vadd.f32 %v2296_v5, %v6144_v43  ;;  %v2298_v9 = vpop.f32.mrb[54].mxu1  ;;  %3305 = vmatprep.subr.bf16.mxu1 %v5100_v28 }
 0x3f2   :  { %v2375_v40 = vmul.f32 0.01, %v2295_v36  ;;  %v2299_v46 = vadd.f32 %v2298_v9, %v6141_v42  ;;  %v2300_v47 = vpop.f32.mrb[55].mxu1  ;;  %3248 = vmatprep.mubr.bf16.mxu1 %v6200_v61  ;;  %3474 = vmatprep.mubr.bf16.mxu0 %v6200_v61  ;;  %vm2343_vm5 = vcmp.gt.f32.partialorder %v2295_v36, 0.0 }
 0x3f3   :  { %v2376_v49 = vmul.f32 0.01, %v2297_v34  ;;  %v2301_v50 = vadd.f32 %v2300_v47, %v6144_v43  ;;  %3249 = vmatmul.mubr.bf16.gmra.mrb[80].mxu1 %v6198_v33  ;;  %3475 = vmatmul.mubr.bf16.gmra.mrb[48].mxu0 %v6198_v33  ;;  %vm2344_vm6 = vcmp.gt.f32.partialorder %v2297_v34, 0.0  ;;  %v5118_v47 = vld [vmem:[#allocation4 + $0x31c] ss:$28 sps:$4 sm:$0xff]  }
 0x3f4   :  { %vm2345_vm7 = vcmp.gt.f32.partialorder %v2299_v46, 0.0  ;;  %v2377_v51 = vmul.f32 0.01, %v2299_v46  ;;  %3306 = vmatpush1.bf16.msra.mxu1 %v5098_v0  ;;  %v2407_v14 = vsel %vm2343_vm5, %v2295_v36, %v2375_v40  ;;  %v5115_v36 = vld [vmem:[#allocation4 + $0x2e4] ss:$28 sps:$4 sm:$0xff]  }
 0x3f5   :  { %vm2346_vm8 = vcmp.gt.f32.partialorder %v2301_v50, 0.0  ;;  %v2378_v52 = vmul.f32 0.01, %v2301_v50  ;;  %3307 = vmatprep.subr.bf16.mxu1 %v5103_v39  ;;  %v2408_v56 = vsel %vm2344_vm6, %v2297_v34, %v2376_v49 }
 0x3f6   :  { %v2409_v54 = vsel %vm2345_vm7, %v2299_v46, %v2377_v51  ;;  %v5113_v46 = vld [vmem:[#allocation4 + $0x2e0] ss:$28 sps:$4 sm:$0xff]  }
 0x3f7   :  { %v6210_v57 = vpack.c.bf16 %v2409_v54, %v2407_v14  ;;  %v2410_v25 = vsel %vm2346_vm8, %v2301_v50, %v2378_v52  ;;  %v2304_v62 = vpop.f32.mrb[56].mxu1  ;;  %v5121_v14 = vld [vmem:[#allocation4 + $0x354] ss:$28 sps:$4 sm:$0xff]  }
 0x3f8   :  { %v6212_v55 = vpack.c.bf16 %v2410_v25, %v2408_v56  ;;  %v2305_v38 = vadd.f32 %v2304_v62, %v6141_v42  ;;  %v2306_v37 = vpop.f32.mrb[57].mxu1  ;;  %3308 = vmatpush1.bf16.msra.mxu1 %v5101_v13  ;;  %v5119_v54 = vld [vmem:[#allocation4 + $0x350] ss:$28 sps:$4 sm:$0xff]   ;;  %v5122_v56 = vld [vmem:[#allocation4 + $0x1d8] ss:$28 sps:$4 sm:$0xff]  }
 0x3f9   :  { %v2307_v1 = vadd.f32 %v2306_v37, %v6144_v43  ;;  %v2308_v60 = vpop.f32.mrb[58].mxu1  ;;  %3309 = vmatprep.subr.bf16.mxu1 %v5106_v53  ;;  %v5116_v53 = vld [vmem:[#allocation4 + $0x318] ss:$28 sps:$4 sm:$0xff]   ;;  %v5124_v62 = vld [vmem:[#allocation4 + $0x210] ss:$28 sps:$4 sm:$0xff]  }
 0x3fa   :  { %v2379_v6 = vmul.f32 0.01, %v2305_v38  ;;  %v2309_v11 = vadd.f32 %v2308_v60, %v6141_v42  ;;  %v2310_v12 = vpop.f32.mrb[59].mxu1  ;;  %3258 = vmatprep.mubr.bf16.mxu1 %v6212_v55  ;;  %3484 = vmatprep.mubr.bf16.mxu0 %v6212_v55  ;;  %vm2347_vm9 = vcmp.gt.f32.partialorder %v2305_v38, 0.0  ;;  %v5123_v25 = vld [vmem:[#allocation4 + $0x18] ss:$28 sps:$4 sm:$0xff]  }
 0x3fb   :  { %v2380_v15 = vmul.f32 0.01, %v2307_v1  ;;  %v2311_v16 = vadd.f32 %v2310_v12, %v6144_v43  ;;  %3259 = vmatmul.mubr.bf16.gmra.mrb[84].mxu1 %v6210_v57  ;;  %3485 = vmatmul.mubr.bf16.gmra.mrb[52].mxu0 %v6210_v57  ;;  %vm2348_vm10 = vcmp.gt.f32.partialorder %v2307_v1, 0.0  ;;  %v5126_v37 = vld [vmem:[#allocation4 + $0x248] ss:$28 sps:$4 sm:$0xff]  }
 0x3fc   :  { %vm2349_vm11 = vcmp.gt.f32.partialorder %v2309_v11, 0.0  ;;  %v2381_v17 = vmul.f32 0.01, %v2309_v11  ;;  %3310 = vmatpush1.bf16.msra.mxu1 %v5104_v63  ;;  %v2411_v41 = vsel %vm2347_vm9, %v2305_v38, %v2379_v6  ;;  %v5125_v38 = vld [vmem:[#allocation4 + $0x50] ss:$28 sps:$4 sm:$0xff]  }
 0x3fd   :  { %vm2350_vm12 = vcmp.gt.f32.partialorder %v2311_v16, 0.0  ;;  %v2382_v20 = vmul.f32 0.01, %v2311_v16  ;;  %3311 = vmatprep.subr.bf16.mxu1 %v5109_v4  ;;  %v2412_v24 = vsel %vm2348_vm10, %v2307_v1, %v2380_v15  ;;  %v5127_v63 = vld [vmem:[#allocation4 + $0x88] ss:$28 sps:$4 sm:$0xff]  }
 0x3fe   :  { %v2413_v22 = vsel %vm2349_vm11, %v2309_v11, %v2381_v17  ;;  %v5128_v1 = vld [vmem:[#allocation4 + $0x280] ss:$28 sps:$4 sm:$0xff]   ;;  %v5130_v4 = vld [vmem:[#allocation4 + $0x2b8] ss:$28 sps:$4 sm:$0xff]   ;;  %v5132_v11 = vld [vmem:[#allocation4 + $0x2f0] ss:$28 sps:$4 sm:$0xff]  }
 0x3ff   :  { %v6222_v26 = vpack.c.bf16 %v2413_v22, %v2411_v41  ;;  %v2414_v23 = vsel %vm2350_vm12, %v2311_v16, %v2382_v20  ;;  %v2314_v27 = vpop.f32.mrb[60].mxu1  ;;  %v5129_v60 = vld [vmem:[#allocation4 + $0xc0] ss:$28 sps:$4 sm:$0xff]   ;;  %v5131_v6 = vld [vmem:[#allocation4 + $0xf8] ss:$28 sps:$4 sm:$0xff]  }
 0x400   :  { %v6224_v28 = vpack.c.bf16 %v2414_v23, %v2412_v24  ;;  %v2315_v44 = vadd.f32 %v2314_v27, %v6141_v42  ;;  %v2316_v31 = vpop.f32.mrb[61].mxu1  ;;  %3312 = vmatpush1.bf16.msra.mxu1 %v5107_v19  ;;  %v5133_v12 = vld [vmem:[#allocation4 + $0x130] ss:$28 sps:$4 sm:$0xff]   ;;  %v5134_v15 = vld [vmem:[#allocation4 + $0x328] ss:$28 sps:$4 sm:$0xff]  }
 0x401   :  { %v2317_v35 = vadd.f32 %v2316_v31, %v6144_v43  ;;  %v2318_v8 = vpop.f32.mrb[62].mxu1  ;;  %3313 = vmatprep.subr.bf16.mxu1 %v5112_v21  ;;  %v5135_v16 = vld [vmem:[#allocation4 + $0x168] ss:$28 sps:$4 sm:$0xff]   ;;  %v5136_v17 = vld [vmem:[#allocation4 + $0x360] ss:$28 sps:$4 sm:$0xff]  }
 0x402   :  { %v2383_v5 = vmul.f32 0.01, %v2315_v44  ;;  %v2319_v0 = vadd.f32 %v2318_v8, %v6141_v42  ;;  %v2320_v34 = vpop.f32.mrb[63].mxu1  ;;  %3268 = vmatprep.mubr.bf16.mxu1 %v6224_v28  ;;  %3494 = vmatprep.mubr.bf16.mxu0 %v6224_v28  ;;  %vm2351_vm13 = vcmp.gt.f32.partialorder %v2315_v44, 0.0  ;;  %v5137_v19 = vld [vmem:[#allocation4 + $0x1a0] ss:$28 sps:$4 sm:$0xff]  }
 0x403   :  { %v2384_v9 = vmul.f32 0.01, %v2317_v35  ;;  %v2321_v39 = vadd.f32 %v2320_v34, %v6144_v43  ;;  %3269 = vmatmul.mubr.bf16.gmra.mrb[88].mxu1 %v6222_v26  ;;  %3495 = vmatmul.mubr.bf16.gmra.mrb[56].mxu0 %v6222_v26  ;;  %vm2352_vm14 = vcmp.gt.f32.partialorder %v2317_v35, 0.0 }
 0x404   :  { %vm2353_vm15 = vcmp.gt.f32.partialorder %v2319_v0, 0.0  ;;  %v2385_v40 = vmul.f32 0.01, %v2319_v0  ;;  %3314 = vmatpush1.bf16.msra.mxu1 %v5110_v59  ;;  %v2415_v49 = vsel %vm2351_vm13, %v2315_v44, %v2383_v5 }
 0x405   :  { %vm2354_vm0 = vcmp.gt.f32.partialorder %v2321_v39, 0.0  ;;  %v2386_v42 = vmul.f32 0.01, %v2321_v39  ;;  %3315 = vmatprep.subr.bf16.mxu1 %v5115_v36  ;;  %v2416_v51 = vsel %vm2352_vm14, %v2317_v35, %v2384_v9 }
 0x406   :  { %v2417_v50 = vsel %vm2353_vm15, %v2319_v0, %v2385_v40 }
 0x407   :  { %v6234_v13 = vpack.c.bf16 %v2417_v50, %v2415_v49  ;;  %v2418_v52 = vsel %vm2354_vm0, %v2321_v39, %v2386_v42 }
 0x408   :  { %v6236_v43 = vpack.c.bf16 %v2418_v52, %v2416_v51  ;;  %3316 = vmatpush1.bf16.msra.mxu1 %v5113_v46 }
 0x409   :  { %3317 = vmatprep.subr.bf16.mxu1 %v5118_v47 }
 0x40a   :  { %3278 = vmatprep.mubr.bf16.mxu1 %v6236_v43  ;;  %3504 = vmatprep.mubr.bf16.mxu0 %v6236_v43 }
 0x40b   :  { %3279 = vmatmul.mubr.bf16.gmra.mrb[92].mxu1 %v6234_v13  ;;  %3505 = vmatmul.mubr.bf16.gmra.mrb[60].mxu0 %v6234_v13 }
 0x40c   :  { %3318 = vmatpush1.bf16.msra.mxu1 %v5116_v53  ;;  %3321 = vmatprep.mubr.bf16.mxu1 %v6152_v3 }
 0x40d   :  { %3319 = vmatprep.subr.bf16.mxu1 %v5121_v14 }
 0x410   :  { %3320 = vmatpush1.bf16.msra.mxu1 %v5119_v54 }
 0x411   :  { %4480 = vmatprep.subr.bf16.mxu1 %v5122_v56 }
 0x413   :  { %3322 = vmatmul.mubr.bf16.vlgmr.msra.gmra.mrb[96].mxu1 %v6150_v58 }
 0x414   :  { %3331 = vmatprep.mubr.bf16.mxu1 %v6164_v18  ;;  %4481 = vmatpush3.bf16.msra.mxu1 %v5123_v25 }
 0x415   :  { %4482 = vmatprep.subr.bf16.mxu1 %v5124_v62 }
 0x418   :  { %4483 = vmatpush3.bf16.msra.mxu1 %v5125_v38 }
 0x419   :  { %4484 = vmatprep.subr.bf16.mxu1 %v5126_v37 }
 0x41b   :  { %3332 = vmatmul.mubr.bf16.gmra.mrb[100].mxu1 %v6162_v10 }
 0x41c   :  { %3341 = vmatprep.mubr.bf16.mxu1 %v6176_v48  ;;  %4485 = vmatpush3.bf16.msra.mxu1 %v5127_v63 }
 0x41d   :  { %4486 = vmatprep.subr.bf16.mxu1 %v5128_v1 }
 0x420   :  { %4487 = vmatpush3.bf16.msra.mxu1 %v5129_v60 }
 0x421   :  { %4488 = vmatprep.subr.bf16.mxu1 %v5130_v4 }
 0x423   :  { %3342 = vmatmul.mubr.bf16.gmra.mrb[104].mxu1 %v6174_v45 }
 0x424   :  { %3351 = vmatprep.mubr.bf16.mxu1 %v6188_v7  ;;  %4489 = vmatpush3.bf16.msra.mxu1 %v5131_v6 }
 0x425   :  { %4490 = vmatprep.subr.bf16.mxu1 %v5132_v11 }
 0x428   :  { %4491 = vmatpush3.bf16.msra.mxu1 %v5133_v12 }
 0x429   :  { %4492 = vmatprep.subr.bf16.mxu1 %v5134_v15 }
 0x42b   :  { %3352 = vmatmul.mubr.bf16.gmra.mrb[108].mxu1 %v6186_v2 }
 0x42c   :  { %3361 = vmatprep.mubr.bf16.mxu1 %v6200_v61  ;;  %4493 = vmatpush3.bf16.msra.mxu1 %v5135_v16 }
 0x42d   :  { %4494 = vmatprep.subr.bf16.mxu1 %v5136_v17 }
 0x430   :  { %4495 = vmatpush3.bf16.msra.mxu1 %v5137_v19 }
 0x433   :  { %3362 = vmatmul.mubr.bf16.gmra.mrb[112].mxu1 %v6198_v33 }
 0x434   :  { %3371 = vmatprep.mubr.bf16.mxu1 %v6212_v55 }
 0x43b   :  { %3372 = vmatmul.mubr.bf16.gmra.mrb[116].mxu1 %v6210_v57 }
 0x43c   :  { %3381 = vmatprep.mubr.bf16.mxu1 %v6224_v28 }
 0x443   :  { %3382 = vmatmul.mubr.bf16.gmra.mrb[120].mxu1 %v6222_v26 }
 0x444   :  { %3391 = vmatprep.mubr.bf16.mxu1 %v6236_v43 }
 0x44b   :  { %3392 = vmatmul.mubr.bf16.gmra.mrb[124].mxu1 %v6234_v13 }
 0x44c   :  { %3547 = vmatprep.mubr.bf16.mxu1 %v6152_v3 }
 0x453   :  { %3548 = vmatmul.mubr.bf16.vlgmr.msra.gmra.mrb[128].mxu1 %v6150_v58 }
 0x454   :  { %3555 = vmatprep.mubr.bf16.mxu1 %v6164_v18 }
 0x45b   :  { %3556 = vmatmul.mubr.bf16.gmra.mrb[132].mxu1 %v6162_v10 }
 0x45c   :  { %3563 = vmatprep.mubr.bf16.mxu1 %v6176_v48 }
 0x463   :  { %3564 = vmatmul.mubr.bf16.gmra.mrb[136].mxu1 %v6174_v45 }
 0x464   :  { %3571 = vmatprep.mubr.bf16.mxu1 %v6188_v7 }
 0x46b   :  { %3572 = vmatmul.mubr.bf16.gmra.mrb[140].mxu1 %v6186_v2 }
 0x46c   :  { %3579 = vmatprep.mubr.bf16.mxu1 %v6200_v61 }
 0x473   :  { %3580 = vmatmul.mubr.bf16.gmra.mrb[144].mxu1 %v6198_v33 }
 0x474   :  { %3587 = vmatprep.mubr.bf16.mxu1 %v6212_v55 }
 0x47b   :  { %3588 = vmatmul.mubr.bf16.gmra.mrb[148].mxu1 %v6210_v57 }
 0x47c   :  { %3595 = vmatprep.mubr.bf16.mxu1 %v6224_v28 }
 0x483   :  { %3596 = vmatmul.mubr.bf16.gmra.mrb[152].mxu1 %v6222_v26 }
 0x484   :  { %3603 = vmatprep.mubr.bf16.mxu1 %v6236_v43 }
 0x48b   :  { %3604 = vmatmul.mubr.bf16.gmra.mrb[156].mxu1 %v6234_v13 }
 0x4a6   :  { %v6274_v58 = vpop.f32.mrb[64].mxu1  ;;  %v6276_v3 = vpop.f32.mrb[32].mxu0 }
 0x4a7   :  { %v6278_v10 = vpop.f32.mrb[65].mxu1  ;;  %v6280_v18 = vpop.f32.mrb[33].mxu0 }
 0x4a8   :  { %v6282_v45 = vpop.f32.mrb[66].mxu1  ;;  %v6284_v48 = vpop.f32.mrb[34].mxu0 }
 0x4a9   :  { %v6286_v2 = vpop.f32.mrb[67].mxu1  ;;  %v6288_v7 = vpop.f32.mrb[35].mxu0 }
 0x4ae   :  { %v6290_v33 = vpop.f32.mrb[68].mxu1  ;;  %v6292_v61 = vpop.f32.mrb[36].mxu0 }
 0x4af   :  { %v6294_v57 = vpop.f32.mrb[69].mxu1  ;;  %v6296_v55 = vpop.f32.mrb[37].mxu0 }
 0x4b0   :  { %v6298_v20 = vpop.f32.mrb[70].mxu1  ;;  %v6300_v21 = vpop.f32.mrb[38].mxu0 }
 0x4b1   :  { %v6302_v41 = vpop.f32.mrb[71].mxu1  ;;  %v6304_v22 = vpop.f32.mrb[39].mxu0 }
 0x4b6   :  { %v6306_v24 = vpop.f32.mrb[72].mxu1  ;;  %v6308_v26 = vpop.f32.mrb[40].mxu0 }
 0x4b7   :  { %v6310_v23 = vpop.f32.mrb[73].mxu1  ;;  %v6312_v27 = vpop.f32.mrb[41].mxu0 }
 0x4b8   :  { %v6314_v28 = vpop.f32.mrb[74].mxu1  ;;  %v6316_v44 = vpop.f32.mrb[42].mxu0 }
 0x4b9   :  { %v6318_v31 = vpop.f32.mrb[75].mxu1  ;;  %v6320_v59 = vpop.f32.mrb[43].mxu0 }
 0x4be   :  { %v6322_v35 = vpop.f32.mrb[76].mxu1  ;;  %v6324_v8 = vpop.f32.mrb[44].mxu0 }
 0x4bf   :  { %v6326_v36 = vpop.f32.mrb[77].mxu1  ;;  %v6328_v5 = vpop.f32.mrb[45].mxu0 }
 0x4c0   :  { %v6330_v0 = vpop.f32.mrb[78].mxu1  ;;  %v6332_v34 = vpop.f32.mrb[46].mxu0 }
 0x4c1   :  { %v6334_v9 = vpop.f32.mrb[79].mxu1  ;;  %v6336_v39 = vpop.f32.mrb[47].mxu0 }
 0x4c6   :  { %v6338_v40 = vpop.f32.mrb[80].mxu1  ;;  %v6340_v46 = vpop.f32.mrb[48].mxu0 }
 0x4c7   :  { %v6342_v42 = vpop.f32.mrb[81].mxu1  ;;  %v6344_v47 = vpop.f32.mrb[49].mxu0 }
 0x4c8   :  { %v6346_v49 = vpop.f32.mrb[82].mxu1  ;;  %v6348_v50 = vpop.f32.mrb[50].mxu0 }
 0x4c9   :  { %v6350_v51 = vpop.f32.mrb[83].mxu1  ;;  %v6352_v13 = vpop.f32.mrb[51].mxu0 }
 0x4ce   :  { %v6354_v52 = vpop.f32.mrb[84].mxu1  ;;  %v6356_v43 = vpop.f32.mrb[52].mxu0 }
 0x4cf   :  { %7773 = vst [vmem:[#allocation8_spill] sm:$0xff] %v6354_v52  ;;  %7774 = vst [vmem:[#allocation9_spill] sm:$0xff] %v6356_v43  ;;  %v6358_v53 = vpop.f32.mrb[85].mxu1  ;;  %v6360_v14 = vpop.f32.mrb[53].mxu0 }
 0x4d0   :  { %7775 = vst [vmem:[#allocation10_spill] sm:$0xff] %v6358_v53  ;;  %7776 = vst [vmem:[#allocation11_spill] sm:$0xff] %v6360_v14  ;;  %v6362_v54 = vpop.f32.mrb[86].mxu1  ;;  %v6364_v56 = vpop.f32.mrb[54].mxu0  ;;  %v2583_v14 = vsub.s32 4, %v5754_v29  ;;  %v2587_v53 = vsub.s32 5, %v5754_v29 }
 0x4d1   :  { %7777 = vst [vmem:[#allocation12_spill] sm:$0xff] %v6362_v54  ;;  %7778 = vst [vmem:[#allocation13_spill] sm:$0xff] %v6364_v56  ;;  %v6366_v25 = vpop.f32.mrb[87].mxu1  ;;  %v6368_v62 = vpop.f32.mrb[55].mxu0  ;;  %v2563_v54 = vld [vmem:[%s7699_s9] sm:$0xff] }
 0x4d2   :  { %7779 = vst [vmem:[#allocation14_spill] sm:$0xff] %v6366_v25  ;;  %7780 = vst [vmem:[#allocation15_spill] sm:$0xff] %v6368_v62 }
 0x4d6   :  { %v6370_v38 = vpop.f32.mrb[88].mxu1  ;;  %v6372_v37 = vpop.f32.mrb[56].mxu0 }
 0x4d7   :  { %7781 = vst [vmem:[#allocation16_spill] sm:$0xff] %v6370_v38  ;;  %7782 = vst [vmem:[#allocation17_spill] sm:$0xff] %v6372_v37  ;;  %v6374_v63 = vpop.f32.mrb[89].mxu1  ;;  %v6376_v1 = vpop.f32.mrb[57].mxu0 }
 0x4d8   :  { %7783 = vst [vmem:[#allocation18_spill] sm:$0xff] %v6374_v63  ;;  %7784 = vst [vmem:[#allocation19_spill] sm:$0xff] %v6376_v1  ;;  %v6378_v60 = vpop.f32.mrb[90].mxu1  ;;  %v6380_v4 = vpop.f32.mrb[58].mxu0 }
 0x4d9   :  { %7785 = vst [vmem:[#allocation20_spill] sm:$0xff] %v6378_v60  ;;  %7786 = vst [vmem:[#allocation21_spill] sm:$0xff] %v6380_v4  ;;  %v6382_v6 = vpop.f32.mrb[91].mxu1  ;;  %v6384_v11 = vpop.f32.mrb[59].mxu0 }
 0x4da   :  { %7787 = vst [vmem:[#allocation22_spill] sm:$0xff] %v6382_v6  ;;  %7788 = vst [vmem:[#allocation23_spill] sm:$0xff] %v6384_v11 }
 0x4de   :  { %v6386_v12 = vpop.f32.mrb[92].mxu1  ;;  %v6388_v15 = vpop.f32.mrb[60].mxu0 }
 0x4df   :  { %7789 = vst [vmem:[#allocation24_spill] sm:$0xff] %v6386_v12  ;;  %7790 = vst [vmem:[#allocation25_spill] sm:$0xff] %v6388_v15  ;;  %v6390_v16 = vpop.f32.mrb[93].mxu1  ;;  %v6392_v17 = vpop.f32.mrb[61].mxu0 }
 0x4e0   :  { %7791 = vst [vmem:[#allocation26_spill] sm:$0xff] %v6390_v16  ;;  %7792 = vst [vmem:[#allocation27_spill] sm:$0xff] %v6392_v17  ;;  %v6394_v19 = vpop.f32.mrb[94].mxu1  ;;  %v6396_v37 = vpop.f32.mrb[62].mxu0 }
 0x4e1   :  { %7793 = vst [vmem:[#allocation28_spill] sm:$0xff] %v6394_v19  ;;  %7794 = vst [vmem:[#allocation29_spill] sm:$0xff] %v6396_v37  ;;  %v6398_v1 = vpop.f32.mrb[95].mxu1  ;;  %v6400_v60 = vpop.f32.mrb[63].mxu0 }
 0x4e2   :  { %7795 = vst [vmem:[#allocation30_spill] sm:$0xff] %v6398_v1  ;;  %7796 = vst [vmem:[#allocation31_spill] sm:$0xff] %v6400_v60 }
 0x4e6   :  { %v6402_v4 = vpop.f32.mrb[96].mxu1 }
 0x4e7   :  { %v6404_v6 = vpop.f32.mrb[97].mxu1 }
 0x4e8   :  { %v6406_v11 = vpop.f32.mrb[98].mxu1 }
 0x4e9   :  { %v6408_v12 = vpop.f32.mrb[99].mxu1 }
 0x4ee   :  { %v6410_v15 = vpop.f32.mrb[100].mxu1 }
 0x4ef   :  { %v6412_v16 = vpop.f32.mrb[101].mxu1 }
 0x4f0   :  { %v6414_v17 = vpop.f32.mrb[102].mxu1 }
 0x4f1   :  { %v6416_v19 = vpop.f32.mrb[103].mxu1 }
 0x4f6   :  { %v6418_v37 = vpop.f32.mrb[104].mxu1 }
 0x4f7   :  { %v6420_v1 = vpop.f32.mrb[105].mxu1 }
 0x4f8   :  { %7797 = vst [vmem:[#allocation32_spill] sm:$0xff] %v6420_v1  ;;  %v6422_v60 = vpop.f32.mrb[106].mxu1 }
 0x4f9   :  { %7798 = vst [vmem:[#allocation33_spill] sm:$0xff] %v6422_v60  ;;  %v6424_v63 = vpop.f32.mrb[107].mxu1  ;;  %v2575_v60 = vsub.s32 2, %v5754_v29 }
 0x4fa   :  { %7799 = vst [vmem:[#allocation34_spill] sm:$0xff] %v6424_v63  ;;  %v6453_v63 = vrot.slane %v2563_v54, %v2587_v53 }
 0x4fc   :  { %v6473_v53 = vadd.f32 %v6280_v18, %v6453_v63 }
 0x4fe   :  { %v6426_v38 = vpop.f32.mrb[108].mxu1  ;;  %7811 = vst [vmem:[#allocation46_spill] sm:$0xff] %v6473_v53 }
 0x4ff   :  { %7800 = vst [vmem:[#allocation35_spill] sm:$0xff] %v6426_v38  ;;  %v6428_v62 = vpop.f32.mrb[109].mxu1  ;;  %v6444_v38 = vrot.slane %v2563_v54, %v5757_v30 }
 0x500   :  { %7801 = vst [vmem:[#allocation36_spill] sm:$0xff] %v6428_v62  ;;  %v6430_v25 = vpop.f32.mrb[110].mxu1  ;;  %v6447_v62 = vrot.slane %v2563_v54, %v5763_v32 }
 0x501   :  { %7802 = vst [vmem:[#allocation37_spill] sm:$0xff] %v6430_v25  ;;  %v6432_v56 = vpop.f32.mrb[111].mxu1  ;;  %v6492_v18 = vadd.f32 %v6290_v33, %v6444_v38  ;;  %v6510_v33 = vadd.f32 %v6298_v20, %v6444_v38 }
 0x502   :  { %7803 = vst [vmem:[#allocation38_spill] sm:$0xff] %v6432_v56  ;;  %v6451_v56 = vrot.slane %v2563_v54, %v2583_v14  ;;  %v6465_v30 = vadd.f32 %v6278_v10, %v6447_v62  ;;  %v2591_v14 = vsub.s32 6, %v5754_v29  ;;  %v6486_v10 = vadd.f32 %v6286_v2, %v6447_v62 }
 0x503   :  { %7816 = vst [vmem:[#allocation51_spill] sm:$0xff] %v6492_v18  ;;  %7819 = vst [vmem:[#allocation54_spill] sm:$0xff] %v6510_v33 }
 0x504   :  { %7809 = vst [vmem:[#allocation44_spill] sm:$0xff] %v6465_v30  ;;  %v6469_v32 = vadd.f32 %v6276_v3, %v6451_v56  ;;  %7814 = vst [vmem:[#allocation49_spill] sm:$0xff] %v6486_v10 }
 0x506   :  { %v6439_v43 = vpop.f32.mrb[112].mxu1  ;;  %7810 = vst [vmem:[#allocation45_spill] sm:$0xff] %v6469_v32 }
 0x507   :  { %7804 = vst [vmem:[#allocation39_spill] sm:$0xff] %v6439_v43  ;;  %v6441_v52 = vpop.f32.mrb[113].mxu1  ;;  %v2579_v43 = vsub.s32 3, %v5754_v29  ;;  %v6496_v29 = vadd.f32 %v6294_v57, %v6447_v62  ;;  %v6514_v57 = vadd.f32 %v6302_v41, %v6447_v62 }
 0x508   :  { %7805 = vst [vmem:[#allocation40_spill] sm:$0xff] %v6441_v52  ;;  %v6449_v25 = vpop.f32.mrb[114].mxu1  ;;  %v6461_v52 = vadd.f32 %v6274_v58, %v6444_v38  ;;  %v6482_v58 = vadd.f32 %v6284_v48, %v6451_v56 }
 0x509   :  { %7806 = vst [vmem:[#allocation41_spill] sm:$0xff] %v6449_v25  ;;  %v6455_v1 = vpop.f32.mrb[115].mxu1  ;;  %7817 = vst [vmem:[#allocation52_spill] sm:$0xff] %v6496_v29  ;;  %v6500_v25 = vrot.slane %v2563_v54, %v2579_v43  ;;  %v6520_v43 = vmul.f32 %v6469_v32, %v6469_v32  ;;  %v3620_v32 = vmul.f32 %v6486_v10, %v6486_v10 }
 0x50a   :  { %7807 = vst [vmem:[#allocation42_spill] sm:$0xff] %v6455_v1  ;;  %7808 = vst [vmem:[#allocation43_spill] sm:$0xff] %v6461_v52  ;;  %v6478_v1 = vadd.f32 %v6282_v45, %v6444_v38  ;;  %v6498_v45 = vrot.slane %v2563_v54, %v2575_v60  ;;  %v3612_v2 = vmul.f32 %v6461_v52, %v6461_v52 }
 0x50b   :  { %7813 = vst [vmem:[#allocation48_spill] sm:$0xff] %v6482_v58  ;;  %7820 = vst [vmem:[#allocation55_spill] sm:$0xff] %v6514_v57  ;;  %v6524_v52 = vmul.f32 %v6473_v53, %v6473_v53  ;;  %v6544_v53 = vadd.f32 %v6292_v61, %v6451_v56  ;;  %v3633_v10 = vmul.f32 %v6510_v33, %v6510_v33 }
 0x50c   :  { %7812 = vst [vmem:[#allocation47_spill] sm:$0xff] %v6478_v1  ;;  %v3619_v41 = vmul.f32 %v6478_v1, %v6478_v1  ;;  %v3634_v61 = vmul.f32 %v6514_v57, %v6514_v57  ;;  %v6588_v57 = vadd.f32 %v6314_v28, %v6444_v38  ;;  %v6608_v28 = vadd.f32 %v6312_v27, %v6453_v63 }
 0x50d   :  { %7823 = vst [vmem:[#allocation58_spill] sm:$0xff] %v6544_v53 }
 0x50e   :  { %v6488_v3 = vpop.f32.mrb[116].mxu1  ;;  %7830 = vst [vmem:[#allocation65_spill] sm:$0xff] %v6588_v57  ;;  %7832 = vst [vmem:[#allocation67_spill] sm:$0xff] %v6608_v28 }
 0x50f   :  { %7815 = vst [vmem:[#allocation50_spill] sm:$0xff] %v6488_v3  ;;  %v6502_v48 = vpop.f32.mrb[117].mxu1  ;;  %v3613_v3 = vmul.f32 %v6465_v30, %v6465_v30  ;;  %v6528_v30 = vadd.f32 %v6288_v7, %v6453_v63  ;;  %v3626_v7 = vmul.f32 %v6492_v18, %v6492_v18  ;;  %v6564_v18 = vadd.f32 %v6304_v22, %v6453_v63 }
 0x510   :  { %7818 = vst [vmem:[#allocation53_spill] sm:$0xff] %v6502_v48  ;;  %v6516_v60 = vpop.f32.mrb[118].mxu1  ;;  %v6532_v48 = vrot.slane %v2563_v54, %v2591_v14  ;;  %v3627_v54 = vmul.f32 %v6496_v29, %v6496_v29  ;;  %v6552_v14 = vadd.f32 %v6296_v55, %v6453_v63  ;;  %v6572_v55 = vadd.f32 %v6306_v24, %v6444_v38 }
 0x511   :  { %7821 = vst [vmem:[#allocation56_spill] sm:$0xff] %v6516_v60  ;;  %7822 = vst [vmem:[#allocation57_spill] sm:$0xff] %v6528_v30  ;;  %v6530_v20 = vpop.f32.mrb[119].mxu1  ;;  %v6538_v60 = vmul.f32 %v6482_v58, %v6482_v58  ;;  %v6556_v58 = vadd.f32 %v6300_v21, %v6451_v56  ;;  %v3724_v1 = vadd.f32 %v3613_v3, %v3612_v2 }
 0x512   :  { %7824 = vst [vmem:[#allocation59_spill] sm:$0xff] %v6552_v14  ;;  %7826 = vst [vmem:[#allocation61_spill] sm:$0xff] %v6564_v18  ;;  %v6568_v29 = vmul.f32 %v6528_v30, %v6528_v30  ;;  %v6576_v21 = vadd.f32 %v6308_v26, %v6451_v56  ;;  %v6580_v3 = vadd.f32 %v6310_v23, %v6447_v62 }
 0x513   :  { %7825 = vst [vmem:[#allocation60_spill] sm:$0xff] %v6556_v58  ;;  %7827 = vst [vmem:[#allocation62_spill] sm:$0xff] %v6572_v55  ;;  %v3732_v2 = vadd.f32 %v3620_v32, %v3619_v41  ;;  %v6584_v22 = vmul.f32 %v6544_v53, %v6544_v53  ;;  %v6592_v24 = vadd.f32 %v6318_v31, %v6447_v62 }
 0x514   :  { %7828 = vst [vmem:[#allocation63_spill] sm:$0xff] %v6576_v21  ;;  %7829 = vst [vmem:[#allocation64_spill] sm:$0xff] %v6580_v3  ;;  %v6596_v26 = vadd.f32 %v3627_v54, %v3626_v7  ;;  %v6600_v23 = vmul.f32 %v6552_v14, %v6552_v14  ;;  %v6604_v32 = vmul.f32 %v6556_v58, %v6556_v58 }
 0x515   :  { %7831 = vst [vmem:[#allocation66_spill] sm:$0xff] %v6592_v24  ;;  %v6612_v31 = vadd.f32 %v3634_v61, %v3633_v10  ;;  %v6616_v7 = vmul.f32 %v6564_v18, %v6564_v18  ;;  %v6620_v54 = vadd.f32 %v6316_v44, %v6451_v56  ;;  %v6624_v58 = vadd.f32 %v6402_v4, %v6498_v45 }
 0x516   :  { %v6594_v33 = vpop.f32.mrb[120].mxu1  ;;  %v3640_v27 = vmul.f32 %v6572_v55, %v6572_v55  ;;  %v6632_v10 = vmul.f32 %v6576_v21, %v6576_v21  ;;  %v3641_v61 = vmul.f32 %v6580_v3, %v6580_v3  ;;  %v6638_v44 = vadd.f32 %v6406_v11, %v6498_v45 }
 0x517   :  { %v6610_v41 = vpop.f32.mrb[121].mxu1  ;;  %7833 = vst [vmem:[#allocation68_spill] sm:$0xff] %v6620_v54  ;;  %7834 = vst [vmem:[#allocation69_spill] sm:$0xff] %v6624_v58  ;;  %v3647_v4 = vmul.f32 %v6588_v57, %v6588_v57  ;;  %v3648_v53 = vmul.f32 %v6592_v24, %v6592_v24  ;;  %v6648_v55 = vadd.f32 %v6320_v59, %v6453_v63 }
 0x518   :  { %v6626_v14 = vpop.f32.mrb[122].mxu1  ;;  %7835 = vst [vmem:[#allocation70_spill] sm:$0xff] %v6638_v44  ;;  %v6652_v21 = vadd.f32 %v6322_v35, %v6444_v38  ;;  %v6656_v11 = vmul.f32 %v6608_v28, %v6608_v28  ;;  %v6660_v3 = vadd.f32 %v6324_v8, %v6451_v56  ;;  %v6664_v57 = vadd.f32 %v6326_v36, %v6447_v62 }
 0x519   :  { %v6640_v18 = vpop.f32.mrb[123].mxu1  ;;  %7836 = vst [vmem:[#allocation71_spill] sm:$0xff] %v6648_v55  ;;  %v6668_v59 = vadd.f32 %v6330_v0, %v6444_v38  ;;  %v6672_v35 = vmul.f32 %v6620_v54, %v6620_v54  ;;  %v6676_v24 = vadd.f32 %v6334_v9, %v6447_v62  ;;  %v3614_v8 = vmul.f32 %v6624_v58, %v6624_v58 }
 0x51a   :  { %7837 = vst [vmem:[#allocation72_spill] sm:$0xff] %v6652_v21  ;;  %7838 = vst [vmem:[#allocation73_spill] sm:$0xff] %v6660_v3  ;;  %v6682_v28 = vadd.f32 %v6404_v6, %v6500_v25  ;;  %v6684_v36 = vadd.f32 %v3641_v61, %v3640_v27  ;;  %v6688_v0 = vadd.f32 %v6328_v5, %v6453_v63 }
 0x51b   :  { %7839 = vst [vmem:[#allocation74_spill] sm:$0xff] %v6664_v57  ;;  %7840 = vst [vmem:[#allocation75_spill] sm:$0xff] %v6668_v59  ;;  %v3621_v54 = vmul.f32 %v6638_v44, %v6638_v44  ;;  %v6694_v9 = vadd.f32 %v6408_v12, %v6500_v25  ;;  %v6696_v30 = vadd.f32 %v3648_v53, %v3647_v4 }
 0x51c   :  { %7841 = vst [vmem:[#allocation76_spill] sm:$0xff] %v6676_v24  ;;  %7842 = vst [vmem:[#allocation77_spill] sm:$0xff] %v6682_v28  ;;  %v6700_v58 = vmul.f32 %v6648_v55, %v6648_v55  ;;  %v3654_v6 = vmul.f32 %v6652_v21, %v6652_v21  ;;  %v6706_v5 = vadd.f32 %v6332_v34, %v6451_v56 }
 0x51d   :  { %7843 = vst [vmem:[#allocation78_spill] sm:$0xff] %v6688_v0  ;;  %7844 = vst [vmem:[#allocation79_spill] sm:$0xff] %v6694_v9  ;;  %v6712_v61 = vmul.f32 %v6660_v3, %v6660_v3  ;;  %v3655_v12 = vmul.f32 %v6664_v57, %v6664_v57  ;;  %v3661_v53 = vmul.f32 %v6668_v59, %v6668_v59 }
 0x51e   :  { %7845 = vst [vmem:[#allocation80_spill] sm:$0xff] %v6706_v5  ;;  %v6708_v27 = vpop.f32.mrb[124].mxu1  ;;  %v6720_v4 = vadd.f32 %v6336_v39, %v6453_v63  ;;  %v3662_v34 = vmul.f32 %v6676_v24, %v6676_v24  ;;  %v3725_v55 = vadd.f32 %v3724_v1, %v3614_v8  ;;  %v3615_v3 = vmul.f32 %v6682_v28, %v6682_v28 }
 0x51f   :  { %v6722_v21 = vpop.f32.mrb[125].mxu1  ;;  %v6730_v44 = vadd.f32 %v6410_v15, %v6498_v45  ;;  %v6736_v59 = vmul.f32 %v6688_v0, %v6688_v0  ;;  %v6740_v39 = vadd.f32 %v6338_v40, %v6444_v38  ;;  %v3622_v1 = vmul.f32 %v6694_v9, %v6694_v9 }
 0x520   :  { %7846 = vst [vmem:[#allocation81_spill] sm:$0xff] %v6720_v4  ;;  %7847 = vst [vmem:[#allocation82_spill] sm:$0xff] %v6722_v21  ;;  %v6732_v57 = vpop.f32.mrb[126].mxu1  ;;  %v3733_v21 = vadd.f32 %v3732_v2, %v3621_v54  ;;  %v6748_v15 = vmul.f32 %v6706_v5, %v6706_v5  ;;  %v6752_v24 = vadd.f32 %v6340_v46, %v6451_v56 }
 0x521   :  { %7848 = vst [vmem:[#allocation83_spill] sm:$0xff] %v6730_v44  ;;  %7849 = vst [vmem:[#allocation84_spill] sm:$0xff] %v6740_v39  ;;  %v6744_v8 = vpop.f32.mrb[127].mxu1  ;;  %v6756_v0 = vadd.f32 %v6342_v42, %v6447_v62  ;;  %v6760_v40 = vadd.f32 %v6414_v17, %v6498_v45  ;;  %v6762_v2 = vadd.f32 %v3655_v12, %v3654_v6 }
 0x522   :  { %7850 = vst [vmem:[#allocation85_spill] sm:$0xff] %v6752_v24  ;;  %v6766_v54 = vmul.f32 %v6720_v4, %v6720_v4  ;;  %v6770_v5 = vadd.f32 %v6344_v47, %v6453_v63  ;;  %v6774_v46 = vadd.f32 %v6346_v49, %v6444_v38  ;;  %v6776_v42 = vadd.f32 %v3662_v34, %v3661_v53 }
 0x523   :  { %7851 = vst [vmem:[#allocation86_spill] sm:$0xff] %v6756_v0  ;;  %7852 = vst [vmem:[#allocation87_spill] sm:$0xff] %v6760_v40  ;;  %v3726_v9 = vadd.f32 %v3725_v55, %v3615_v3  ;;  %v3628_v17 = vmul.f32 %v6730_v44, %v6730_v44  ;;  %v6782_v6 = vadd.f32 %v6412_v16, %v6500_v25 }
 0x524   :  { %7853 = vst [vmem:[#allocation88_spill] sm:$0xff] %v6770_v5  ;;  %7854 = vst [vmem:[#allocation89_spill] sm:$0xff] %v6774_v46  ;;  %v3668_v12 = vmul.f32 %v6740_v39, %v6740_v39  ;;  %v6788_v47 = vadd.f32 %v6348_v50, %v6451_v56  ;;  %v6792_v49 = vadd.f32 %v6350_v51, %v6447_v62 }
 0x525   :  { %7855 = vst [vmem:[#allocation90_spill] sm:$0xff] %v6782_v6  ;;  %v3734_v53 = vadd.f32 %v3733_v21, %v3622_v1  ;;  %v6796_v55 = vmul.f32 %v6752_v24, %v6752_v24  ;;  %v3669_v16 = vmul.f32 %v6756_v0, %v6756_v0  ;;  %v3635_v3 = vmul.f32 %v6760_v40, %v6760_v40 }
 0x526   :  { %7856 = vst [vmem:[#allocation91_spill] sm:$0xff] %v6788_v47  ;;  %7857 = vst [vmem:[#allocation92_spill] sm:$0xff] %v6792_v49  ;;  %v6804_v34 = vadd.f32 %v6416_v19, %v6500_v25  ;;  %v4496_v50 = vpop.f32.mrb[128].mxu1  ;;  %v6808_v51 = vmul.f32 %v6770_v5, %v6770_v5  ;;  %v3675_v21 = vmul.f32 %v6774_v46, %v6774_v46 }
 0x527   :  { %v6814_v1 = vadd.f32 %v6352_v13, %v6453_v63  ;;  %v6818_v24 = vadd.f32 %v6418_v37, %v6498_v45  ;;  %v4497_v0 = vpop.f32.mrb[129].mxu1  ;;  %v3741_v19 = vadd.f32 %v6596_v26, %v3628_v17  ;;  %v3629_v39 = vmul.f32 %v6782_v6, %v6782_v6  ;;  %v7861_v37 = vld [vmem:[#allocation33_spill] sm:$0xff] }
 0x528   :  { %7858 = vst [vmem:[#allocation93_spill] sm:$0xff] %v6804_v34  ;;  %v4498_v4 = vadd.f32 %v4497_v0, %v4496_v50  ;;  %v4499_v5 = vpop.f32.mrb[130].mxu1  ;;  %v3727_v40 = vadd.f32 %v3726_v9, %v6520_v43  ;;  %v6826_v46 = vmul.f32 %v6788_v47, %v6788_v47  ;;  %v3676_v13 = vmul.f32 %v6792_v49, %v6792_v49 }
 0x529   :  { %7859 = vst [vmem:[#allocation94_spill] sm:$0xff] %v6814_v1  ;;  %7860 = vst [vmem:[#allocation95_spill] sm:$0xff] %v6818_v24  ;;  %v6832_v44 = vadd.f32 %v7861_v37, %v6498_v45  ;;  %v4500_v28 = vpop.f32.mrb[131].mxu1  ;;  %v3735_v26 = vadd.f32 %v3734_v53, %v6538_v60  ;;  %v3749_v17 = vadd.f32 %v6612_v31, %v3635_v3  ;;  %v7863_v60 = vld [vmem:[#allocation32_spill] sm:$0xff] }
 0x52a   :  { %v3636_v0 = vmul.f32 %v6804_v34, %v6804_v34  ;;  %v6839_v43 = vadd.f32 %v4498_v4, %v6532_v48  ;;  %v4501_v9 = vadd.f32 %v4500_v28, %v4499_v5  ;;  %v6841_v50 = vadd.f32 %v3669_v16, %v3668_v12  ;;  %v7865_v12 = vld [vmem:[#allocation8_spill] sm:$0xff]  ;;  %v7875_v34 = vld [vmem:[#allocation37_spill] sm:$0xff] }
 0x52b   :  { %7862 = vst [vmem:[#allocation33_spill] sm:$0xff] %v6832_v44  ;;  %v6845_v47 = vmul.f32 %v6814_v1, %v6814_v1  ;;  %v3642_v37 = vmul.f32 %v6818_v24, %v6818_v24  ;;  %v6851_v53 = vadd.f32 %v7863_v60, %v6500_v25  ;;  %v3742_v31 = vadd.f32 %v3741_v19, %v3629_v39  ;;  %v7867_v60 = vld [vmem:[#allocation34_spill] sm:$0xff] }
 0x52c   :  { %v6854_v3 = vadd.f32 %v4501_v9, %v6532_v48  ;;  %v3618_v28 = vmul.f32 %v6839_v43, %v6839_v43  ;;  %v3728_v5 = vadd.f32 %v3727_v40, %v6524_v52  ;;  %v6859_v4 = vadd.f32 %v3676_v13, %v3675_v21  ;;  %v7868_v40 = vld [vmem:[#allocation9_spill] sm:$0xff] }
 0x52d   :  { %7864 = vst [vmem:[#allocation32_spill] sm:$0xff] %v6851_v53  ;;  %v6863_v16 = vadd.f32 %v7865_v12, %v6444_v38  ;;  %v3649_v1 = vmul.f32 %v6832_v44, %v6832_v44  ;;  %v6869_v39 = vadd.f32 %v7867_v60, %v6500_v25  ;;  %v3750_v19 = vadd.f32 %v3749_v17, %v3636_v0  ;;  %v7870_v60 = vld [vmem:[#allocation35_spill] sm:$0xff]  ;;  %v7871_v0 = vld [vmem:[#allocation10_spill] sm:$0xff] }
 0x52e   :  { %v4502_v9 = vpop.f32.mrb[132].mxu1  ;;  %v3729_v49 = vadd.f32 %v3728_v5, %v3618_v28  ;;  %v3625_v24 = vmul.f32 %v6854_v3, %v6854_v3  ;;  %v3736_v52 = vadd.f32 %v3735_v26, %v6568_v29  ;;  %v6876_v21 = vadd.f32 %v7868_v40, %v6451_v56 }
 0x52f   :  { %7866 = vst [vmem:[#allocation8_spill] sm:$0xff] %v6863_v16  ;;  %v3757_v13 = vadd.f32 %v6684_v36, %v3642_v37  ;;  %v3643_v12 = vmul.f32 %v6851_v53, %v6851_v53  ;;  %v6883_v44 = vadd.f32 %v7870_v60, %v6498_v45  ;;  %v4503_v17 = vpop.f32.mrb[133].mxu1  ;;  %v6887_v28 = vadd.f32 %v7871_v0, %v6447_v62  ;;  %v7873_v36 = vld [vmem:[#allocation11_spill] sm:$0xff] }
 0x530   :  { %7869 = vst [vmem:[#allocation34_spill] sm:$0xff] %v6876_v21  ;;  %v4504_v5 = vadd.f32 %v4503_v17, %v4502_v9  ;;  %v4505_v29 = vpop.f32.mrb[134].mxu1  ;;  %3730 = vadd.xlane.f32.xlu0 %v3729_v49  ;;  %v3737_v26 = vadd.f32 %v3736_v52, %v3625_v24  ;;  %v3743_v40 = vadd.f32 %v3742_v31, %v6584_v22  ;;  %v7877_v9 = vld [vmem:[#allocation36_spill] sm:$0xff] }
 0x531   :  { %7872 = vst [vmem:[#allocation9_spill] sm:$0xff] %v6887_v28  ;;  %v6892_v37 = vadd.f32 %v7873_v36, %v6453_v63  ;;  %v3765_v53 = vadd.f32 %v6696_v30, %v3649_v1  ;;  %v3650_v60 = vmul.f32 %v6869_v39, %v6869_v39  ;;  %v6899_v6 = vadd.f32 %v7875_v34, %v6498_v45  ;;  %v4506_v0 = vpop.f32.mrb[135].mxu1  ;;  %v7879_v17 = vld [vmem:[#allocation12_spill] sm:$0xff] }
 0x532   :  { %v3682_v49 = vmul.f32 %v6863_v16, %v6863_v16  ;;  %v6904_v24 = vadd.f32 %v4504_v5, %v6532_v48  ;;  %v4507_v22 = vadd.f32 %v4506_v0, %v4505_v29  ;;  %3738 = vadd.xlane.f32.xlu1 %v3737_v26  ;;  %v3751_v31 = vadd.f32 %v3750_v19, %v6604_v32  ;;  %v7883_v0 = vld [vmem:[#allocation38_spill] sm:$0xff] }
 0x533   :  { %7874 = vst [vmem:[#allocation35_spill] sm:$0xff] %v6892_v37  ;;  %7876 = vst [vmem:[#allocation10_spill] sm:$0xff] %v6899_v6  ;;  %v6909_v30 = vmul.f32 %v6876_v21, %v6876_v21  ;;  %v3758_v1 = vadd.f32 %v3757_v13, %v3643_v12  ;;  %v3656_v34 = vmul.f32 %v6883_v44, %v6883_v44  ;;  %v7881_v13 = vld [vmem:[#allocation13_spill] sm:$0xff] }
 0x534   :  { %v6915_v52 = vadd.f32 %v7877_v9, %v6500_v25  ;;  %v6919_v5 = vadd.f32 %v7879_v17, %v6444_v38  ;;  %v6922_v29 = vadd.f32 %v4507_v22, %v6532_v48  ;;  %v3632_v32 = vmul.f32 %v6904_v24, %v6904_v24 }
 0x535   :  { %v3744_v19 = vadd.f32 %v3743_v40, %v6600_v23  ;;  %v6929_v12 = vadd.f32 %v7881_v13, %v6451_v56  ;;  %v3766_v26 = vadd.f32 %v3765_v53, %v3650_v60  ;;  %v3663_v36 = vmul.f32 %v6899_v6, %v6899_v6  ;;  %v7884_v13 = vld [vmem:[#allocation14_spill] sm:$0xff] }
 0x536   :  { %7878 = vst [vmem:[#allocation11_spill] sm:$0xff] %v6915_v52  ;;  %7880 = vst [vmem:[#allocation37_spill] sm:$0xff] %v6919_v5  ;;  %v6935_v9 = vadd.f32 %v7883_v0, %v6500_v25  ;;  %v3683_v22 = vmul.f32 %v6887_v28, %v6887_v28  ;;  %v4508_v17 = vpop.f32.mrb[136].mxu1  ;;  %v3639_v23 = vmul.f32 %v6922_v29, %v6922_v29 }
 0x537   :  { %7882 = vst [vmem:[#allocation36_spill] sm:$0xff] %v6929_v12  ;;  %v3745_v21 = vadd.f32 %v3744_v19, %v3632_v32  ;;  %v3752_v40 = vadd.f32 %v3751_v31, %v6616_v7  ;;  %v6944_v53 = vadd.f32 %v7884_v13, %v6447_v62  ;;  %v3773_v60 = vadd.f32 %v6762_v2, %v3656_v34  ;;  %v4509_v16 = vpop.f32.mrb[137].mxu1  ;;  %v7886_v19 = vld [vmem:[#allocation39_spill] sm:$0xff] }
 0x538   :  { %v3657_v0 = vmul.f32 %v6915_v52, %v6915_v52  ;;  %v3759_v6 = vadd.f32 %v3758_v1, %v6632_v10  ;;  %v6952_v32 = vmul.f32 %v6892_v37, %v6892_v37  ;;  %v6956_v28 = vadd.f32 %v7886_v19, %v6498_v45  ;;  %v4511_v31 = vpop.f32.mrb[138].mxu1  ;;  %v7888_v2 = vld [vmem:[#allocation15_spill] sm:$0xff] }
 0x539   :  { %7885 = vst [vmem:[#allocation12_spill] sm:$0xff] %v6944_v53  ;;  %v4510_v7 = vadd.f32 %v4509_v16, %v4508_v17  ;;  %3746 = vadd.xlane.f32.xlu0 %v3745_v21  ;;  %v3753_v13 = vadd.f32 %v3752_v40, %v3639_v23  ;;  %v6960_v34 = vadd.f32 %v7888_v2, %v6453_v63  ;;  %v4512_v1 = vpop.f32.mrb[139].mxu1  ;;  %v7890_v16 = vld [vmem:[#allocation41_spill] sm:$0xff]  ;;  %v7892_v2 = vld [vmem:[#allocation40_spill] sm:$0xff] }
 0x53a   :  { %7887 = vst [vmem:[#allocation13_spill] sm:$0xff] %v6956_v28  ;;  %v3781_v52 = vadd.f32 %v6776_v42, %v3663_v36  ;;  %v3664_v10 = vmul.f32 %v6935_v9, %v6935_v9  ;;  %v3767_v37 = vadd.f32 %v3766_v26, %v6672_v35  ;;  %v3689_v19 = vmul.f32 %v6919_v5, %v6919_v5 }
 0x53b   :  { %7889 = vst [vmem:[#allocation38_spill] sm:$0xff] %v6960_v34  ;;  %v6970_v17 = vadd.f32 %v7890_v16, %v6498_v45  ;;  %v6973_v21 = vadd.f32 %v4510_v7, %v6532_v48  ;;  %v4513_v23 = vadd.f32 %v4512_v1, %v4511_v31  ;;  %3754 = vadd.xlane.f32.xlu1 %v3753_v13 }
 0x53c   :  { %v6977_v42 = vmul.f32 %v6929_v12, %v6929_v12  ;;  %v3690_v36 = vmul.f32 %v6944_v53, %v6944_v53  ;;  %v3774_v35 = vadd.f32 %v3773_v60, %v3657_v0  ;;  %v3760_v26 = vadd.f32 %v3759_v6, %v6656_v11  ;;  %v7893_v0 = vld [vmem:[#allocation42_spill] sm:$0xff] }
 0x53d   :  { %7891 = vst [vmem:[#allocation14_spill] sm:$0xff] %v6970_v17  ;;  %v3670_v40 = vmul.f32 %v6956_v28, %v6956_v28  ;;  %v6986_v16 = vadd.f32 %v7892_v2, %v6500_v25  ;;  %v6989_v7 = vadd.f32 %v4513_v23, %v6532_v48  ;;  %v3646_v31 = vmul.f32 %v6973_v21, %v6973_v21  ;;  %v7901_v28 = vld [vmem:[#allocation56_spill] sm:$0xff] }
 0x53e   :  { %v3804_v13 = vadd.f32 %v3683_v22, %v3682_v49  ;;  %v6995_v1 = vmul.f32 %v6960_v34, %v6960_v34  ;;  %v3782_v60 = vadd.f32 %v3781_v52, %v3664_v10  ;;  %v3768_v11 = vadd.f32 %v3767_v37, %v6700_v58  ;;  %v4514_v23 = vpop.f32.mrb[140].mxu1  ;;  %v7894_v22 = vld [vmem:[#allocation16_spill] sm:$0xff]  ;;  %v7896_v52 = vld [vmem:[#allocation50_spill] sm:$0xff] }
 0x53f   :  { %v3677_v6 = vmul.f32 %v6970_v17, %v6970_v17  ;;  %v7002_v2 = vadd.f32 %v7893_v0, %v6500_v25  ;;  %v3761_v12 = vadd.f32 %v3760_v26, %v3646_v31  ;;  %v3653_v53 = vmul.f32 %v6989_v7, %v6989_v7  ;;  %v4515_v37 = vpop.f32.mrb[141].mxu1  ;;  %v7899_v17 = vld [vmem:[#allocation20_spill] sm:$0xff] }
 0x540   :  { %v3812_v49 = vadd.f32 %v3690_v36, %v3689_v19  ;;  %v7008_v34 = vadd.f32 %v7894_v22, %v6444_v38  ;;  %v7012_v58 = vadd.f32 %v7896_v52, %v6498_v45  ;;  %v3775_v10 = vadd.f32 %v3774_v35, %v6712_v61  ;;  %v4517_v5 = vpop.f32.mrb[142].mxu1  ;;  %v7897_v36 = vld [vmem:[#allocation18_spill] sm:$0xff] }
 0x541   :  { %v3789_v0 = vadd.f32 %v6841_v50, %v3670_v40  ;;  %v3671_v26 = vmul.f32 %v6986_v16, %v6986_v16  ;;  %v4516_v31 = vadd.f32 %v4515_v37, %v4514_v23  ;;  %3762 = vadd.xlane.f32.xlu0 %v3761_v12  ;;  %v3769_v19 = vadd.f32 %v3768_v11, %v3653_v53  ;;  %v4518_v50 = vpop.f32.mrb[143].mxu1  ;;  %v7903_v23 = vld [vmem:[#allocation22_spill] sm:$0xff] }
 0x542   :  { %7895 = vst [vmem:[#allocation39_spill] sm:$0xff] %v7008_v34  ;;  %v7020_v22 = vadd.f32 %v7897_v36, %v6447_v62  ;;  %v7024_v52 = vadd.f32 %v7899_v17, %v6444_v38  ;;  %v7028_v61 = vadd.f32 %v7901_v28, %v6498_v45  ;;  %v3783_v35 = vadd.f32 %v3782_v60, %v6748_v15 }
 0x543   :  { %v3797_v40 = vadd.f32 %v6859_v4, %v3677_v6  ;;  %v3678_v12 = vmul.f32 %v7002_v2, %v7002_v2  ;;  %v7035_v53 = vadd.f32 %v4516_v31, %v6532_v48  ;;  %v4519_v11 = vadd.f32 %v4518_v50, %v4517_v5  ;;  %3770 = vadd.xlane.f32.xlu1 %v3769_v19  ;;  %v7905_v4 = vld [vmem:[#allocation53_spill] sm:$0xff] }
 0x544   :  { %7898 = vst [vmem:[#allocation15_spill] sm:$0xff] %v7020_v22  ;;  %7900 = vst [vmem:[#allocation41_spill] sm:$0xff] %v7024_v52  ;;  %v3696_v17 = vmul.f32 %v7008_v34, %v7008_v34  ;;  %v7041_v28 = vadd.f32 %v7903_v23, %v6447_v62  ;;  %v3684_v15 = vmul.f32 %v7012_v58, %v7012_v58 }
 0x545   :  { %7902 = vst [vmem:[#allocation40_spill] sm:$0xff] %v7028_v61  ;;  %v7047_v60 = vadd.f32 %v7905_v4, %v6500_v25  ;;  %v3790_v6 = vadd.f32 %v3789_v0, %v3671_v26  ;;  %v7050_v37 = vadd.f32 %v4519_v11, %v6532_v48  ;;  %v3660_v5 = vmul.f32 %v7035_v53, %v7035_v53 }
 0x546   :  { %7904 = vst [vmem:[#allocation42_spill] sm:$0xff] %v7041_v28  ;;  %v3776_v31 = vadd.f32 %v3775_v10, %v6736_v59  ;;  %v3697_v19 = vmul.f32 %v7020_v22, %v7020_v22  ;;  %v3703_v36 = vmul.f32 %v7024_v52, %v7024_v52  ;;  %v3691_v50 = vmul.f32 %v7028_v61, %v7028_v61  ;;  %v4520_v11 = vpop.f32.mrb[144].mxu1 }
 0x547   :  { %7906 = vst [vmem:[#allocation16_spill] sm:$0xff] %v7047_v60  ;;  %v7063_v0 = vadd.f32 %v6530_v20, %v6500_v25  ;;  %v3798_v26 = vadd.f32 %v3797_v40, %v3678_v12  ;;  %v3667_v4 = vmul.f32 %v7050_v37, %v7050_v37  ;;  %v3784_v59 = vadd.f32 %v3783_v35, %v6766_v54  ;;  %v4521_v20 = vpop.f32.mrb[145].mxu1  ;;  %v7907_v40 = vld [vmem:[#allocation17_spill] sm:$0xff] }
 0x548   :  { %v3777_v23 = vadd.f32 %v3776_v31, %v3660_v5  ;;  %v3704_v10 = vmul.f32 %v7041_v28, %v7041_v28  ;;  %v3805_v22 = vadd.f32 %v3804_v13, %v3684_v15  ;;  %v3685_v52 = vmul.f32 %v7047_v60, %v7047_v60  ;;  %v4523_v31 = vpop.f32.mrb[146].mxu1  ;;  %v7908_v13 = vld [vmem:[#allocation19_spill] sm:$0xff] }
 0x549   :  { %v7074_v34 = vadd.f32 %v6594_v33, %v6498_v45  ;;  %v7078_v12 = vadd.f32 %v7907_v40, %v6451_v56  ;;  %v4522_v5 = vadd.f32 %v4521_v20, %v4520_v11  ;;  %v3785_v54 = vadd.f32 %v3784_v59, %v3667_v4  ;;  %v4524_v40 = vpop.f32.mrb[147].mxu1 }
 0x54a   :  { %3778 = vadd.xlane.f32.xlu0 %v3777_v23  ;;  %v3791_v35 = vadd.f32 %v3790_v6, %v6796_v55  ;;  %v7083_v15 = vadd.f32 %v7908_v13, %v6453_v63  ;;  %v3813_v28 = vadd.f32 %v3812_v49, %v3691_v50  ;;  %v3692_v33 = vmul.f32 %v7063_v0, %v7063_v0 }
 0x54b   :  { %v7089_v61 = vadd.f32 %v6626_v14, %v6498_v45  ;;  %v3820_v60 = vadd.f32 %v3697_v19, %v3696_v17  ;;  %v7092_v11 = vadd.f32 %v4522_v5, %v6532_v48  ;;  %v4525_v23 = vadd.f32 %v4524_v40, %v4523_v31  ;;  %3786 = vadd.xlane.f32.xlu1 %v3785_v54  ;;  %v7909_v14 = vld [vmem:[#allocation24_spill] sm:$0xff] }
 0x54c   :  { %v3799_v55 = vadd.f32 %v3798_v26, %v6826_v46  ;;  %v3828_v6 = vadd.f32 %v3704_v10, %v3703_v36  ;;  %v3806_v4 = vadd.f32 %v3805_v22, %v3685_v52  ;;  %v3698_v49 = vmul.f32 %v7074_v34, %v7074_v34  ;;  %v7910_v22 = vld [vmem:[#allocation26_spill] sm:$0xff]  ;;  %v7911_v10 = vld [vmem:[#allocation28_spill] sm:$0xff] }
 0x54d   :  { %v7099_v50 = vadd.f32 %v6610_v41, %v6500_v25  ;;  %v7103_v59 = vadd.f32 %v7909_v14, %v6444_v38  ;;  %v7106_v17 = vadd.f32 %v4525_v23, %v6532_v48  ;;  %v3674_v19 = vmul.f32 %v7092_v11, %v7092_v11 }
 0x54e   :  { %v3792_v46 = vadd.f32 %v3791_v35, %v6808_v51  ;;  %v7113_v52 = vadd.f32 %v7910_v22, %v6447_v62  ;;  %v3814_v36 = vadd.f32 %v3813_v28, %v3692_v33  ;;  %v3705_v41 = vmul.f32 %v7089_v61, %v7089_v61  ;;  %v4526_v5 = vpop.f32.mrb[148].mxu1  ;;  %v7912_v28 = vld [vmem:[#allocation30_spill] sm:$0xff] }
 0x54f   :  { %v7119_v26 = vadd.f32 %v6640_v18, %v6500_v25  ;;  %v7123_v20 = vadd.f32 %v7911_v10, %v6444_v38  ;;  %v3681_v51 = vmul.f32 %v7106_v17, %v7106_v17  ;;  %v3800_v54 = vadd.f32 %v3799_v55, %v6845_v47  ;;  %v4527_v33 = vpop.f32.mrb[149].mxu1 }
 0x550   :  { %v3793_v31 = vadd.f32 %v3792_v46, %v3674_v19  ;;  %v7130_v35 = vadd.f32 %v7912_v28, %v6447_v62  ;;  %v3821_v13 = vadd.f32 %v3820_v60, %v3698_v49  ;;  %v3699_v18 = vmul.f32 %v7099_v50, %v7099_v50  ;;  %v4529_v47 = vpop.f32.mrb[150].mxu1 }
 0x551   :  { %v3807_v40 = vadd.f32 %v3806_v4, %v6909_v30  ;;  %v3710_v38 = vmul.f32 %v7103_v59, %v7103_v59  ;;  %v7139_v23 = vadd.f32 %v6708_v27, %v6498_v45  ;;  %v4528_v14 = vadd.f32 %v4527_v33, %v4526_v5  ;;  %v4530_v19 = vpop.f32.mrb[151].mxu1  ;;  %v7913_v4 = vld [vmem:[#allocation21_spill] sm:$0xff] }
 0x552   :  { %3794 = vadd.xlane.f32.xlu0 %v3793_v31  ;;  %v3801_v55 = vadd.f32 %v3800_v54, %v3681_v51  ;;  %v3711_v62 = vmul.f32 %v7113_v52, %v7113_v52  ;;  %v3829_v60 = vadd.f32 %v3828_v6, %v3705_v41  ;;  %v3706_v49 = vmul.f32 %v7119_v26, %v7119_v26 }
 0x553   :  { %v3815_v30 = vadd.f32 %v3814_v36, %v6977_v42  ;;  %v7148_v46 = vadd.f32 %v7913_v4, %v6451_v56  ;;  %v7152_v27 = vadd.f32 %v6732_v57, %v6498_v45  ;;  %v7155_v22 = vadd.f32 %v4528_v14, %v6532_v48  ;;  %v7914_v45 = vld [vmem:[#allocation82_spill] sm:$0xff] }
 0x554   :  { %v4531_v10 = vadd.f32 %v4530_v19, %v4529_v47  ;;  %3802 = vadd.xlane.f32.xlu1 %v3801_v55  ;;  %v3717_v6 = vmul.f32 %v7123_v20, %v7123_v20  ;;  %v3718_v41 = vmul.f32 %v7130_v35, %v7130_v35  ;;  %v3822_v42 = vadd.f32 %v3821_v13, %v3699_v18 }
 0x555   :  { %v3808_v36 = vadd.f32 %v3807_v40, %v6952_v32  ;;  %v3712_v5 = vmul.f32 %v7139_v23, %v7139_v23  ;;  %v7166_v57 = vadd.f32 %v7914_v45, %v6500_v25  ;;  %v3688_v51 = vmul.f32 %v7155_v22, %v7155_v22 }
 0x556   :  { %v7169_v31 = vadd.f32 %v4531_v10, %v6532_v48  ;;  %v3700_v54 = vmul.f32 %v7078_v12, %v7078_v12  ;;  %v3836_v28 = vadd.f32 %v3711_v62, %v3710_v38  ;;  %v3830_v13 = vadd.f32 %v3829_v60, %v3706_v49  ;;  %v4532_v40 = vpop.f32.mrb[152].mxu1  ;;  %v7915_v38 = vld [vmem:[#allocation23_spill] sm:$0xff] }
 0x557   :  { %v3816_v32 = vadd.f32 %v3815_v30, %v6995_v1  ;;  %v3719_v18 = vmul.f32 %v7152_v27, %v7152_v27  ;;  %v7180_v33 = vadd.f32 %v6744_v8, %v6500_v25  ;;  %v3809_v14 = vadd.f32 %v3808_v36, %v3688_v51  ;;  %v4533_v60 = vpop.f32.mrb[153].mxu1  ;;  %v7916_v36 = vld [vmem:[#allocation25_spill] sm:$0xff] }
 0x558   :  { %v3695_v47 = vmul.f32 %v7169_v31, %v7169_v31  ;;  %v3707_v55 = vmul.f32 %v7148_v46, %v7148_v46  ;;  %v7188_v62 = vadd.f32 %v7915_v38, %v6453_v63  ;;  %v3844_v1 = vadd.f32 %v3718_v41, %v3717_v6  ;;  %v4535_v30 = vpop.f32.mrb[154].mxu1 }
 0x559   :  { %v3823_v49 = vadd.f32 %v3822_v42, %v3700_v54  ;;  %v3837_v19 = vadd.f32 %v3836_v28, %v3712_v5  ;;  %v3713_v25 = vmul.f32 %v7166_v57, %v7166_v57  ;;  %v4534_v8 = vadd.f32 %v4533_v60, %v4532_v40  ;;  %3810 = vadd.xlane.f32.xlu0 %v3809_v14  ;;  %v4536_v51 = vpop.f32.mrb[155].mxu1  ;;  %v7917_v28 = vld [vmem:[#allocation29_spill] sm:$0xff] }
 0x55a   :  { %v3817_v4 = vadd.f32 %v3816_v32, %v3695_v47  ;;  %v3701_v10 = vmul.f32 %v7083_v15, %v7083_v15  ;;  %v7196_v45 = vadd.f32 %v7916_v36, %v6451_v56  ;;  %v3831_v38 = vadd.f32 %v3830_v13, %v3707_v55  ;;  %v7918_v55 = vld [vmem:[#allocation27_spill] sm:$0xff] }
 0x55b   :  { %v3845_v6 = vadd.f32 %v3844_v1, %v3719_v18  ;;  %v3720_v41 = vmul.f32 %v7180_v33, %v7180_v33  ;;  %v7201_v42 = vadd.f32 %v4534_v8, %v6532_v48  ;;  %v4537_v5 = vadd.f32 %v4536_v51, %v4535_v30 }
 0x55c   :  { %3818 = vadd.xlane.f32.xlu1 %v3817_v4  ;;  %v3708_v54 = vmul.f32 %v7188_v62, %v7188_v62  ;;  %v7207_v32 = vadd.f32 %v7917_v28, %v6451_v56  ;;  %v3838_v40 = vadd.f32 %v3837_v19, %v3713_v25  ;;  %v3824_v18 = vadd.f32 %v3823_v49, %v3701_v10  ;;  %v7919_v25 = vld [vmem:[#allocation31_spill] sm:$0xff] }
 0x55d   :  { %v7210_v14 = vadd.f32 %v4537_v5, %v6532_v48  ;;  %v3702_v13 = vmul.f32 %v7201_v42, %v7201_v42  ;;  %v3714_v47 = vmul.f32 %v7196_v45, %v7196_v45  ;;  %v7218_v1 = vadd.f32 %v7918_v55, %v6453_v63 }
 0x55e   :  { %v3846_v60 = vadd.f32 %v3845_v6, %v3720_v41  ;;  %v4538_v8 = vpop.f32.mrb[156].mxu1  ;;  %v3832_v19 = vadd.f32 %v3831_v38, %v3708_v54  ;;  %v7224_v4 = vadd.f32 %v7919_v25, %v6453_v63  ;;  %v3721_v49 = vmul.f32 %v7207_v32, %v7207_v32 }
 0x55f   :  { %v3825_v30 = vadd.f32 %v3824_v18, %v3702_v13  ;;  %v3709_v56 = vmul.f32 %v7210_v14, %v7210_v14  ;;  %v4539_v36 = vpop.f32.mrb[157].mxu1  ;;  %v3839_v28 = vadd.f32 %v3838_v40, %v3714_v47  ;;  %v3715_v41 = vmul.f32 %v7218_v1, %v7218_v1 }
 0x560   :  { %v4540_v10 = vadd.f32 %v4539_v36, %v4538_v8  ;;  %v4541_v51 = vpop.f32.mrb[158].mxu1  ;;  %v3847_v63 = vadd.f32 %v3846_v60, %v3721_v49  ;;  %v3722_v54 = vmul.f32 %v7224_v4, %v7224_v4  ;;  %v7920_v49 = vld [vmem:[#allocation43_spill] sm:$0xff] }
 0x561   :  { %3826 = vadd.xlane.f32.xlu0 %v3825_v30  ;;  %v3833_v5 = vadd.f32 %v3832_v19, %v3709_v56  ;;  %v4542_v6 = vpop.f32.mrb[159].mxu1  ;;  %v3840_v40 = vadd.f32 %v3839_v28, %v3715_v41  ;;  %v7922_v28 = vld [vmem:[#allocation69_spill] sm:$0xff] }
 0x562   :  { %v7231_v13 = vadd.f32 %v4540_v10, %v6532_v48  ;;  %v4543_v38 = vadd.f32 %v4542_v6, %v4541_v51  ;;  %v3848_v30 = vadd.f32 %v3847_v63, %v3722_v54  ;;  %v7921_v51 = vld [vmem:[#allocation44_spill] sm:$0xff]  ;;  %v7923_v41 = vld [vmem:[#allocation77_spill] sm:$0xff] }
 0x563   :  { %3834 = vadd.xlane.f32.xlu1 %v3833_v5  ;;  %v7924_v54 = vld [vmem:[#allocation45_spill] sm:$0xff] }
 0x564   :  { %v7236_v18 = vadd.f32 %v4543_v38, %v6532_v48  ;;  %v3716_v55 = vmul.f32 %v7231_v13, %v7231_v13 }
 0x566   :  { %v3841_v47 = vadd.f32 %v3840_v40, %v3716_v55  ;;  %v3723_v8 = vmul.f32 %v7236_v18, %v7236_v18  ;;  %v7925_v40 = vld [vmem:[#allocation46_spill] sm:$0xff] }
 0x568   :  { %3842 = vadd.xlane.f32.xlu0 %v3841_v47  ;;  %v3849_v56 = vadd.f32 %v3848_v30, %v3723_v8  ;;  %v7926_v30 = vld [vmem:[#allocation47_spill] sm:$0xff] }
 0x56a   :  { %3850 = vadd.xlane.f32.xlu1 %v3849_v56 }
 0x5bd   :  { %v3731_v19 = vpop.xlane.xlu0 %3730 }
 0x5be   :  { %5202 = vrsqrt.f32 %v3731_v19  ;;  %v7927_v19 = vld [vmem:[#allocation49_spill] sm:$0xff] }
 0x5bf   :  { %v3739_v60 = vpop.xlane.xlu1 %3738 }
 0x5c0   :  { %5204 = vrsqrt.f32 %v3739_v60  ;;  %v7928_v60 = vld [vmem:[#allocation70_spill] sm:$0xff] }
 0x5c6   :  { %v3747_v25 = vpop.xlane.xlu0 %3746 }
 0x5c7   :  { %5206 = vrsqrt.f32 %v3747_v25 }
 0x5c8   :  { %v3755_v48 = vpop.xlane.xlu1 %3754  ;;  %v5203_v36 = vpop.eup %5202 }
 0x5c9   :  { %5208 = vrsqrt.f32 %v3755_v48  ;;  %v3868_v10 = vmul.f32 %v5203_v36, %v7920_v49  ;;  %v3869_v5 = vmul.f32 %v5203_v36, %v7921_v51  ;;  %v3870_v6 = vmul.f32 %v5203_v36, %v7922_v28  ;;  %v7929_v48 = vld [vmem:[#allocation79_spill] sm:$0xff]  ;;  %v7930_v49 = vld [vmem:[#allocation48_spill] sm:$0xff]  ;;  %v7931_v51 = vld [vmem:[#allocation57_spill] sm:$0xff] }
 0x5ca   :  { %v3871_v38 = vmul.f32 %v5203_v36, %v7923_v41  ;;  %v5205_v63 = vpop.eup %5204  ;;  %v3872_v55 = vmul.f32 %v5203_v36, %v7924_v54  ;;  %v3873_v47 = vmul.f32 %v5203_v36, %v7925_v40  ;;  %v3874_v8 = vmul.f32 %v5203_v36, %v6839_v43  ;;  %v7933_v54 = vld [vmem:[#allocation52_spill] sm:$0xff]  ;;  %v7934_v40 = vld [vmem:[#allocation83_spill] sm:$0xff] }
 0x5cb   :  { %3996 = vst [vmem:[%s7701_s11] sm:$0xff] %v3868_v10  ;;  %3997 = vst [vmem:[%s7701_s11 + $0x8] sm:$0xff] %v3869_v5  ;;  %v3875_v56 = vmul.f32 %v5205_v63, %v7926_v30  ;;  %v3876_v43 = vmul.f32 %v5205_v63, %v7927_v19  ;;  %v3877_v25 = vmul.f32 %v5205_v63, %v7928_v60  ;;  %v7936_v19 = vld [vmem:[#allocation58_spill] sm:$0xff]  ;;  %v7937_v60 = vld [vmem:[#allocation59_spill] sm:$0xff] }
 0x5cc   :  { %3998 = vst [vmem:[%s7701_s11 + $0x10] sm:$0xff] %v3870_v6  ;;  %3999 = vst [vmem:[%s7701_s11 + $0x18] sm:$0xff] %v3871_v38  ;;  %v3878_v36 = vmul.f32 %v5205_v63, %v7929_v48  ;;  %v3879_v10 = vmul.f32 %v5205_v63, %v7930_v49  ;;  %v3880_v5 = vmul.f32 %v5205_v63, %v7931_v51  ;;  %v7932_v38 = vld [vmem:[#allocation51_spill] sm:$0xff] }
 0x5cd   :  { %4000 = vst [vmem:[%s7701_s11 + $0x20] sm:$0xff] %v3872_v55  ;;  %4001 = vst [vmem:[%s7701_s11 + $0x28] sm:$0xff] %v3873_v47  ;;  %v3881_v28 = vmul.f32 %v5205_v63, %v6854_v3  ;;  %v7940_v51 = vld [vmem:[#allocation87_spill] sm:$0xff] }
 0x5ce   :  { %4002 = vst [vmem:[%s7701_s11 + $0x30] sm:$0xff] %v3874_v8  ;;  %4003 = vst [vmem:[%s7701_s11 + $0x38] sm:$0xff] %v3875_v56  ;;  %v3763_v6 = vpop.xlane.xlu0 %3762  ;;  %v7935_v8 = vld [vmem:[#allocation90_spill] sm:$0xff] }
 0x5cf   :  { %4004 = vst [vmem:[%s7701_s11 + $0x40] sm:$0xff] %v3876_v43  ;;  %4005 = vst [vmem:[%s7701_s11 + $0x48] sm:$0xff] %v3877_v25  ;;  %5210 = vrsqrt.f32 %v3763_v6 }
 0x5d0   :  { %4006 = vst [vmem:[%s7701_s11 + $0x50] sm:$0xff] %v3878_v36  ;;  %4007 = vst [vmem:[%s7701_s11 + $0x58] sm:$0xff] %v3879_v10  ;;  %v3771_v3 = vpop.xlane.xlu1 %3770  ;;  %v7938_v36 = vld [vmem:[#allocation54_spill] sm:$0xff]  ;;  %v7939_v10 = vld [vmem:[#allocation55_spill] sm:$0xff] }
 0x5d1   :  { %4008 = vst [vmem:[%s7701_s11 + $0x60] sm:$0xff] %v3880_v5  ;;  %4009 = vst [vmem:[%s7701_s11 + $0x68] sm:$0xff] %v3881_v28  ;;  %v5207_v41 = vpop.eup %5206  ;;  %5212 = vrsqrt.f32 %v3771_v3  ;;  %v7941_v28 = vld [vmem:[#allocation93_spill] sm:$0xff]  ;;  %v7942_v3 = vld [vmem:[#allocation60_spill] sm:$0xff] }
 0x5d2   :  { %v3882_v63 = vmul.f32 %v5207_v41, %v7932_v38  ;;  %v3883_v55 = vmul.f32 %v5207_v41, %v7933_v54  ;;  %v3884_v47 = vmul.f32 %v5207_v41, %v7934_v40  ;;  %v3885_v30 = vmul.f32 %v5207_v41, %v7935_v8  ;;  %v7943_v38 = vld [vmem:[#allocation61_spill] sm:$0xff] }
 0x5d3   :  { %v5209_v56 = vpop.eup %5208  ;;  %v3886_v43 = vmul.f32 %v5207_v41, %v7936_v19  ;;  %v3887_v25 = vmul.f32 %v5207_v41, %v7937_v60  ;;  %v3888_v48 = vmul.f32 %v5207_v41, %v6904_v24  ;;  %v7946_v19 = vld [vmem:[#allocation95_spill] sm:$0xff]  ;;  %v7947_v60 = vld [vmem:[#allocation32_spill] sm:$0xff] }
 0x5d4   :  { %4010 = vst [vmem:[%s7701_s11 + $0x70] sm:$0xff] %v3882_v63  ;;  %4011 = vst [vmem:[%s7701_s11 + $0x78] sm:$0xff] %v3883_v55  ;;  %v3889_v49 = vmul.f32 %v5209_v56, %v7938_v36  ;;  %v3890_v24 = vmul.f32 %v5209_v56, %v7939_v10  ;;  %v3891_v5 = vmul.f32 %v5209_v56, %v7940_v51  ;;  %v7948_v36 = vld [vmem:[#allocation63_spill] sm:$0xff] }
 0x5d5   :  { %4012 = vst [vmem:[%s7701_s11 + $0x80] sm:$0xff] %v3884_v47  ;;  %4013 = vst [vmem:[%s7701_s11 + $0x88] sm:$0xff] %v3885_v30  ;;  %v3892_v6 = vmul.f32 %v5209_v56, %v7941_v28  ;;  %v3893_v41 = vmul.f32 %v5209_v56, %v7942_v3  ;;  %v3894_v63 = vmul.f32 %v5209_v56, %v7943_v38  ;;  %v7944_v47 = vld [vmem:[#allocation62_spill] sm:$0xff]  ;;  %v7945_v30 = vld [vmem:[#allocation64_spill] sm:$0xff] }
 0x5d6   :  { %4014 = vst [vmem:[%s7701_s11 + $0x90] sm:$0xff] %v3886_v43  ;;  %4015 = vst [vmem:[%s7701_s11 + $0x98] sm:$0xff] %v3887_v25  ;;  %v3895_v54 = vmul.f32 %v5209_v56, %v6922_v29  ;;  %v7949_v10 = vld [vmem:[#allocation67_spill] sm:$0xff]  ;;  %v7952_v3 = vld [vmem:[#allocation33_spill] sm:$0xff] }
 0x5d7   :  { %4016 = vst [vmem:[%s7701_s11 + $0xa0] sm:$0xff] %v3888_v48  ;;  %4017 = vst [vmem:[%s7701_s11 + $0xa8] sm:$0xff] %v3889_v49  ;;  %v3779_v55 = vpop.xlane.xlu0 %3778 }
 0x5d8   :  { %4018 = vst [vmem:[%s7701_s11 + $0xb0] sm:$0xff] %v3890_v24  ;;  %4019 = vst [vmem:[%s7701_s11 + $0xb8] sm:$0xff] %v3891_v5  ;;  %5214 = vrsqrt.f32 %v3779_v55  ;;  %v3787_v29 = vpop.xlane.xlu1 %3786  ;;  %v7950_v5 = vld [vmem:[#allocation65_spill] sm:$0xff]  ;;  %v7954_v55 = vld [vmem:[#allocation71_spill] sm:$0xff] }
 0x5d9   :  { %4020 = vst [vmem:[%s7701_s11 + $0xc0] sm:$0xff] %v3892_v6  ;;  %4021 = vst [vmem:[%s7701_s11 + $0xc8] sm:$0xff] %v3893_v41  ;;  %v5211_v40 = vpop.eup %5210  ;;  %5216 = vrsqrt.f32 %v3787_v29  ;;  %v7951_v6 = vld [vmem:[#allocation66_spill] sm:$0xff] }
 0x5da   :  { %4022 = vst [vmem:[%s7701_s11 + $0xd0] sm:$0xff] %v3894_v63  ;;  %4023 = vst [vmem:[%s7701_s11 + $0xd8] sm:$0xff] %v3895_v54  ;;  %v3896_v8 = vmul.f32 %v5211_v40, %v7944_v47  ;;  %v3897_v56 = vmul.f32 %v5211_v40, %v7945_v30  ;;  %v3898_v43 = vmul.f32 %v5211_v40, %v7946_v19  ;;  %v7953_v63 = vld [vmem:[#allocation68_spill] sm:$0xff] }
 0x5db   :  { %v3899_v25 = vmul.f32 %v5211_v40, %v7947_v60  ;;  %v5213_v48 = vpop.eup %5212  ;;  %v3900_v49 = vmul.f32 %v5211_v40, %v7948_v36  ;;  %v3901_v24 = vmul.f32 %v5211_v40, %v7949_v10  ;;  %v3902_v51 = vmul.f32 %v5211_v40, %v6973_v21  ;;  %v7957_v60 = vld [vmem:[#allocation11_spill] sm:$0xff]  ;;  %v7958_v36 = vld [vmem:[#allocation73_spill] sm:$0xff]  ;;  %v7959_v10 = vld [vmem:[#allocation78_spill] sm:$0xff] }
 0x5dc   :  { %4024 = vst [vmem:[%s7701_s11 + $0xe0] sm:$0xff] %v3896_v8  ;;  %4025 = vst [vmem:[%s7701_s11 + $0xe8] sm:$0xff] %v3897_v56  ;;  %v3903_v28 = vmul.f32 %v5213_v48, %v7950_v5  ;;  %v3904_v21 = vmul.f32 %v5213_v48, %v7951_v6  ;;  %v3905_v41 = vmul.f32 %v5213_v48, %v7952_v3  ;;  %v7955_v8 = vld [vmem:[#allocation72_spill] sm:$0xff]  ;;  %v7956_v56 = vld [vmem:[#allocation74_spill] sm:$0xff] }
 0x5dd   :  { %4026 = vst [vmem:[%s7701_s11 + $0xf0] sm:$0xff] %v3898_v43  ;;  %4027 = vst [vmem:[%s7701_s11 + $0xf8] sm:$0xff] %v3899_v25  ;;  %v3906_v38 = vmul.f32 %v5213_v48, %v6869_v39  ;;  %v3907_v54 = vmul.f32 %v5213_v48, %v7953_v63  ;;  %v3908_v29 = vmul.f32 %v5213_v48, %v7954_v55  ;;  %v7962_v6 = vld [vmem:[#allocation10_spill] sm:$0xff]  ;;  %v7964_v63 = vld [vmem:[#allocation81_spill] sm:$0xff] }
 0x5de   :  { %4028 = vst [vmem:[%s7701_s11 + $0x100] sm:$0xff] %v3900_v49  ;;  %4029 = vst [vmem:[%s7701_s11 + $0x108] sm:$0xff] %v3901_v24  ;;  %v3909_v40 = vmul.f32 %v5213_v48, %v6989_v7 }
 0x5df   :  { %4030 = vst [vmem:[%s7701_s11 + $0x110] sm:$0xff] %v3902_v51  ;;  %4031 = vst [vmem:[%s7701_s11 + $0x118] sm:$0xff] %v3903_v28  ;;  %v3795_v39 = vpop.xlane.xlu0 %3794  ;;  %v7961_v28 = vld [vmem:[#allocation76_spill] sm:$0xff] }
 0x5e0   :  { %4032 = vst [vmem:[%s7701_s11 + $0x120] sm:$0xff] %v3904_v21  ;;  %4033 = vst [vmem:[%s7701_s11 + $0x128] sm:$0xff] %v3905_v41  ;;  %5218 = vrsqrt.f32 %v3795_v39  ;;  %v7963_v41 = vld [vmem:[#allocation80_spill] sm:$0xff] }
 0x5e1   :  { %4034 = vst [vmem:[%s7701_s11 + $0x130] sm:$0xff] %v3906_v38  ;;  %4035 = vst [vmem:[%s7701_s11 + $0x138] sm:$0xff] %v3907_v54  ;;  %v3803_v7 = vpop.xlane.xlu1 %3802 }
 0x5e2   :  { %4036 = vst [vmem:[%s7701_s11 + $0x140] sm:$0xff] %v3908_v29  ;;  %4037 = vst [vmem:[%s7701_s11 + $0x148] sm:$0xff] %v3909_v40  ;;  %v5215_v47 = vpop.eup %5214  ;;  %5220 = vrsqrt.f32 %v3803_v7  ;;  %v7965_v40 = vld [vmem:[#allocation84_spill] sm:$0xff]  ;;  %v7966_v7 = vld [vmem:[#allocation86_spill] sm:$0xff] }
 0x5e3   :  { %v3910_v30 = vmul.f32 %v5215_v47, %v7955_v8  ;;  %v3911_v19 = vmul.f32 %v5215_v47, %v7956_v56  ;;  %v3912_v43 = vmul.f32 %v5215_v47, %v6883_v44  ;;  %v3913_v25 = vmul.f32 %v5215_v47, %v7957_v60  ;;  %v5217_v48 = vpop.eup %5216  ;;  %v7960_v44 = vld [vmem:[#allocation75_spill] sm:$0xff]  ;;  %v7967_v8 = vld [vmem:[#allocation13_spill] sm:$0xff] }
 0x5e4   :  { %v3914_v49 = vmul.f32 %v5215_v47, %v7958_v36  ;;  %v3915_v24 = vmul.f32 %v5215_v47, %v7959_v10  ;;  %v3916_v51 = vmul.f32 %v5215_v47, %v7035_v53  ;;  %v3917_v5 = vmul.f32 %v5217_v48, %v7960_v44  ;;  %v7971_v10 = vld [vmem:[#allocation92_spill] sm:$0xff] }
 0x5e5   :  { %4038 = vst [vmem:[%s7701_s11 + $0x150] sm:$0xff] %v3910_v30  ;;  %4039 = vst [vmem:[%s7701_s11 + $0x158] sm:$0xff] %v3911_v19  ;;  %v3918_v53 = vmul.f32 %v5217_v48, %v7961_v28  ;;  %v3919_v21 = vmul.f32 %v5217_v48, %v7962_v6  ;;  %v3920_v3 = vmul.f32 %v5217_v48, %v6935_v9 }
 0x5e6   :  { %4040 = vst [vmem:[%s7701_s11 + $0x160] sm:$0xff] %v3912_v43  ;;  %4041 = vst [vmem:[%s7701_s11 + $0x168] sm:$0xff] %v3913_v25  ;;  %v3921_v38 = vmul.f32 %v5217_v48, %v7963_v41  ;;  %v3922_v54 = vmul.f32 %v5217_v48, %v7964_v63  ;;  %v3923_v55 = vmul.f32 %v5217_v48, %v7050_v37  ;;  %v3811_v9 = vpop.xlane.xlu0 %3810  ;;  %v7968_v43 = vld [vmem:[#allocation85_spill] sm:$0xff]  ;;  %v7969_v25 = vld [vmem:[#allocation88_spill] sm:$0xff] }
 0x5e7   :  { %4042 = vst [vmem:[%s7701_s11 + $0x170] sm:$0xff] %v3914_v49  ;;  %4043 = vst [vmem:[%s7701_s11 + $0x178] sm:$0xff] %v3915_v24  ;;  %5222 = vrsqrt.f32 %v3811_v9  ;;  %v7972_v24 = vld [vmem:[#allocation14_spill] sm:$0xff]  ;;  %v7975_v41 = vld [vmem:[#allocation8_spill] sm:$0xff] }
 0x5e8   :  { %4044 = vst [vmem:[%s7701_s11 + $0x180] sm:$0xff] %v3916_v51  ;;  %4045 = vst [vmem:[%s7701_s11 + $0x188] sm:$0xff] %v3917_v5  ;;  %v7973_v5 = vld [vmem:[#allocation91_spill] sm:$0xff]  ;;  %v7976_v63 = vld [vmem:[#allocation9_spill] sm:$0xff] }
 0x5e9   :  { %4046 = vst [vmem:[%s7701_s11 + $0x190] sm:$0xff] %v3918_v53  ;;  %4047 = vst [vmem:[%s7701_s11 + $0x198] sm:$0xff] %v3919_v21  ;;  %v3819_v37 = vpop.xlane.xlu1 %3818  ;;  %v7974_v53 = vld [vmem:[#allocation94_spill] sm:$0xff]  ;;  %v7977_v9 = vld [vmem:[#allocation16_spill] sm:$0xff] }
 0x5ea   :  { %4048 = vst [vmem:[%s7701_s11 + $0x1a0] sm:$0xff] %v3920_v3  ;;  %4049 = vst [vmem:[%s7701_s11 + $0x1a8] sm:$0xff] %v3921_v38  ;;  %v5219_v29 = vpop.eup %5218  ;;  %5224 = vrsqrt.f32 %v3819_v37 }
 0x5eb   :  { %4050 = vst [vmem:[%s7701_s11 + $0x1b0] sm:$0xff] %v3922_v54  ;;  %4051 = vst [vmem:[%s7701_s11 + $0x1b8] sm:$0xff] %v3923_v55  ;;  %v3924_v39 = vmul.f32 %v5219_v29, %v7965_v40  ;;  %v3925_v47 = vmul.f32 %v5219_v29, %v7966_v7  ;;  %v3926_v30 = vmul.f32 %v5219_v29, %v7967_v8  ;;  %v7978_v40 = vld [vmem:[#allocation34_spill] sm:$0xff]  ;;  %v7979_v7 = vld [vmem:[#allocation35_spill] sm:$0xff] }
 0x5ec   :  { %v3927_v56 = vmul.f32 %v5219_v29, %v6986_v16  ;;  %v5221_v19 = vpop.eup %5220  ;;  %v3928_v60 = vmul.f32 %v5219_v29, %v7968_v43  ;;  %v3929_v48 = vmul.f32 %v5219_v29, %v7969_v25  ;;  %v3930_v36 = vmul.f32 %v5219_v29, %v7092_v11  ;;  %v7970_v16 = vld [vmem:[#allocation89_spill] sm:$0xff]  ;;  %v7983_v25 = vld [vmem:[#allocation36_spill] sm:$0xff] }
 0x5ed   :  { %4052 = vst [vmem:[%s7701_s11 + $0x1c0] sm:$0xff] %v3924_v39  ;;  %4053 = vst [vmem:[%s7701_s11 + $0x1c8] sm:$0xff] %v3925_v47  ;;  %v3931_v49 = vmul.f32 %v5221_v19, %v7970_v16  ;;  %v3932_v11 = vmul.f32 %v5221_v19, %v7971_v10  ;;  %v3933_v51 = vmul.f32 %v5221_v19, %v7972_v24 }
 0x5ee   :  { %4054 = vst [vmem:[%s7701_s11 + $0x1d0] sm:$0xff] %v3926_v30  ;;  %4055 = vst [vmem:[%s7701_s11 + $0x1d8] sm:$0xff] %v3927_v56  ;;  %v3934_v44 = vmul.f32 %v5221_v19, %v7002_v2  ;;  %v3935_v28 = vmul.f32 %v5221_v19, %v7973_v5  ;;  %v3936_v6 = vmul.f32 %v5221_v19, %v7974_v53  ;;  %v3827_v2 = vpop.xlane.xlu0 %3826  ;;  %v7981_v56 = vld [vmem:[#allocation12_spill] sm:$0xff] }
 0x5ef   :  { %4056 = vst [vmem:[%s7701_s11 + $0x1e0] sm:$0xff] %v3928_v60  ;;  %4057 = vst [vmem:[%s7701_s11 + $0x1e8] sm:$0xff] %v3929_v48  ;;  %v3937_v21 = vmul.f32 %v5221_v19, %v7106_v17  ;;  %5226 = vrsqrt.f32 %v3827_v2  ;;  %v7982_v19 = vld [vmem:[#allocation40_spill] sm:$0xff] }
 0x5f0   :  { %4058 = vst [vmem:[%s7701_s11 + $0x1f0] sm:$0xff] %v3930_v36  ;;  %4059 = vst [vmem:[%s7701_s11 + $0x1f8] sm:$0xff] %v3931_v49  ;;  %v3835_v17 = vpop.xlane.xlu1 %3834  ;;  %v7984_v36 = vld [vmem:[#allocation38_spill] sm:$0xff] }
 0x5f1   :  { %4060 = vst [vmem:[%s7701_s11 + $0x200] sm:$0xff] %v3932_v11  ;;  %4061 = vst [vmem:[%s7701_s11 + $0x208] sm:$0xff] %v3933_v51  ;;  %v5223_v3 = vpop.eup %5222  ;;  %5228 = vrsqrt.f32 %v3835_v17  ;;  %v7985_v11 = vld [vmem:[#allocation39_spill] sm:$0xff] }
 0x5f2   :  { %4062 = vst [vmem:[%s7701_s11 + $0x210] sm:$0xff] %v3934_v44  ;;  %4063 = vst [vmem:[%s7701_s11 + $0x218] sm:$0xff] %v3935_v28  ;;  %v3938_v38 = vmul.f32 %v5223_v3, %v7975_v41  ;;  %v3939_v54 = vmul.f32 %v5223_v3, %v7976_v63  ;;  %v3940_v55 = vmul.f32 %v5223_v3, %v7012_v58  ;;  %v7980_v58 = vld [vmem:[#allocation37_spill] sm:$0xff]  ;;  %v7986_v51 = vld [vmem:[#allocation15_spill] sm:$0xff] }
 0x5f3   :  { %4064 = vst [vmem:[%s7701_s11 + $0x220] sm:$0xff] %v3936_v6  ;;  %4065 = vst [vmem:[%s7701_s11 + $0x228] sm:$0xff] %v3937_v21  ;;  %v3941_v37 = vmul.f32 %v5223_v3, %v7977_v9  ;;  %v3942_v39 = vmul.f32 %v5223_v3, %v7978_v40  ;;  %v3943_v47 = vmul.f32 %v5223_v3, %v7979_v7 }
 0x5f4   :  { %v5225_v29 = vpop.eup %5224  ;;  %v3944_v8 = vmul.f32 %v5223_v3, %v7155_v22  ;;  %4066 = vst [vmem:[%s7701_s11 + $0x230] sm:$0xff] %v3938_v38  ;;  %4067 = vst [vmem:[%s7701_s11 + $0x238] sm:$0xff] %v3939_v54 }
 0x5f5   :  { %4068 = vst [vmem:[%s7701_s11 + $0x240] sm:$0xff] %v3940_v55  ;;  %4069 = vst [vmem:[%s7701_s11 + $0x248] sm:$0xff] %v3941_v37  ;;  %v3945_v30 = vmul.f32 %v5225_v29, %v7980_v58  ;;  %v3946_v22 = vmul.f32 %v5225_v29, %v7981_v56  ;;  %v3947_v43 = vmul.f32 %v5225_v29, %v7982_v19 }
 0x5f6   :  { %v3948_v60 = vmul.f32 %v5225_v29, %v7063_v0  ;;  %4070 = vst [vmem:[%s7701_s11 + $0x250] sm:$0xff] %v3942_v39  ;;  %4071 = vst [vmem:[%s7701_s11 + $0x258] sm:$0xff] %v3943_v47  ;;  %v3949_v48 = vmul.f32 %v5225_v29, %v7983_v25  ;;  %v3950_v16 = vmul.f32 %v5225_v29, %v7984_v36  ;;  %v3843_v0 = vpop.xlane.xlu0 %3842 }
 0x5f7   :  { %4072 = vst [vmem:[%s7701_s11 + $0x260] sm:$0xff] %v3944_v8  ;;  %v3951_v49 = vmul.f32 %v5225_v29, %v7169_v31  ;;  %4073 = vst [vmem:[%s7701_s11 + $0x268] sm:$0xff] %v3945_v30  ;;  %5230 = vrsqrt.f32 %v3843_v0  ;;  %v3851_v31 = vpop.xlane.xlu1 %3850 }
 0x5f8   :  { %4074 = vst [vmem:[%s7701_s11 + $0x270] sm:$0xff] %v3946_v22  ;;  %4075 = vst [vmem:[%s7701_s11 + $0x278] sm:$0xff] %v3947_v43  ;;  %5232 = vrsqrt.f32 %v3851_v31 }
 0x5f9   :  { %4076 = vst [vmem:[%s7701_s11 + $0x280] sm:$0xff] %v3948_v60  ;;  %4077 = vst [vmem:[%s7701_s11 + $0x288] sm:$0xff] %v3949_v48  ;;  %v5227_v10 = vpop.eup %5226 }
 0x5fa   :  { %4078 = vst [vmem:[%s7701_s11 + $0x290] sm:$0xff] %v3950_v16  ;;  %4079 = vst [vmem:[%s7701_s11 + $0x298] sm:$0xff] %v3951_v49  ;;  %v3952_v24 = vmul.f32 %v5227_v10, %v7985_v11  ;;  %v3953_v44 = vmul.f32 %v5227_v10, %v7986_v51  ;;  %v3954_v5 = vmul.f32 %v5227_v10, %v7074_v34  ;;  %v7987_v34 = vld [vmem:[#allocation41_spill] sm:$0xff] }
 0x5fb   :  { %v3955_v28 = vmul.f32 %v5227_v10, %v7099_v50  ;;  %v5229_v53 = vpop.eup %5228  ;;  %v3956_v6 = vmul.f32 %v5227_v10, %v7078_v12  ;;  %v3957_v21 = vmul.f32 %v5227_v10, %v7083_v15  ;;  %v3958_v2 = vmul.f32 %v5227_v10, %v7201_v42  ;;  %v7988_v15 = vld [vmem:[#allocation42_spill] sm:$0xff] }
 0x5fc   :  { %4080 = vst [vmem:[%s7701_s11 + $0x2a0] sm:$0xff] %v3952_v24  ;;  %4081 = vst [vmem:[%s7701_s11 + $0x2a8] sm:$0xff] %v3953_v44  ;;  %v3959_v12 = vmul.f32 %v5229_v53, %v7987_v34  ;;  %v3960_v50 = vmul.f32 %v5229_v53, %v7988_v15  ;;  %v3961_v42 = vmul.f32 %v5229_v53, %v7089_v61 }
 0x5fd   :  { %4082 = vst [vmem:[%s7701_s11 + $0x2b0] sm:$0xff] %v3954_v5  ;;  %4083 = vst [vmem:[%s7701_s11 + $0x2b8] sm:$0xff] %v3955_v28  ;;  %v3962_v17 = vmul.f32 %v5229_v53, %v7119_v26  ;;  %v3963_v3 = vmul.f32 %v5229_v53, %v7148_v46  ;;  %v3964_v41 = vmul.f32 %v5229_v53, %v7188_v62 }
 0x5fe   :  { %4084 = vst [vmem:[%s7701_s11 + $0x2c0] sm:$0xff] %v3956_v6  ;;  %4085 = vst [vmem:[%s7701_s11 + $0x2c8] sm:$0xff] %v3957_v21  ;;  %v3965_v61 = vmul.f32 %v5229_v53, %v7210_v14 }
 0x5ff   :  { %4086 = vst [vmem:[%s7701_s11 + $0x2d0] sm:$0xff] %v3958_v2  ;;  %4087 = vst [vmem:[%s7701_s11 + $0x2d8] sm:$0xff] %v3959_v12 }
 0x600   :  { %4088 = vst [vmem:[%s7701_s11 + $0x2e0] sm:$0xff] %v3960_v50  ;;  %4089 = vst [vmem:[%s7701_s11 + $0x2e8] sm:$0xff] %v3961_v42 }
 0x601   :  { %4090 = vst [vmem:[%s7701_s11 + $0x2f0] sm:$0xff] %v3962_v17  ;;  %4091 = vst [vmem:[%s7701_s11 + $0x2f8] sm:$0xff] %v3963_v3  ;;  %v5231_v26 = vpop.eup %5230 }
 0x602   :  { %4092 = vst [vmem:[%s7701_s11 + $0x300] sm:$0xff] %v3964_v41  ;;  %4093 = vst [vmem:[%s7701_s11 + $0x308] sm:$0xff] %v3965_v61  ;;  %v3966_v46 = vmul.f32 %v5231_v26, %v7103_v59  ;;  %v3967_v62 = vmul.f32 %v5231_v26, %v7113_v52  ;;  %v3968_v14 = vmul.f32 %v5231_v26, %v7139_v23  ;;  %v5233_v63 = vpop.eup %5232 }
 0x603   :  { %v3969_v38 = vmul.f32 %v5231_v26, %v7166_v57  ;;  %v3970_v54 = vmul.f32 %v5231_v26, %v7196_v45  ;;  %v3971_v55 = vmul.f32 %v5231_v26, %v7218_v1  ;;  %v3972_v9 = vmul.f32 %v5231_v26, %v7231_v13 }
 0x604   :  { %4094 = vst [vmem:[%s7701_s11 + $0x310] sm:$0xff] %v3966_v46  ;;  %4095 = vst [vmem:[%s7701_s11 + $0x318] sm:$0xff] %v3967_v62  ;;  %v3973_v59 = vmul.f32 %v5233_v63, %v7123_v20  ;;  %v3974_v52 = vmul.f32 %v5233_v63, %v7130_v35  ;;  %v3975_v23 = vmul.f32 %v5233_v63, %v7152_v27 }
 0x605   :  { %4096 = vst [vmem:[%s7701_s11 + $0x320] sm:$0xff] %v3968_v14  ;;  %4097 = vst [vmem:[%s7701_s11 + $0x328] sm:$0xff] %v3969_v38  ;;  %v3976_v57 = vmul.f32 %v5233_v63, %v7180_v33  ;;  %v3977_v20 = vmul.f32 %v5233_v63, %v7207_v32  ;;  %v3978_v35 = vmul.f32 %v5233_v63, %v7224_v4 }
 0x606   :  { %4098 = vst [vmem:[%s7701_s11 + $0x330] sm:$0xff] %v3970_v54  ;;  %4099 = vst [vmem:[%s7701_s11 + $0x338] sm:$0xff] %v3971_v55  ;;  %v3979_v27 = vmul.f32 %v5233_v63, %v7236_v18 }
 0x607   :  { %4100 = vst [vmem:[%s7701_s11 + $0x340] sm:$0xff] %v3972_v9  ;;  %4101 = vst [vmem:[%s7701_s11 + $0x348] sm:$0xff] %v3973_v59 }
 0x608   :  { %4102 = vst [vmem:[%s7701_s11 + $0x350] sm:$0xff] %v3974_v52  ;;  %4103 = vst [vmem:[%s7701_s11 + $0x358] sm:$0xff] %v3975_v23 }
 0x609   :  { %4104 = vst [vmem:[%s7701_s11 + $0x360] sm:$0xff] %v3976_v57  ;;  %4105 = vst [vmem:[%s7701_s11 + $0x368] sm:$0xff] %v3977_v20 }
 0x60a   :  { %4106 = vst [vmem:[%s7701_s11 + $0x370] sm:$0xff] %v3978_v35  ;;  %4107 = vst [vmem:[%s7701_s11 + $0x378] sm:$0xff] %v3979_v27 }
 0x60b   :  { %4156 = vsyncpa [#allocation3], 1 }
 0x60c   :  { %4157 = vsyncpa [#allocation5], 1 }

</bundles_post_ra>
